<compile_context>
chip_gen: v5e
topology: v5e:2x2
jax: 0.10.0
libtpu: 0.0.40
codegen_flags: <defaults>
</compile_context>

<pallas_src>
import jax
import jax.numpy as jnp
from jax.experimental import pallas as pl
from jax.experimental.pallas import tpu as pltpu

MATMUL_DTYPE = jnp.float32  # jnp.bfloat16 = max MXU throughput (looser tolerance)


# ----------------------------------------------------------------------------
# Pallas kernel
# ----------------------------------------------------------------------------
def _vc_kernel(
    x_ref, emb_ref,
    p1w_ref, p1b_ref, p2w_ref, p2b_ref,
    w1c_ref, b1c_ref, whh1_ref,
    w2t_ref, w2b_ref, b2c_ref, whh2_ref,
    wot_ref, wob_ref, bo_ref,
    y_ref,
    xw_scr, hbuf_scr,
):
    T, BB, C = x_ref.shape
    H2 = whh1_ref.shape[0]          # 2 * lstm_hidden
    H = H2 // 2
    G8 = 8 * H                      # fused gate width (both directions)
    OP = y_ref.shape[-1]
    f32 = jnp.float32

    def mm(a, w_ref):
        w = w_ref[...]
        return jnp.dot(a.astype(w.dtype), w, preferred_element_type=f32)

    # ---- speaker projections + time-invariant gate contributions ------------
    emb = emb_ref[...]                                      # [BB, E]
    proj1 = mm(emb, p1w_ref) + p1b_ref[...]                 # [BB, C]
    proj2 = mm(emb, p2w_ref) + p2b_ref[...]                 # [BB, 2H]
    const1 = mm(proj1, w1c_ref) + b1c_ref[...]              # [BB, 8H]
    const2 = mm(proj2, w2t_ref) + mm(proj2, w2b_ref) + b2c_ref[...]

    # lane masks (layout: [i_f i_b | f_f f_b | g_f g_b | o_f o_b], each H wide)
    lane = jax.lax.broadcasted_iota(jnp.int32, (BB, G8), 1)
    fwd_mask = (lane % H2) < H                      # forward-direction lanes
    g_mask = (lane >= 4 * H) & (lane < 6 * H)       # g-gate lanes (tanh)

    if T <= 32:
        unroll = T                                  # full unroll
    else:
        unroll = next((u for u in (8, 4, 2) if T % u == 0), 1)

    def dual_lstm(whh_ref):
        """One fused fwd+bwd LSTM layer: reads xw_scr, writes hbuf_scr."""
        whh = whh_ref[...]                          # [2H, 8H] block-structured
        zeros = jnp.zeros((BB, H2), f32)

        def step(s, carry):
            h, c = carry                            # [BB, 2H] = [h_f | h_b]
            t = s
            tb = T - 1 - s
            # fwd gate inputs come from time t, bwd gate inputs from time tb
            xrow = jnp.where(fwd_mask, xw_scr[t], xw_scr[tb])
            gates = xrow + jnp.dot(h.astype(whh.dtype), whh,
                                   preferred_element_type=f32)
            a = jax.nn.sigmoid(gates)               # one EUP pass over 8H lanes
            a = jnp.where(g_mask, 2.0 * a - 1.0, a)  # tanh(x) = 2*sigmoid(2x)-1
            i_g = a[:, 0:H2]
            f_g = a[:, H2:2 * H2]
            g_g = a[:, 2 * H2:3 * H2]
            o_g = a[:, 3 * H2:4 * H2]
            c = f_g * c + i_g * g_g
            h = o_g * jnp.tanh(c)                   # one tanh over 2H lanes
            hbuf_scr[0, t] = h                      # fwd half valid at time t
            hbuf_scr[1, tb] = h                     # bwd half valid at time tb
            return h, c

        jax.lax.fori_loop(0, T, step, (zeros, zeros), unroll=unroll)

    # ---- BLSTM layer 1 -------------------------------------------------------
    xflat = x_ref[...].reshape(T * BB, C)
    xw_scr[...] = mm(xflat, w1c_ref).reshape(T, BB, G8) + const1[None, :, :]
    dual_lstm(whh1_ref)

    # ---- BLSTM layer 2 -------------------------------------------------------
    h0 = hbuf_scr[0].reshape(T * BB, H2)    # lanes 0:H  = layer-1 fwd hidden
    h1 = hbuf_scr[1].reshape(T * BB, H2)    # lanes H:2H = layer-1 bwd hidden
    xw_scr[...] = (mm(h0, w2t_ref) + mm(h1, w2b_ref)).reshape(T, BB, G8) \
        + const2[None, :, :]
    dual_lstm(whh2_ref)

    # ---- output projection: one lane-dense matmul ----------------------------
    h0 = hbuf_scr[0].reshape(T * BB, H2)
    h1 = hbuf_scr[1].reshape(T * BB, H2)
    y = mm(h0, wot_ref) + mm(h1, wob_ref) + bo_ref[...]
    y_ref[...] = y.reshape(T, BB, OP).astype(y_ref.dtype)


# ----------------------------------------------------------------------------
# Kernel-parameter prep (pure JAX, done once)
# ----------------------------------------------------------------------------
def _scale_g(w, H):
    """Scale the g-gate columns by 2 so tanh(x) = 2*sigmoid(2x) - 1 in-kernel."""
    return w.at[..., 2 * H:3 * H].multiply(2.0)


def _interleave_gates(wf, wb, H):
    """[.., 4H] fwd & bwd (gate order i,f,g,o) -> [.., 8H] gate-major/dir-minor."""
    lead = wf.shape[:-1]
    wf4 = wf.reshape(lead + (4, 1, H))
    wb4 = wb.reshape(lead + (4, 1, H))
    return jnp.concatenate([wf4, wb4], axis=-2).reshape(lead + (8 * H,))


def _prepare_kernel_params(p, O_pad):
    H = p["l1f_whh"].shape[0]
    wd = MATMUL_DTYPE

    def gates_cat(af, ab):
        return _interleave_gates(_scale_g(af, H), _scale_g(ab, H), H)

    def rec_block(wf, wb):
        z = jnp.zeros_like(wf)
        return jnp.concatenate(
            [_interleave_gates(_scale_g(wf, H), z, H),
             _interleave_gates(z, _scale_g(wb, H), H)], axis=0)

    w1c = gates_cat(p["l1f_wih"], p["l1b_wih"])          # [C,  8H]
    b1c = gates_cat(p["l1f_b"], p["l1b_b"])              # [1,  8H]
    whh1 = rec_block(p["l1f_whh"], p["l1b_whh"])         # [2H, 8H]

    w2c = gates_cat(p["l2f_wih"], p["l2b_wih"])          # [2H, 8H]
    b2c = gates_cat(p["l2f_b"], p["l2b_b"])
    whh2 = rec_block(p["l2f_whh"], p["l2b_whh"])
    w2_top = w2c.at[H:].set(0.0)                         # rows multiplying h_f
    w2_bot = w2c.at[:H].set(0.0)                         # rows multiplying h_b

    O = p["ow"].shape[1]
    wo = jnp.pad(p["ow"], ((0, 0), (0, O_pad - O)))      # [2H, O_pad]
    wo_top = wo.at[H:].set(0.0)
    wo_bot = wo.at[:H].set(0.0)
    bo = jnp.pad(p["ob"], ((0, 0), (0, O_pad - O)))

    cast = lambda a: a.astype(wd)
    return dict(
        p1w=cast(p["p1w"]), p1b=p["p1b"], p2w=cast(p["p2w"]), p2b=p["p2b"],
        w1c=cast(w1c), b1c=b1c, whh1=cast(whh1),
        w2t=cast(w2_top), w2b=cast(w2_bot), b2c=b2c, whh2=cast(whh2),
        wot=cast(wo_top), wob=cast(wo_bot), bo=bo,
    )


# ----------------------------------------------------------------------------
# Wrapper
# ----------------------------------------------------------------------------
def _round_up(n, m):
    return ((n + m - 1) // m) * m


def _vmem_limit_bytes():
    try:
        cap = int(pltpu.get_tpu_info().vmem_capacity_bytes)
    except Exception:
        cap = 64 * 1024 * 1024
    return max(32 * 1024 * 1024, min(int(cap * 0.75), 100 * 1024 * 1024))


def _pick_batch_block(B, T, H, C, O_pad, vmem_limit):
    """Largest batch block (multiple of 8, <=64 rows) fitting the VMEM budget,
    keeping >=2 grid blocks when the batch allows (v7x has 2 TensorCores)."""
    b8 = _round_up(B, 8)
    # f32 VMEM bytes per batch row: gate slab (8H) + dual hidden buffers (4H)
    # + double-buffered x / out pipeline blocks.
    per_row = 4 * T * (8 * H + 4 * H + 2 * (C + O_pad))
    fit = max(8, (int(vmem_limit * 0.5) // max(per_row, 1)) // 8 * 8)
    bb = min(64, fit, b8)
    if b8 >= 16:
        bb = min(bb, max(8, (b8 // 2) // 8 * 8))
    return bb


def blstm_to_many_forward(x, spk_inds, params):
    """x: [T, B, in_channels] f32, spk_inds: [B] int32 -> [T, B, out_channels]."""
    T, B, C = x.shape
    H = params["l1f_whh"].shape[0]
    O = params["ow"].shape[1]
    E = params["emb_table"].shape[1]

    vmem_limit = _vmem_limit_bytes()
    BB = _pick_batch_block(B, T, H, C, _round_up(max(O, 1), 128), vmem_limit)
    B_pad = _round_up(B, BB)
    O_pad = _round_up(max(O, 1), 128)              # lane-dense output

    # glue: embedding-table gather (nn.Embedding) + zero-padding of the batch
    emb = params["emb_table"][spk_inds].astype(jnp.float32)          # [B, E]
    emb = jnp.pad(emb, ((0, B_pad - B), (0, 0)))
    xp = jnp.pad(x, ((0, 0), (0, B_pad - B), (0, 0)))

    kp = _prepare_kernel_params(params, O_pad)

    def const_spec(arr):
        n = arr.ndim
        return pl.BlockSpec(arr.shape, lambda i, _n=n: (0,) * _n)

    nb = B_pad // BB
    in_specs = [
        pl.BlockSpec((T, BB, C), lambda i: (0, i, 0)),       # x
        pl.BlockSpec((BB, E), lambda i: (i, 0)),             # speaker embeddings
        const_spec(kp["p1w"]), const_spec(kp["p1b"]),
        const_spec(kp["p2w"]), const_spec(kp["p2b"]),
        const_spec(kp["w1c"]), const_spec(kp["b1c"]), const_spec(kp["whh1"]),
        const_spec(kp["w2t"]), const_spec(kp["w2b"]), const_spec(kp["b2c"]),
        const_spec(kp["whh2"]),
        const_spec(kp["wot"]), const_spec(kp["wob"]), const_spec(kp["bo"]),
    ]
    out_specs = pl.BlockSpec((T, BB, O_pad), lambda i: (0, i, 0))

    y_pad = pl.pallas_call(
        _vc_kernel,
        grid=(nb,),
        out_shape=jax.ShapeDtypeStruct((T, B_pad, O_pad), jnp.float32),
        in_specs=in_specs,
        out_specs=out_specs,
        scratch_shapes=[
            pltpu.VMEM((T, BB, 8 * H), jnp.float32),     # fused gate slab
            pltpu.VMEM((2, T, BB, 2 * H), jnp.float32),  # dual hidden buffers
        ],
        compiler_params=pltpu.CompilerParams(
            dimension_semantics=("parallel",),
            vmem_limit_bytes=vmem_limit,
        ),
    )(xp, emb,
      kp["p1w"], kp["p1b"], kp["p2w"], kp["p2b"],
      kp["w1c"], kp["b1c"], kp["whh1"],
      kp["w2t"], kp["w2b"], kp["b2c"], kp["whh2"],
      kp["wot"], kp["wob"], kp["bo"])

    return y_pad[:, :B, :O]


# ----------------------------------------------------------------------------
# Deterministic parameter init (shapes mirror the PyTorch module __init__)
# ----------------------------------------------------------------------------
def init_params(key, in_channels, out_channels, num_spk, embd_dim, lstm_hidden):
    H = lstm_hidden
    keys = iter(jax.random.split(key, 32))

    def u(shape, scale=0.1):
        return jax.random.uniform(next(keys), shape, jnp.float32, -scale, scale)

    params = {
        "emb_table": u((num_spk, embd_dim), 1.0),
        "p1w": u((embd_dim, in_channels)), "p1b": u((1, in_channels)),
        "p2w": u((embd_dim, 2 * H)), "p2b": u((1, 2 * H)),
        "ow": u((2 * H, out_channels)), "ob": u((1, out_channels)),
    }
    for name, d_in in (("l1f", in_channels), ("l1b", in_channels),
                       ("l2f", 2 * H), ("l2b", 2 * H)):
        params[name + "_wih"] = u((d_in, 4 * H))
        params[name + "_whh"] = u((H, 4 * H))
        params[name + "_b"] = u((1, 4 * H))
    return params


# ----------------------------------------------------------------------------
# Pure-JAX reference (same math) for verification
# ----------------------------------------------------------------------------
def _lstm_dir_ref(inp, wih, whh, b, reverse):
    T, B, _ = inp.shape
    H = whh.shape[0]
    seq = inp[::-1] if reverse else inp

    def step(carry, x_t):
        h, c = carry
        gates = x_t @ wih + h @ whh + b
        i = jax.nn.sigmoid(gates[:, :H])
        f = jax.nn.sigmoid(gates[:, H:2 * H])
        g = jnp.tanh(gates[:, 2 * H:3 * H])
        o = jax.nn.sigmoid(gates[:, 3 * H:])
        c = f * c + i * g
        h = o * jnp.tanh(c)
        return (h, c), h

    z = jnp.zeros((B, H), jnp.float32)
    _, hs = jax.lax.scan(step, (z, z), seq)
    return hs[::-1] if reverse else hs


def forward_ref(x, spk_inds, p):
    emb = p["emb_table"][spk_inds]
    proj1 = emb @ p["p1w"] + p["p1b"]
    proj2 = emb @ p["p2w"] + p["p2b"]
    in1 = x + proj1[None]
    f1 = _lstm_dir_ref(in1, p["l1f_wih"], p["l1f_whh"], p["l1f_b"], False)
    b1 = _lstm_dir_ref(in1, p["l1b_wih"], p["l1b_whh"], p["l1b_b"], True)
    in2 = jnp.concatenate([f1, b1], -1) + proj2[None]
    f2 = _lstm_dir_ref(in2, p["l2f_wih"], p["l2f_whh"], p["l2f_b"], False)
    b2 = _lstm_dir_ref(in2, p["l2b_wih"], p["l2b_whh"], p["l2b_b"], True)
    o2 = jnp.concatenate([f2, b2], -1)
    return o2 @ p["ow"] + p["ob"]


# ----------------------------------------------------------------------------
if __name__ == "__main__":
    def check(T, B, in_channels, out_channels, num_spk, embd_dim, lstm_hidden, seed):
        key = jax.random.PRNGKey(seed)
        k_x, k_s, k_p = jax.random.split(key, 3)
        x = jax.random.normal(k_x, (T, B, in_channels), jnp.float32)
        spk_inds = jax.random.randint(k_s, (B,), 0, num_spk, dtype=jnp.int32)
        params = init_params(k_p, in_channels, out_channels, num_spk,
                             embd_dim, lstm_hidden)
        out = jax.block_until_ready(blstm_to_many_forward(x, spk_inds, params))
        ref = jax.block_until_ready(forward_ref(x, spk_inds, params))
        assert out.shape == (T, B, out_channels)
        err = jnp.max(jnp.abs(out - ref))
        assert jnp.allclose(out, ref, atol=1e-3, rtol=1e-3), f"max abs err {err}"

    # small shapes implied by the module (seq=8, batch=2, hidden=32)
    check(T=8, B=2, in_channels=16, out_channels=10,
          num_spk=4, embd_dim=8, lstm_hidden=32, seed=0)
    # multi-block batch grid + partially-unrolled recurrence path
    check(T=40, B=20, in_channels=16, out_channels=10,
          num_spk=6, embd_dim=8, lstm_hidden=32, seed=1)
    print("KERNEL_OK")
</pallas_src>

<mosaic_0001>
module attributes {stable_mosaic.version = 11 : i64} {
  func.func @_vc_kernel(%arg0: i32, %arg1: memref<8x8x16xf32, #tpu.memory_space<vmem>>, %arg2: memref<8x8xf32, #tpu.memory_space<vmem>>, %arg3: memref<8x16xf32, #tpu.memory_space<vmem>>, %arg4: memref<1x16xf32, #tpu.memory_space<vmem>>, %arg5: memref<8x64xf32, #tpu.memory_space<vmem>>, %arg6: memref<1x64xf32, #tpu.memory_space<vmem>>, %arg7: memref<16x256xf32, #tpu.memory_space<vmem>>, %arg8: memref<1x256xf32, #tpu.memory_space<vmem>>, %arg9: memref<64x256xf32, #tpu.memory_space<vmem>>, %arg10: memref<64x256xf32, #tpu.memory_space<vmem>>, %arg11: memref<64x256xf32, #tpu.memory_space<vmem>>, %arg12: memref<1x256xf32, #tpu.memory_space<vmem>>, %arg13: memref<64x256xf32, #tpu.memory_space<vmem>>, %arg14: memref<64x128xf32, #tpu.memory_space<vmem>>, %arg15: memref<64x128xf32, #tpu.memory_space<vmem>>, %arg16: memref<1x128xf32, #tpu.memory_space<vmem>>, %arg17: memref<8x8x128xf32, #tpu.memory_space<vmem>>, %arg18: memref<8x8x256xf32, #tpu.memory_space<vmem>>, %arg19: memref<2x8x8x64xf32, #tpu.memory_space<vmem>>) attributes {dimension_semantics = [#tpu.dimension_semantics<parallel>], iteration_bounds = array<i64: 1>, scalar_prefetch = 0 : i64, scratch_operands = 2 : i64, tpu.core_type = #tpu.core_type<tc>, window_params = [{transform_indices = @transform_0, window_bounds = array<i64: 8, 8, 16>}, {transform_indices = @transform_1, window_bounds = array<i64: 8, 8>}, {pipeline_mode = #tpu.pipeline_mode<synchronous>, transform_indices = @transform_2, window_bounds = array<i64: 8, 16>}, {pipeline_mode = #tpu.pipeline_mode<synchronous>, transform_indices = @transform_3, window_bounds = array<i64: 1, 16>}, {pipeline_mode = #tpu.pipeline_mode<synchronous>, transform_indices = @transform_4, window_bounds = array<i64: 8, 64>}, {pipeline_mode = #tpu.pipeline_mode<synchronous>, transform_indices = @transform_5, window_bounds = array<i64: 1, 64>}, {pipeline_mode = #tpu.pipeline_mode<synchronous>, transform_indices = @transform_6, window_bounds = array<i64: 16, 256>}, {pipeline_mode = #tpu.pipeline_mode<synchronous>, transform_indices = @transform_7, window_bounds = array<i64: 1, 256>}, {pipeline_mode = #tpu.pipeline_mode<synchronous>, transform_indices = @transform_8, window_bounds = array<i64: 64, 256>}, {pipeline_mode = #tpu.pipeline_mode<synchronous>, transform_indices = @transform_9, window_bounds = array<i64: 64, 256>}, {pipeline_mode = #tpu.pipeline_mode<synchronous>, transform_indices = @transform_10, window_bounds = array<i64: 64, 256>}, {pipeline_mode = #tpu.pipeline_mode<synchronous>, transform_indices = @transform_11, window_bounds = array<i64: 1, 256>}, {pipeline_mode = #tpu.pipeline_mode<synchronous>, transform_indices = @transform_12, window_bounds = array<i64: 64, 256>}, {pipeline_mode = #tpu.pipeline_mode<synchronous>, transform_indices = @transform_13, window_bounds = array<i64: 64, 128>}, {pipeline_mode = #tpu.pipeline_mode<synchronous>, transform_indices = @transform_14, window_bounds = array<i64: 64, 128>}, {pipeline_mode = #tpu.pipeline_mode<synchronous>, transform_indices = @transform_15, window_bounds = array<i64: 1, 128>}, {transform_indices = @transform_16, window_bounds = array<i64: 8, 8, 128>}]} {
    %c0 = arith.constant 0 : index
    %c0_0 = arith.constant 0 : index
    %0 = vector.load %arg2[%c0, %c0_0] : memref<8x8xf32, #tpu.memory_space<vmem>>, vector<8x8xf32>
    %c0_1 = arith.constant 0 : index
    %c0_2 = arith.constant 0 : index
    %1 = vector.load %arg3[%c0_1, %c0_2] : memref<8x16xf32, #tpu.memory_space<vmem>>, vector<8x16xf32>
    %cst = arith.constant dense<0.000000e+00> : vector<8x16xf32>
    %2 = tpu.matmul %0, %1, %cst {dimension_numbers = #tpu.dot_dimension_numbers<[1], [0], [0], [1], [0, 0, 1, 1], [], []>} : vector<8x8xf32>, vector<8x16xf32>, vector<8x16xf32> -> vector<8x16xf32>
    %c0_3 = arith.constant 0 : index
    %c0_4 = arith.constant 0 : index
    %3 = vector.load %arg4[%c0_3, %c0_4] : memref<1x16xf32, #tpu.memory_space<vmem>>, vector<1x16xf32>
    %4 = vector.broadcast %3 : vector<1x16xf32> to vector<8x16xf32>
    %5 = arith.addf %2, %4 : vector<8x16xf32>
    %c0_5 = arith.constant 0 : index
    %c0_6 = arith.constant 0 : index
    %6 = vector.load %arg5[%c0_5, %c0_6] : memref<8x64xf32, #tpu.memory_space<vmem>>, vector<8x64xf32>
    %cst_7 = arith.constant dense<0.000000e+00> : vector<8x64xf32>
    %7 = tpu.matmul %0, %6, %cst_7 {dimension_numbers = #tpu.dot_dimension_numbers<[1], [0], [0], [1], [0, 0, 1, 1], [], []>} : vector<8x8xf32>, vector<8x64xf32>, vector<8x64xf32> -> vector<8x64xf32>
    %c0_8 = arith.constant 0 : index
    %c0_9 = arith.constant 0 : index
    %8 = vector.load %arg6[%c0_8, %c0_9] : memref<1x64xf32, #tpu.memory_space<vmem>>, vector<1x64xf32>
    %9 = vector.broadcast %8 : vector<1x64xf32> to vector<8x64xf32>
    %10 = arith.addf %7, %9 : vector<8x64xf32>
    %c0_10 = arith.constant 0 : index
    %c0_11 = arith.constant 0 : index
    %11 = vector.load %arg7[%c0_10, %c0_11] : memref<16x256xf32, #tpu.memory_space<vmem>>, vector<16x256xf32>
    %cst_12 = arith.constant dense<0.000000e+00> : vector<8x256xf32>
    %12 = tpu.matmul %5, %11, %cst_12 {dimension_numbers = #tpu.dot_dimension_numbers<[1], [0], [0], [1], [0, 0, 1, 1], [], []>} : vector<8x16xf32>, vector<16x256xf32>, vector<8x256xf32> -> vector<8x256xf32>
    %c0_13 = arith.constant 0 : index
    %c0_14 = arith.constant 0 : index
    %13 = vector.load %arg8[%c0_13, %c0_14] : memref<1x256xf32, #tpu.memory_space<vmem>>, vector<1x256xf32>
    %14 = vector.broadcast %13 : vector<1x256xf32> to vector<8x256xf32>
    %15 = arith.addf %12, %14 : vector<8x256xf32>
    %c0_15 = arith.constant 0 : index
    %c0_16 = arith.constant 0 : index
    %16 = vector.load %arg10[%c0_15, %c0_16] : memref<64x256xf32, #tpu.memory_space<vmem>>, vector<64x256xf32>
    %cst_17 = arith.constant dense<0.000000e+00> : vector<8x256xf32>
    %17 = tpu.matmul %10, %16, %cst_17 {dimension_numbers = #tpu.dot_dimension_numbers<[1], [0], [0], [1], [0, 0, 1, 1], [], []>} : vector<8x64xf32>, vector<64x256xf32>, vector<8x256xf32> -> vector<8x256xf32>
    %c0_18 = arith.constant 0 : index
    %c0_19 = arith.constant 0 : index
    %18 = vector.load %arg11[%c0_18, %c0_19] : memref<64x256xf32, #tpu.memory_space<vmem>>, vector<64x256xf32>
    %cst_20 = arith.constant dense<0.000000e+00> : vector<8x256xf32>
    %19 = tpu.matmul %10, %18, %cst_20 {dimension_numbers = #tpu.dot_dimension_numbers<[1], [0], [0], [1], [0, 0, 1, 1], [], []>} : vector<8x64xf32>, vector<64x256xf32>, vector<8x256xf32> -> vector<8x256xf32>
    %20 = arith.addf %17, %19 : vector<8x256xf32>
    %c0_21 = arith.constant 0 : index
    %c0_22 = arith.constant 0 : index
    %21 = vector.load %arg12[%c0_21, %c0_22] : memref<1x256xf32, #tpu.memory_space<vmem>>, vector<1x256xf32>
    %22 = vector.broadcast %21 : vector<1x256xf32> to vector<8x256xf32>
    %23 = arith.addf %20, %22 : vector<8x256xf32>
    %24 = tpu.iota {dimensions = array<i32: 1>} : vector<8x256xi32>
    %c64_i32 = arith.constant 64 : i32
    %c0_i32 = arith.constant 0 : i32
    %25 = arith.cmpi eq, %c64_i32, %c0_i32 : i32
    %c1_i32 = arith.constant 1 : i32
    %26 = arith.select %25, %c1_i32, %c64_i32 : i32
    %27 = vector.broadcast %26 : i32 to vector<8x256xi32>
    %28 = arith.remsi %24, %27 : vector<8x256xi32>
    %c0_i32_23 = arith.constant 0 : i32
    %29 = vector.broadcast %c0_i32_23 : i32 to vector<8x256xi32>
    %30 = arith.cmpi ne, %28, %29 : vector<8x256xi32>
    %c0_i32_24 = arith.constant 0 : i32
    %31 = vector.broadcast %c0_i32_24 : i32 to vector<8x256xi32>
    %32 = arith.cmpi slt, %28, %31 : vector<8x256xi32>
    %c0_i32_25 = arith.constant 0 : i32
    %33 = arith.cmpi slt, %26, %c0_i32_25 : i32
    %34 = vector.broadcast %33 : i1 to vector<8x256xi1>
    %35 = vector.broadcast %34 : vector<8x256xi1> to vector<8x256xi1>
    %36 = arith.xori %32, %35 : vector<8x256xi1>
    %37 = arith.andi %36, %30 : vector<8x256xi1>
    %38 = vector.broadcast %26 : i32 to vector<8x256xi32>
    %39 = arith.addi %28, %38 : vector<8x256xi32>
    %40 = arith.select %37, %39, %28 : vector<8x256xi1>, vector<8x256xi32>
    %c32_i32 = arith.constant 32 : i32
    %41 = vector.broadcast %c32_i32 : i32 to vector<8x256xi32>
    %42 = arith.cmpi slt, %40, %41 : vector<8x256xi32>
    %c128_i32 = arith.constant 128 : i32
    %43 = vector.broadcast %c128_i32 : i32 to vector<8x256xi32>
    %44 = arith.cmpi sge, %24, %43 : vector<8x256xi32>
    %c192_i32 = arith.constant 192 : i32
    %45 = vector.broadcast %c192_i32 : i32 to vector<8x256xi32>
    %46 = arith.cmpi slt, %24, %45 : vector<8x256xi32>
    %47 = arith.andi %44, %46 : vector<8x256xi1>
    %c0_26 = arith.constant 0 : index
    %c0_27 = arith.constant 0 : index
    %c0_28 = arith.constant 0 : index
    %48 = vector.load %arg1[%c0_26, %c0_27, %c0_28] : memref<8x8x16xf32, #tpu.memory_space<vmem>>, vector<8x8x16xf32>
    %49 = vector.shape_cast %48 : vector<8x8x16xf32> to vector<64x16xf32>
    %c0_29 = arith.constant 0 : index
    %c0_30 = arith.constant 0 : index
    %50 = vector.load %arg7[%c0_29, %c0_30] : memref<16x256xf32, #tpu.memory_space<vmem>>, vector<16x256xf32>
    %cst_31 = arith.constant dense<0.000000e+00> : vector<64x256xf32>
    %51 = tpu.matmul %49, %50, %cst_31 {dimension_numbers = #tpu.dot_dimension_numbers<[1], [0], [0], [1], [0, 0, 1, 1], [], []>} : vector<64x16xf32>, vector<16x256xf32>, vector<64x256xf32> -> vector<64x256xf32>
    %52 = vector.shape_cast %51 : vector<64x256xf32> to vector<8x8x256xf32>
    %53 = vector.shape_cast %15 : vector<8x256xf32> to vector<1x8x256xf32>
    %54 = vector.broadcast %53 : vector<1x8x256xf32> to vector<8x8x256xf32>
    %55 = arith.addf %52, %54 : vector<8x8x256xf32>
    %c0_32 = arith.constant 0 : index
    %c0_33 = arith.constant 0 : index
    %c0_34 = arith.constant 0 : index
    %56 = vector.load %arg18[%c0_32, %c0_33, %c0_34] : memref<8x8x256xf32, #tpu.memory_space<vmem>>, vector<8x8x256xf32>
    tpu.vector_store %arg18[%c0_32, %c0_33, %c0_34], %55 {strides = array<i32>} : memref<8x8x256xf32, #tpu.memory_space<vmem>>, vector<8x8x256xf32>,
    %c0_35 = arith.constant 0 : index
    %c0_36 = arith.constant 0 : index
    %57 = vector.load %arg9[%c0_35, %c0_36] : memref<64x256xf32, #tpu.memory_space<vmem>>, vector<64x256xf32>
    %cst_37 = arith.constant 0.000000e+00 : f32
    %58 = vector.broadcast %cst_37 : f32 to vector<8x64xf32>
    %c0_i32_38 = arith.constant 0 : i32
    %c7_i32 = arith.constant 7 : i32
    %59 = arith.subi %c7_i32, %c0_i32_38 : i32
    %60 = arith.index_cast %c0_i32_38 : i32 to index
    %c0_39 = arith.constant 0 : index
    %c0_40 = arith.constant 0 : index
    %61 = vector.load %arg18[%60, %c0_39, %c0_40] : memref<8x8x256xf32, #tpu.memory_space<vmem>>, vector<1x8x256xf32>
    %62 = vector.shape_cast %61 : vector<1x8x256xf32> to vector<8x256xf32>
    %63 = arith.index_cast %59 : i32 to index
    %c0_41 = arith.constant 0 : index
    %c0_42 = arith.constant 0 : index
    %64 = vector.load %arg18[%63, %c0_41, %c0_42] : memref<8x8x256xf32, #tpu.memory_space<vmem>>, vector<1x8x256xf32>
    %65 = vector.shape_cast %64 : vector<1x8x256xf32> to vector<8x256xf32>
    %66 = arith.select %42, %62, %65 : vector<8x256xi1>, vector<8x256xf32>
    %cst_43 = arith.constant dense<0.000000e+00> : vector<8x256xf32>
    %67 = tpu.matmul %58, %57, %cst_43 {dimension_numbers = #tpu.dot_dimension_numbers<[1], [0], [0], [1], [0, 0, 1, 1], [], []>} : vector<8x64xf32>, vector<64x256xf32>, vector<8x256xf32> -> vector<8x256xf32>
    %68 = arith.addf %66, %67 : vector<8x256xf32>
    %69 = arith.negf %68 : vector<8x256xf32>
    %70 = math.exp %69 : vector<8x256xf32>
    %cst_44 = arith.constant 1.000000e+00 : f32
    %71 = vector.broadcast %cst_44 : f32 to vector<8x256xf32>
    %72 = arith.addf %71, %70 : vector<8x256xf32>
    %73 = arith.divf %71, %72 : vector<8x256xf32>
    %cst_45 = arith.constant 2.000000e+00 : f32
    %74 = vector.broadcast %cst_45 : f32 to vector<8x256xf32>
    %75 = arith.mulf %74, %73 : vector<8x256xf32>
    %cst_46 = arith.constant 1.000000e+00 : f32
    %76 = vector.broadcast %cst_46 : f32 to vector<8x256xf32>
    %77 = arith.subf %75, %76 : vector<8x256xf32>
    %78 = arith.select %47, %77, %73 : vector<8x256xi1>, vector<8x256xf32>
    %79 = vector.extract_strided_slice %78 {offsets = [0, 0], sizes = [8, 64], strides = [1, 1]} : vector<8x256xf32> to vector<8x64xf32>
    %80 = vector.extract_strided_slice %78 {offsets = [0, 64], sizes = [8, 64], strides = [1, 1]} : vector<8x256xf32> to vector<8x64xf32>
    %81 = vector.extract_strided_slice %78 {offsets = [0, 128], sizes = [8, 64], strides = [1, 1]} : vector<8x256xf32> to vector<8x64xf32>
    %82 = vector.extract_strided_slice %78 {offsets = [0, 192], sizes = [8, 64], strides = [1, 1]} : vector<8x256xf32> to vector<8x64xf32>
    %83 = arith.mulf %80, %58 : vector<8x64xf32>
    %84 = arith.mulf %79, %81 : vector<8x64xf32>
    %85 = arith.addf %83, %84 : vector<8x64xf32>
    %86 = math.tanh %85 : vector<8x64xf32>
    %87 = arith.mulf %82, %86 : vector<8x64xf32>
    %c0_47 = arith.constant 0 : index
    %88 = arith.index_cast %c0_i32_38 : i32 to index
    %c0_48 = arith.constant 0 : index
    %c0_49 = arith.constant 0 : index
    %89 = vector.load %arg19[%c0_47, %88, %c0_48, %c0_49] : memref<2x8x8x64xf32, #tpu.memory_space<vmem>>, vector<1x1x8x64xf32>
    %90 = vector.shape_cast %89 : vector<1x1x8x64xf32> to vector<8x64xf32>
    %91 = vector.shape_cast %87 : vector<8x64xf32> to vector<1x1x8x64xf32>
    tpu.vector_store %arg19[%c0_47, %88, %c0_48, %c0_49], %91 {strides = array<i32>} : memref<2x8x8x64xf32, #tpu.memory_space<vmem>>, vector<1x1x8x64xf32>,
    %c1 = arith.constant 1 : index
    %92 = arith.index_cast %59 : i32 to index
    %c0_50 = arith.constant 0 : index
    %c0_51 = arith.constant 0 : index
    %93 = vector.load %arg19[%c1, %92, %c0_50, %c0_51] : memref<2x8x8x64xf32, #tpu.memory_space<vmem>>, vector<1x1x8x64xf32>
    %94 = vector.shape_cast %93 : vector<1x1x8x64xf32> to vector<8x64xf32>
    %95 = vector.shape_cast %87 : vector<8x64xf32> to vector<1x1x8x64xf32>
    tpu.vector_store %arg19[%c1, %92, %c0_50, %c0_51], %95 {strides = array<i32>} : memref<2x8x8x64xf32, #tpu.memory_space<vmem>>, vector<1x1x8x64xf32>,
    %c1_i32_52 = arith.constant 1 : i32
    %c7_i32_53 = arith.constant 7 : i32
    %96 = arith.subi %c7_i32_53, %c1_i32_52 : i32
    %97 = arith.index_cast %c1_i32_52 : i32 to index
    %c0_54 = arith.constant 0 : index
    %c0_55 = arith.constant 0 : index
    %98 = vector.load %arg18[%97, %c0_54, %c0_55] : memref<8x8x256xf32, #tpu.memory_space<vmem>>, vector<1x8x256xf32>
    %99 = vector.shape_cast %98 : vector<1x8x256xf32> to vector<8x256xf32>
    %100 = arith.index_cast %96 : i32 to index
    %c0_56 = arith.constant 0 : index
    %c0_57 = arith.constant 0 : index
    %101 = vector.load %arg18[%100, %c0_56, %c0_57] : memref<8x8x256xf32, #tpu.memory_space<vmem>>, vector<1x8x256xf32>
    %102 = vector.shape_cast %101 : vector<1x8x256xf32> to vector<8x256xf32>
    %103 = arith.select %42, %99, %102 : vector<8x256xi1>, vector<8x256xf32>
    %cst_58 = arith.constant dense<0.000000e+00> : vector<8x256xf32>
    %104 = tpu.matmul %87, %57, %cst_58 {dimension_numbers = #tpu.dot_dimension_numbers<[1], [0], [0], [1], [0, 0, 1, 1], [], []>} : vector<8x64xf32>, vector<64x256xf32>, vector<8x256xf32> -> vector<8x256xf32>
    %105 = arith.addf %103, %104 : vector<8x256xf32>
    %106 = arith.negf %105 : vector<8x256xf32>
    %107 = math.exp %106 : vector<8x256xf32>
    %cst_59 = arith.constant 1.000000e+00 : f32
    %108 = vector.broadcast %cst_59 : f32 to vector<8x256xf32>
    %109 = arith.addf %108, %107 : vector<8x256xf32>
    %110 = arith.divf %108, %109 : vector<8x256xf32>
    %cst_60 = arith.constant 2.000000e+00 : f32
    %111 = vector.broadcast %cst_60 : f32 to vector<8x256xf32>
    %112 = arith.mulf %111, %110 : vector<8x256xf32>
    %cst_61 = arith.constant 1.000000e+00 : f32
    %113 = vector.broadcast %cst_61 : f32 to vector<8x256xf32>
    %114 = arith.subf %112, %113 : vector<8x256xf32>
    %115 = arith.select %47, %114, %110 : vector<8x256xi1>, vector<8x256xf32>
    %116 = vector.extract_strided_slice %115 {offsets = [0, 0], sizes = [8, 64], strides = [1, 1]} : vector<8x256xf32> to vector<8x64xf32>
    %117 = vector.extract_strided_slice %115 {offsets = [0, 64], sizes = [8, 64], strides = [1, 1]} : vector<8x256xf32> to vector<8x64xf32>
    %118 = vector.extract_strided_slice %115 {offsets = [0, 128], sizes = [8, 64], strides = [1, 1]} : vector<8x256xf32> to vector<8x64xf32>
    %119 = vector.extract_strided_slice %115 {offsets = [0, 192], sizes = [8, 64], strides = [1, 1]} : vector<8x256xf32> to vector<8x64xf32>
    %120 = arith.mulf %117, %85 : vector<8x64xf32>
    %121 = arith.mulf %116, %118 : vector<8x64xf32>
    %122 = arith.addf %120, %121 : vector<8x64xf32>
    %123 = math.tanh %122 : vector<8x64xf32>
    %124 = arith.mulf %119, %123 : vector<8x64xf32>
    %c0_62 = arith.constant 0 : index
    %125 = arith.index_cast %c1_i32_52 : i32 to index
    %c0_63 = arith.constant 0 : index
    %c0_64 = arith.constant 0 : index
    %126 = vector.load %arg19[%c0_62, %125, %c0_63, %c0_64] : memref<2x8x8x64xf32, #tpu.memory_space<vmem>>, vector<1x1x8x64xf32>
    %127 = vector.shape_cast %126 : vector<1x1x8x64xf32> to vector<8x64xf32>
    %128 = vector.shape_cast %124 : vector<8x64xf32> to vector<1x1x8x64xf32>
    tpu.vector_store %arg19[%c0_62, %125, %c0_63, %c0_64], %128 {strides = array<i32>} : memref<2x8x8x64xf32, #tpu.memory_space<vmem>>, vector<1x1x8x64xf32>,
    %c1_65 = arith.constant 1 : index
    %129 = arith.index_cast %96 : i32 to index
    %c0_66 = arith.constant 0 : index
    %c0_67 = arith.constant 0 : index
    %130 = vector.load %arg19[%c1_65, %129, %c0_66, %c0_67] : memref<2x8x8x64xf32, #tpu.memory_space<vmem>>, vector<1x1x8x64xf32>
    %131 = vector.shape_cast %130 : vector<1x1x8x64xf32> to vector<8x64xf32>
    %132 = vector.shape_cast %124 : vector<8x64xf32> to vector<1x1x8x64xf32>
    tpu.vector_store %arg19[%c1_65, %129, %c0_66, %c0_67], %132 {strides = array<i32>} : memref<2x8x8x64xf32, #tpu.memory_space<vmem>>, vector<1x1x8x64xf32>,
    %c2_i32 = arith.constant 2 : i32
    %c7_i32_68 = arith.constant 7 : i32
    %133 = arith.subi %c7_i32_68, %c2_i32 : i32
    %134 = arith.index_cast %c2_i32 : i32 to index
    %c0_69 = arith.constant 0 : index
    %c0_70 = arith.constant 0 : index
    %135 = vector.load %arg18[%134, %c0_69, %c0_70] : memref<8x8x256xf32, #tpu.memory_space<vmem>>, vector<1x8x256xf32>
    %136 = vector.shape_cast %135 : vector<1x8x256xf32> to vector<8x256xf32>
    %137 = arith.index_cast %133 : i32 to index
    %c0_71 = arith.constant 0 : index
    %c0_72 = arith.constant 0 : index
    %138 = vector.load %arg18[%137, %c0_71, %c0_72] : memref<8x8x256xf32, #tpu.memory_space<vmem>>, vector<1x8x256xf32>
    %139 = vector.shape_cast %138 : vector<1x8x256xf32> to vector<8x256xf32>
    %140 = arith.select %42, %136, %139 : vector<8x256xi1>, vector<8x256xf32>
    %cst_73 = arith.constant dense<0.000000e+00> : vector<8x256xf32>
    %141 = tpu.matmul %124, %57, %cst_73 {dimension_numbers = #tpu.dot_dimension_numbers<[1], [0], [0], [1], [0, 0, 1, 1], [], []>} : vector<8x64xf32>, vector<64x256xf32>, vector<8x256xf32> -> vector<8x256xf32>
    %142 = arith.addf %140, %141 : vector<8x256xf32>
    %143 = arith.negf %142 : vector<8x256xf32>
    %144 = math.exp %143 : vector<8x256xf32>
    %cst_74 = arith.constant 1.000000e+00 : f32
    %145 = vector.broadcast %cst_74 : f32 to vector<8x256xf32>
    %146 = arith.addf %145, %144 : vector<8x256xf32>
    %147 = arith.divf %145, %146 : vector<8x256xf32>
    %cst_75 = arith.constant 2.000000e+00 : f32
    %148 = vector.broadcast %cst_75 : f32 to vector<8x256xf32>
    %149 = arith.mulf %148, %147 : vector<8x256xf32>
    %cst_76 = arith.constant 1.000000e+00 : f32
    %150 = vector.broadcast %cst_76 : f32 to vector<8x256xf32>
    %151 = arith.subf %149, %150 : vector<8x256xf32>
    %152 = arith.select %47, %151, %147 : vector<8x256xi1>, vector<8x256xf32>
    %153 = vector.extract_strided_slice %152 {offsets = [0, 0], sizes = [8, 64], strides = [1, 1]} : vector<8x256xf32> to vector<8x64xf32>
    %154 = vector.extract_strided_slice %152 {offsets = [0, 64], sizes = [8, 64], strides = [1, 1]} : vector<8x256xf32> to vector<8x64xf32>
    %155 = vector.extract_strided_slice %152 {offsets = [0, 128], sizes = [8, 64], strides = [1, 1]} : vector<8x256xf32> to vector<8x64xf32>
    %156 = vector.extract_strided_slice %152 {offsets = [0, 192], sizes = [8, 64], strides = [1, 1]} : vector<8x256xf32> to vector<8x64xf32>
    %157 = arith.mulf %154, %122 : vector<8x64xf32>
    %158 = arith.mulf %153, %155 : vector<8x64xf32>
    %159 = arith.addf %157, %158 : vector<8x64xf32>
    %160 = math.tanh %159 : vector<8x64xf32>
    %161 = arith.mulf %156, %160 : vector<8x64xf32>
    %c0_77 = arith.constant 0 : index
    %162 = arith.index_cast %c2_i32 : i32 to index
    %c0_78 = arith.constant 0 : index
    %c0_79 = arith.constant 0 : index
    %163 = vector.load %arg19[%c0_77, %162, %c0_78, %c0_79] : memref<2x8x8x64xf32, #tpu.memory_space<vmem>>, vector<1x1x8x64xf32>
    %164 = vector.shape_cast %163 : vector<1x1x8x64xf32> to vector<8x64xf32>
    %165 = vector.shape_cast %161 : vector<8x64xf32> to vector<1x1x8x64xf32>
    tpu.vector_store %arg19[%c0_77, %162, %c0_78, %c0_79], %165 {strides = array<i32>} : memref<2x8x8x64xf32, #tpu.memory_space<vmem>>, vector<1x1x8x64xf32>,
    %c1_80 = arith.constant 1 : index
    %166 = arith.index_cast %133 : i32 to index
    %c0_81 = arith.constant 0 : index
    %c0_82 = arith.constant 0 : index
    %167 = vector.load %arg19[%c1_80, %166, %c0_81, %c0_82] : memref<2x8x8x64xf32, #tpu.memory_space<vmem>>, vector<1x1x8x64xf32>
    %168 = vector.shape_cast %167 : vector<1x1x8x64xf32> to vector<8x64xf32>
    %169 = vector.shape_cast %161 : vector<8x64xf32> to vector<1x1x8x64xf32>
    tpu.vector_store %arg19[%c1_80, %166, %c0_81, %c0_82], %169 {strides = array<i32>} : memref<2x8x8x64xf32, #tpu.memory_space<vmem>>, vector<1x1x8x64xf32>,
    %c3_i32 = arith.constant 3 : i32
    %c7_i32_83 = arith.constant 7 : i32
    %170 = arith.subi %c7_i32_83, %c3_i32 : i32
    %171 = arith.index_cast %c3_i32 : i32 to index
    %c0_84 = arith.constant 0 : index
    %c0_85 = arith.constant 0 : index
    %172 = vector.load %arg18[%171, %c0_84, %c0_85] : memref<8x8x256xf32, #tpu.memory_space<vmem>>, vector<1x8x256xf32>
    %173 = vector.shape_cast %172 : vector<1x8x256xf32> to vector<8x256xf32>
    %174 = arith.index_cast %170 : i32 to index
    %c0_86 = arith.constant 0 : index
    %c0_87 = arith.constant 0 : index
    %175 = vector.load %arg18[%174, %c0_86, %c0_87] : memref<8x8x256xf32, #tpu.memory_space<vmem>>, vector<1x8x256xf32>
    %176 = vector.shape_cast %175 : vector<1x8x256xf32> to vector<8x256xf32>
    %177 = arith.select %42, %173, %176 : vector<8x256xi1>, vector<8x256xf32>
    %cst_88 = arith.constant dense<0.000000e+00> : vector<8x256xf32>
    %178 = tpu.matmul %161, %57, %cst_88 {dimension_numbers = #tpu.dot_dimension_numbers<[1], [0], [0], [1], [0, 0, 1, 1], [], []>} : vector<8x64xf32>, vector<64x256xf32>, vector<8x256xf32> -> vector<8x256xf32>
    %179 = arith.addf %177, %178 : vector<8x256xf32>
    %180 = arith.negf %179 : vector<8x256xf32>
    %181 = math.exp %180 : vector<8x256xf32>
    %cst_89 = arith.constant 1.000000e+00 : f32
    %182 = vector.broadcast %cst_89 : f32 to vector<8x256xf32>
    %183 = arith.addf %182, %181 : vector<8x256xf32>
    %184 = arith.divf %182, %183 : vector<8x256xf32>
    %cst_90 = arith.constant 2.000000e+00 : f32
    %185 = vector.broadcast %cst_90 : f32 to vector<8x256xf32>
    %186 = arith.mulf %185, %184 : vector<8x256xf32>
    %cst_91 = arith.constant 1.000000e+00 : f32
    %187 = vector.broadcast %cst_91 : f32 to vector<8x256xf32>
    %188 = arith.subf %186, %187 : vector<8x256xf32>
    %189 = arith.select %47, %188, %184 : vector<8x256xi1>, vector<8x256xf32>
    %190 = vector.extract_strided_slice %189 {offsets = [0, 0], sizes = [8, 64], strides = [1, 1]} : vector<8x256xf32> to vector<8x64xf32>
    %191 = vector.extract_strided_slice %189 {offsets = [0, 64], sizes = [8, 64], strides = [1, 1]} : vector<8x256xf32> to vector<8x64xf32>
    %192 = vector.extract_strided_slice %189 {offsets = [0, 128], sizes = [8, 64], strides = [1, 1]} : vector<8x256xf32> to vector<8x64xf32>
    %193 = vector.extract_strided_slice %189 {offsets = [0, 192], sizes = [8, 64], strides = [1, 1]} : vector<8x256xf32> to vector<8x64xf32>
    %194 = arith.mulf %191, %159 : vector<8x64xf32>
    %195 = arith.mulf %190, %192 : vector<8x64xf32>
    %196 = arith.addf %194, %195 : vector<8x64xf32>
    %197 = math.tanh %196 : vector<8x64xf32>
    %198 = arith.mulf %193, %197 : vector<8x64xf32>
    %c0_92 = arith.constant 0 : index
    %199 = arith.index_cast %c3_i32 : i32 to index
    %c0_93 = arith.constant 0 : index
    %c0_94 = arith.constant 0 : index
    %200 = vector.load %arg19[%c0_92, %199, %c0_93, %c0_94] : memref<2x8x8x64xf32, #tpu.memory_space<vmem>>, vector<1x1x8x64xf32>
    %201 = vector.shape_cast %200 : vector<1x1x8x64xf32> to vector<8x64xf32>
    %202 = vector.shape_cast %198 : vector<8x64xf32> to vector<1x1x8x64xf32>
    tpu.vector_store %arg19[%c0_92, %199, %c0_93, %c0_94], %202 {strides = array<i32>} : memref<2x8x8x64xf32, #tpu.memory_space<vmem>>, vector<1x1x8x64xf32>,
    %c1_95 = arith.constant 1 : index
    %203 = arith.index_cast %170 : i32 to index
    %c0_96 = arith.constant 0 : index
    %c0_97 = arith.constant 0 : index
    %204 = vector.load %arg19[%c1_95, %203, %c0_96, %c0_97] : memref<2x8x8x64xf32, #tpu.memory_space<vmem>>, vector<1x1x8x64xf32>
    %205 = vector.shape_cast %204 : vector<1x1x8x64xf32> to vector<8x64xf32>
    %206 = vector.shape_cast %198 : vector<8x64xf32> to vector<1x1x8x64xf32>
    tpu.vector_store %arg19[%c1_95, %203, %c0_96, %c0_97], %206 {strides = array<i32>} : memref<2x8x8x64xf32, #tpu.memory_space<vmem>>, vector<1x1x8x64xf32>,
    %c4_i32 = arith.constant 4 : i32
    %c7_i32_98 = arith.constant 7 : i32
    %207 = arith.subi %c7_i32_98, %c4_i32 : i32
    %208 = arith.index_cast %c4_i32 : i32 to index
    %c0_99 = arith.constant 0 : index
    %c0_100 = arith.constant 0 : index
    %209 = vector.load %arg18[%208, %c0_99, %c0_100] : memref<8x8x256xf32, #tpu.memory_space<vmem>>, vector<1x8x256xf32>
    %210 = vector.shape_cast %209 : vector<1x8x256xf32> to vector<8x256xf32>
    %211 = arith.index_cast %207 : i32 to index
    %c0_101 = arith.constant 0 : index
    %c0_102 = arith.constant 0 : index
    %212 = vector.load %arg18[%211, %c0_101, %c0_102] : memref<8x8x256xf32, #tpu.memory_space<vmem>>, vector<1x8x256xf32>
    %213 = vector.shape_cast %212 : vector<1x8x256xf32> to vector<8x256xf32>
    %214 = arith.select %42, %210, %213 : vector<8x256xi1>, vector<8x256xf32>
    %cst_103 = arith.constant dense<0.000000e+00> : vector<8x256xf32>
    %215 = tpu.matmul %198, %57, %cst_103 {dimension_numbers = #tpu.dot_dimension_numbers<[1], [0], [0], [1], [0, 0, 1, 1], [], []>} : vector<8x64xf32>, vector<64x256xf32>, vector<8x256xf32> -> vector<8x256xf32>
    %216 = arith.addf %214, %215 : vector<8x256xf32>
    %217 = arith.negf %216 : vector<8x256xf32>
    %218 = math.exp %217 : vector<8x256xf32>
    %cst_104 = arith.constant 1.000000e+00 : f32
    %219 = vector.broadcast %cst_104 : f32 to vector<8x256xf32>
    %220 = arith.addf %219, %218 : vector<8x256xf32>
    %221 = arith.divf %219, %220 : vector<8x256xf32>
    %cst_105 = arith.constant 2.000000e+00 : f32
    %222 = vector.broadcast %cst_105 : f32 to vector<8x256xf32>
    %223 = arith.mulf %222, %221 : vector<8x256xf32>
    %cst_106 = arith.constant 1.000000e+00 : f32
    %224 = vector.broadcast %cst_106 : f32 to vector<8x256xf32>
    %225 = arith.subf %223, %224 : vector<8x256xf32>
    %226 = arith.select %47, %225, %221 : vector<8x256xi1>, vector<8x256xf32>
    %227 = vector.extract_strided_slice %226 {offsets = [0, 0], sizes = [8, 64], strides = [1, 1]} : vector<8x256xf32> to vector<8x64xf32>
    %228 = vector.extract_strided_slice %226 {offsets = [0, 64], sizes = [8, 64], strides = [1, 1]} : vector<8x256xf32> to vector<8x64xf32>
    %229 = vector.extract_strided_slice %226 {offsets = [0, 128], sizes = [8, 64], strides = [1, 1]} : vector<8x256xf32> to vector<8x64xf32>
    %230 = vector.extract_strided_slice %226 {offsets = [0, 192], sizes = [8, 64], strides = [1, 1]} : vector<8x256xf32> to vector<8x64xf32>
    %231 = arith.mulf %228, %196 : vector<8x64xf32>
    %232 = arith.mulf %227, %229 : vector<8x64xf32>
    %233 = arith.addf %231, %232 : vector<8x64xf32>
    %234 = math.tanh %233 : vector<8x64xf32>
    %235 = arith.mulf %230, %234 : vector<8x64xf32>
    %c0_107 = arith.constant 0 : index
    %236 = arith.index_cast %c4_i32 : i32 to index
    %c0_108 = arith.constant 0 : index
    %c0_109 = arith.constant 0 : index
    %237 = vector.load %arg19[%c0_107, %236, %c0_108, %c0_109] : memref<2x8x8x64xf32, #tpu.memory_space<vmem>>, vector<1x1x8x64xf32>
    %238 = vector.shape_cast %237 : vector<1x1x8x64xf32> to vector<8x64xf32>
    %239 = vector.shape_cast %235 : vector<8x64xf32> to vector<1x1x8x64xf32>
    tpu.vector_store %arg19[%c0_107, %236, %c0_108, %c0_109], %239 {strides = array<i32>} : memref<2x8x8x64xf32, #tpu.memory_space<vmem>>, vector<1x1x8x64xf32>,
    %c1_110 = arith.constant 1 : index
    %240 = arith.index_cast %207 : i32 to index
    %c0_111 = arith.constant 0 : index
    %c0_112 = arith.constant 0 : index
    %241 = vector.load %arg19[%c1_110, %240, %c0_111, %c0_112] : memref<2x8x8x64xf32, #tpu.memory_space<vmem>>, vector<1x1x8x64xf32>
    %242 = vector.shape_cast %241 : vector<1x1x8x64xf32> to vector<8x64xf32>
    %243 = vector.shape_cast %235 : vector<8x64xf32> to vector<1x1x8x64xf32>
    tpu.vector_store %arg19[%c1_110, %240, %c0_111, %c0_112], %243 {strides = array<i32>} : memref<2x8x8x64xf32, #tpu.memory_space<vmem>>, vector<1x1x8x64xf32>,
    %c5_i32 = arith.constant 5 : i32
    %c7_i32_113 = arith.constant 7 : i32
    %244 = arith.subi %c7_i32_113, %c5_i32 : i32
    %245 = arith.index_cast %c5_i32 : i32 to index
    %c0_114 = arith.constant 0 : index
    %c0_115 = arith.constant 0 : index
    %246 = vector.load %arg18[%245, %c0_114, %c0_115] : memref<8x8x256xf32, #tpu.memory_space<vmem>>, vector<1x8x256xf32>
    %247 = vector.shape_cast %246 : vector<1x8x256xf32> to vector<8x256xf32>
    %248 = arith.index_cast %244 : i32 to index
    %c0_116 = arith.constant 0 : index
    %c0_117 = arith.constant 0 : index
    %249 = vector.load %arg18[%248, %c0_116, %c0_117] : memref<8x8x256xf32, #tpu.memory_space<vmem>>, vector<1x8x256xf32>
    %250 = vector.shape_cast %249 : vector<1x8x256xf32> to vector<8x256xf32>
    %251 = arith.select %42, %247, %250 : vector<8x256xi1>, vector<8x256xf32>
    %cst_118 = arith.constant dense<0.000000e+00> : vector<8x256xf32>
    %252 = tpu.matmul %235, %57, %cst_118 {dimension_numbers = #tpu.dot_dimension_numbers<[1], [0], [0], [1], [0, 0, 1, 1], [], []>} : vector<8x64xf32>, vector<64x256xf32>, vector<8x256xf32> -> vector<8x256xf32>
    %253 = arith.addf %251, %252 : vector<8x256xf32>
    %254 = arith.negf %253 : vector<8x256xf32>
    %255 = math.exp %254 : vector<8x256xf32>
    %cst_119 = arith.constant 1.000000e+00 : f32
    %256 = vector.broadcast %cst_119 : f32 to vector<8x256xf32>
    %257 = arith.addf %256, %255 : vector<8x256xf32>
    %258 = arith.divf %256, %257 : vector<8x256xf32>
    %cst_120 = arith.constant 2.000000e+00 : f32
    %259 = vector.broadcast %cst_120 : f32 to vector<8x256xf32>
    %260 = arith.mulf %259, %258 : vector<8x256xf32>
    %cst_121 = arith.constant 1.000000e+00 : f32
    %261 = vector.broadcast %cst_121 : f32 to vector<8x256xf32>
    %262 = arith.subf %260, %261 : vector<8x256xf32>
    %263 = arith.select %47, %262, %258 : vector<8x256xi1>, vector<8x256xf32>
    %264 = vector.extract_strided_slice %263 {offsets = [0, 0], sizes = [8, 64], strides = [1, 1]} : vector<8x256xf32> to vector<8x64xf32>
    %265 = vector.extract_strided_slice %263 {offsets = [0, 64], sizes = [8, 64], strides = [1, 1]} : vector<8x256xf32> to vector<8x64xf32>
    %266 = vector.extract_strided_slice %263 {offsets = [0, 128], sizes = [8, 64], strides = [1, 1]} : vector<8x256xf32> to vector<8x64xf32>
    %267 = vector.extract_strided_slice %263 {offsets = [0, 192], sizes = [8, 64], strides = [1, 1]} : vector<8x256xf32> to vector<8x64xf32>
    %268 = arith.mulf %265, %233 : vector<8x64xf32>
    %269 = arith.mulf %264, %266 : vector<8x64xf32>
    %270 = arith.addf %268, %269 : vector<8x64xf32>
    %271 = math.tanh %270 : vector<8x64xf32>
    %272 = arith.mulf %267, %271 : vector<8x64xf32>
    %c0_122 = arith.constant 0 : index
    %273 = arith.index_cast %c5_i32 : i32 to index
    %c0_123 = arith.constant 0 : index
    %c0_124 = arith.constant 0 : index
    %274 = vector.load %arg19[%c0_122, %273, %c0_123, %c0_124] : memref<2x8x8x64xf32, #tpu.memory_space<vmem>>, vector<1x1x8x64xf32>
    %275 = vector.shape_cast %274 : vector<1x1x8x64xf32> to vector<8x64xf32>
    %276 = vector.shape_cast %272 : vector<8x64xf32> to vector<1x1x8x64xf32>
    tpu.vector_store %arg19[%c0_122, %273, %c0_123, %c0_124], %276 {strides = array<i32>} : memref<2x8x8x64xf32, #tpu.memory_space<vmem>>, vector<1x1x8x64xf32>,
    %c1_125 = arith.constant 1 : index
    %277 = arith.index_cast %244 : i32 to index
    %c0_126 = arith.constant 0 : index
    %c0_127 = arith.constant 0 : index
    %278 = vector.load %arg19[%c1_125, %277, %c0_126, %c0_127] : memref<2x8x8x64xf32, #tpu.memory_space<vmem>>, vector<1x1x8x64xf32>
    %279 = vector.shape_cast %278 : vector<1x1x8x64xf32> to vector<8x64xf32>
    %280 = vector.shape_cast %272 : vector<8x64xf32> to vector<1x1x8x64xf32>
    tpu.vector_store %arg19[%c1_125, %277, %c0_126, %c0_127], %280 {strides = array<i32>} : memref<2x8x8x64xf32, #tpu.memory_space<vmem>>, vector<1x1x8x64xf32>,
    %c6_i32 = arith.constant 6 : i32
    %c7_i32_128 = arith.constant 7 : i32
    %281 = arith.subi %c7_i32_128, %c6_i32 : i32
    %282 = arith.index_cast %c6_i32 : i32 to index
    %c0_129 = arith.constant 0 : index
    %c0_130 = arith.constant 0 : index
    %283 = vector.load %arg18[%282, %c0_129, %c0_130] : memref<8x8x256xf32, #tpu.memory_space<vmem>>, vector<1x8x256xf32>
    %284 = vector.shape_cast %283 : vector<1x8x256xf32> to vector<8x256xf32>
    %285 = arith.index_cast %281 : i32 to index
    %c0_131 = arith.constant 0 : index
    %c0_132 = arith.constant 0 : index
    %286 = vector.load %arg18[%285, %c0_131, %c0_132] : memref<8x8x256xf32, #tpu.memory_space<vmem>>, vector<1x8x256xf32>
    %287 = vector.shape_cast %286 : vector<1x8x256xf32> to vector<8x256xf32>
    %288 = arith.select %42, %284, %287 : vector<8x256xi1>, vector<8x256xf32>
    %cst_133 = arith.constant dense<0.000000e+00> : vector<8x256xf32>
    %289 = tpu.matmul %272, %57, %cst_133 {dimension_numbers = #tpu.dot_dimension_numbers<[1], [0], [0], [1], [0, 0, 1, 1], [], []>} : vector<8x64xf32>, vector<64x256xf32>, vector<8x256xf32> -> vector<8x256xf32>
    %290 = arith.addf %288, %289 : vector<8x256xf32>
    %291 = arith.negf %290 : vector<8x256xf32>
    %292 = math.exp %291 : vector<8x256xf32>
    %cst_134 = arith.constant 1.000000e+00 : f32
    %293 = vector.broadcast %cst_134 : f32 to vector<8x256xf32>
    %294 = arith.addf %293, %292 : vector<8x256xf32>
    %295 = arith.divf %293, %294 : vector<8x256xf32>
    %cst_135 = arith.constant 2.000000e+00 : f32
    %296 = vector.broadcast %cst_135 : f32 to vector<8x256xf32>
    %297 = arith.mulf %296, %295 : vector<8x256xf32>
    %cst_136 = arith.constant 1.000000e+00 : f32
    %298 = vector.broadcast %cst_136 : f32 to vector<8x256xf32>
    %299 = arith.subf %297, %298 : vector<8x256xf32>
    %300 = arith.select %47, %299, %295 : vector<8x256xi1>, vector<8x256xf32>
    %301 = vector.extract_strided_slice %300 {offsets = [0, 0], sizes = [8, 64], strides = [1, 1]} : vector<8x256xf32> to vector<8x64xf32>
    %302 = vector.extract_strided_slice %300 {offsets = [0, 64], sizes = [8, 64], strides = [1, 1]} : vector<8x256xf32> to vector<8x64xf32>
    %303 = vector.extract_strided_slice %300 {offsets = [0, 128], sizes = [8, 64], strides = [1, 1]} : vector<8x256xf32> to vector<8x64xf32>
    %304 = vector.extract_strided_slice %300 {offsets = [0, 192], sizes = [8, 64], strides = [1, 1]} : vector<8x256xf32> to vector<8x64xf32>
    %305 = arith.mulf %302, %270 : vector<8x64xf32>
    %306 = arith.mulf %301, %303 : vector<8x64xf32>
    %307 = arith.addf %305, %306 : vector<8x64xf32>
    %308 = math.tanh %307 : vector<8x64xf32>
    %309 = arith.mulf %304, %308 : vector<8x64xf32>
    %c0_137 = arith.constant 0 : index
    %310 = arith.index_cast %c6_i32 : i32 to index
    %c0_138 = arith.constant 0 : index
    %c0_139 = arith.constant 0 : index
    %311 = vector.load %arg19[%c0_137, %310, %c0_138, %c0_139] : memref<2x8x8x64xf32, #tpu.memory_space<vmem>>, vector<1x1x8x64xf32>
    %312 = vector.shape_cast %311 : vector<1x1x8x64xf32> to vector<8x64xf32>
    %313 = vector.shape_cast %309 : vector<8x64xf32> to vector<1x1x8x64xf32>
    tpu.vector_store %arg19[%c0_137, %310, %c0_138, %c0_139], %313 {strides = array<i32>} : memref<2x8x8x64xf32, #tpu.memory_space<vmem>>, vector<1x1x8x64xf32>,
    %c1_140 = arith.constant 1 : index
    %314 = arith.index_cast %281 : i32 to index
    %c0_141 = arith.constant 0 : index
    %c0_142 = arith.constant 0 : index
    %315 = vector.load %arg19[%c1_140, %314, %c0_141, %c0_142] : memref<2x8x8x64xf32, #tpu.memory_space<vmem>>, vector<1x1x8x64xf32>
    %316 = vector.shape_cast %315 : vector<1x1x8x64xf32> to vector<8x64xf32>
    %317 = vector.shape_cast %309 : vector<8x64xf32> to vector<1x1x8x64xf32>
    tpu.vector_store %arg19[%c1_140, %314, %c0_141, %c0_142], %317 {strides = array<i32>} : memref<2x8x8x64xf32, #tpu.memory_space<vmem>>, vector<1x1x8x64xf32>,
    %c7_i32_143 = arith.constant 7 : i32
    %c7_i32_144 = arith.constant 7 : i32
    %318 = arith.subi %c7_i32_144, %c7_i32_143 : i32
    %319 = arith.index_cast %c7_i32_143 : i32 to index
    %c0_145 = arith.constant 0 : index
    %c0_146 = arith.constant 0 : index
    %320 = vector.load %arg18[%319, %c0_145, %c0_146] : memref<8x8x256xf32, #tpu.memory_space<vmem>>, vector<1x8x256xf32>
    %321 = vector.shape_cast %320 : vector<1x8x256xf32> to vector<8x256xf32>
    %322 = arith.index_cast %318 : i32 to index
    %c0_147 = arith.constant 0 : index
    %c0_148 = arith.constant 0 : index
    %323 = vector.load %arg18[%322, %c0_147, %c0_148] : memref<8x8x256xf32, #tpu.memory_space<vmem>>, vector<1x8x256xf32>
    %324 = vector.shape_cast %323 : vector<1x8x256xf32> to vector<8x256xf32>
    %325 = arith.select %42, %321, %324 : vector<8x256xi1>, vector<8x256xf32>
    %cst_149 = arith.constant dense<0.000000e+00> : vector<8x256xf32>
    %326 = tpu.matmul %309, %57, %cst_149 {dimension_numbers = #tpu.dot_dimension_numbers<[1], [0], [0], [1], [0, 0, 1, 1], [], []>} : vector<8x64xf32>, vector<64x256xf32>, vector<8x256xf32> -> vector<8x256xf32>
    %327 = arith.addf %325, %326 : vector<8x256xf32>
    %328 = arith.negf %327 : vector<8x256xf32>
    %329 = math.exp %328 : vector<8x256xf32>
    %cst_150 = arith.constant 1.000000e+00 : f32
    %330 = vector.broadcast %cst_150 : f32 to vector<8x256xf32>
    %331 = arith.addf %330, %329 : vector<8x256xf32>
    %332 = arith.divf %330, %331 : vector<8x256xf32>
    %cst_151 = arith.constant 2.000000e+00 : f32
    %333 = vector.broadcast %cst_151 : f32 to vector<8x256xf32>
    %334 = arith.mulf %333, %332 : vector<8x256xf32>
    %cst_152 = arith.constant 1.000000e+00 : f32
    %335 = vector.broadcast %cst_152 : f32 to vector<8x256xf32>
    %336 = arith.subf %334, %335 : vector<8x256xf32>
    %337 = arith.select %47, %336, %332 : vector<8x256xi1>, vector<8x256xf32>
    %338 = vector.extract_strided_slice %337 {offsets = [0, 0], sizes = [8, 64], strides = [1, 1]} : vector<8x256xf32> to vector<8x64xf32>
    %339 = vector.extract_strided_slice %337 {offsets = [0, 64], sizes = [8, 64], strides = [1, 1]} : vector<8x256xf32> to vector<8x64xf32>
    %340 = vector.extract_strided_slice %337 {offsets = [0, 128], sizes = [8, 64], strides = [1, 1]} : vector<8x256xf32> to vector<8x64xf32>
    %341 = vector.extract_strided_slice %337 {offsets = [0, 192], sizes = [8, 64], strides = [1, 1]} : vector<8x256xf32> to vector<8x64xf32>
    %342 = arith.mulf %339, %307 : vector<8x64xf32>
    %343 = arith.mulf %338, %340 : vector<8x64xf32>
    %344 = arith.addf %342, %343 : vector<8x64xf32>
    %345 = math.tanh %344 : vector<8x64xf32>
    %346 = arith.mulf %341, %345 : vector<8x64xf32>
    %c0_153 = arith.constant 0 : index
    %347 = arith.index_cast %c7_i32_143 : i32 to index
    %c0_154 = arith.constant 0 : index
    %c0_155 = arith.constant 0 : index
    %348 = vector.load %arg19[%c0_153, %347, %c0_154, %c0_155] : memref<2x8x8x64xf32, #tpu.memory_space<vmem>>, vector<1x1x8x64xf32>
    %349 = vector.shape_cast %348 : vector<1x1x8x64xf32> to vector<8x64xf32>
    %350 = vector.shape_cast %346 : vector<8x64xf32> to vector<1x1x8x64xf32>
    tpu.vector_store %arg19[%c0_153, %347, %c0_154, %c0_155], %350 {strides = array<i32>} : memref<2x8x8x64xf32, #tpu.memory_space<vmem>>, vector<1x1x8x64xf32>,
    %c1_156 = arith.constant 1 : index
    %351 = arith.index_cast %318 : i32 to index
    %c0_157 = arith.constant 0 : index
    %c0_158 = arith.constant 0 : index
    %352 = vector.load %arg19[%c1_156, %351, %c0_157, %c0_158] : memref<2x8x8x64xf32, #tpu.memory_space<vmem>>, vector<1x1x8x64xf32>
    %353 = vector.shape_cast %352 : vector<1x1x8x64xf32> to vector<8x64xf32>
    %354 = vector.shape_cast %346 : vector<8x64xf32> to vector<1x1x8x64xf32>
    tpu.vector_store %arg19[%c1_156, %351, %c0_157, %c0_158], %354 {strides = array<i32>} : memref<2x8x8x64xf32, #tpu.memory_space<vmem>>, vector<1x1x8x64xf32>,
    %c8_i32 = arith.constant 8 : i32
    %c0_159 = arith.constant 0 : index
    %c0_160 = arith.constant 0 : index
    %c0_161 = arith.constant 0 : index
    %c0_162 = arith.constant 0 : index
    %355 = vector.load %arg19[%c0_159, %c0_160, %c0_161, %c0_162] : memref<2x8x8x64xf32, #tpu.memory_space<vmem>>, vector<1x8x8x64xf32>
    %356 = vector.shape_cast %355 : vector<1x8x8x64xf32> to vector<8x8x64xf32>
    %357 = vector.shape_cast %356 : vector<8x8x64xf32> to vector<64x64xf32>
    %c1_163 = arith.constant 1 : index
    %c0_164 = arith.constant 0 : index
    %c0_165 = arith.constant 0 : index
    %c0_166 = arith.constant 0 : index
    %358 = vector.load %arg19[%c1_163, %c0_164, %c0_165, %c0_166] : memref<2x8x8x64xf32, #tpu.memory_space<vmem>>, vector<1x8x8x64xf32>
    %359 = vector.shape_cast %358 : vector<1x8x8x64xf32> to vector<8x8x64xf32>
    %360 = vector.shape_cast %359 : vector<8x8x64xf32> to vector<64x64xf32>
    %c0_167 = arith.constant 0 : index
    %c0_168 = arith.constant 0 : index
    %361 = vector.load %arg10[%c0_167, %c0_168] : memref<64x256xf32, #tpu.memory_space<vmem>>, vector<64x256xf32>
    %cst_169 = arith.constant dense<0.000000e+00> : vector<64x256xf32>
    %362 = tpu.matmul %357, %361, %cst_169 {dimension_numbers = #tpu.dot_dimension_numbers<[1], [0], [0], [1], [0, 0, 1, 1], [], []>} : vector<64x64xf32>, vector<64x256xf32>, vector<64x256xf32> -> vector<64x256xf32>
    %c0_170 = arith.constant 0 : index
    %c0_171 = arith.constant 0 : index
    %363 = vector.load %arg11[%c0_170, %c0_171] : memref<64x256xf32, #tpu.memory_space<vmem>>, vector<64x256xf32>
    %cst_172 = arith.constant dense<0.000000e+00> : vector<64x256xf32>
    %364 = tpu.matmul %360, %363, %cst_172 {dimension_numbers = #tpu.dot_dimension_numbers<[1], [0], [0], [1], [0, 0, 1, 1], [], []>} : vector<64x64xf32>, vector<64x256xf32>, vector<64x256xf32> -> vector<64x256xf32>
    %365 = arith.addf %362, %364 : vector<64x256xf32>
    %366 = vector.shape_cast %365 : vector<64x256xf32> to vector<8x8x256xf32>
    %367 = vector.shape_cast %23 : vector<8x256xf32> to vector<1x8x256xf32>
    %368 = vector.broadcast %367 : vector<1x8x256xf32> to vector<8x8x256xf32>
    %369 = arith.addf %366, %368 : vector<8x8x256xf32>
    %c0_173 = arith.constant 0 : index
    %c0_174 = arith.constant 0 : index
    %c0_175 = arith.constant 0 : index
    %370 = vector.load %arg18[%c0_173, %c0_174, %c0_175] : memref<8x8x256xf32, #tpu.memory_space<vmem>>, vector<8x8x256xf32>
    tpu.vector_store %arg18[%c0_173, %c0_174, %c0_175], %369 {strides = array<i32>} : memref<8x8x256xf32, #tpu.memory_space<vmem>>, vector<8x8x256xf32>,
    %c0_176 = arith.constant 0 : index
    %c0_177 = arith.constant 0 : index
    %371 = vector.load %arg13[%c0_176, %c0_177] : memref<64x256xf32, #tpu.memory_space<vmem>>, vector<64x256xf32>
    %cst_178 = arith.constant 0.000000e+00 : f32
    %372 = vector.broadcast %cst_178 : f32 to vector<8x64xf32>
    %c0_i32_179 = arith.constant 0 : i32
    %c7_i32_180 = arith.constant 7 : i32
    %373 = arith.subi %c7_i32_180, %c0_i32_179 : i32
    %374 = arith.index_cast %c0_i32_179 : i32 to index
    %c0_181 = arith.constant 0 : index
    %c0_182 = arith.constant 0 : index
    %375 = vector.load %arg18[%374, %c0_181, %c0_182] : memref<8x8x256xf32, #tpu.memory_space<vmem>>, vector<1x8x256xf32>
    %376 = vector.shape_cast %375 : vector<1x8x256xf32> to vector<8x256xf32>
    %377 = arith.index_cast %373 : i32 to index
    %c0_183 = arith.constant 0 : index
    %c0_184 = arith.constant 0 : index
    %378 = vector.load %arg18[%377, %c0_183, %c0_184] : memref<8x8x256xf32, #tpu.memory_space<vmem>>, vector<1x8x256xf32>
    %379 = vector.shape_cast %378 : vector<1x8x256xf32> to vector<8x256xf32>
    %380 = arith.select %42, %376, %379 : vector<8x256xi1>, vector<8x256xf32>
    %cst_185 = arith.constant dense<0.000000e+00> : vector<8x256xf32>
    %381 = tpu.matmul %372, %371, %cst_185 {dimension_numbers = #tpu.dot_dimension_numbers<[1], [0], [0], [1], [0, 0, 1, 1], [], []>} : vector<8x64xf32>, vector<64x256xf32>, vector<8x256xf32> -> vector<8x256xf32>
    %382 = arith.addf %380, %381 : vector<8x256xf32>
    %383 = arith.negf %382 : vector<8x256xf32>
    %384 = math.exp %383 : vector<8x256xf32>
    %cst_186 = arith.constant 1.000000e+00 : f32
    %385 = vector.broadcast %cst_186 : f32 to vector<8x256xf32>
    %386 = arith.addf %385, %384 : vector<8x256xf32>
    %387 = arith.divf %385, %386 : vector<8x256xf32>
    %cst_187 = arith.constant 2.000000e+00 : f32
    %388 = vector.broadcast %cst_187 : f32 to vector<8x256xf32>
    %389 = arith.mulf %388, %387 : vector<8x256xf32>
    %cst_188 = arith.constant 1.000000e+00 : f32
    %390 = vector.broadcast %cst_188 : f32 to vector<8x256xf32>
    %391 = arith.subf %389, %390 : vector<8x256xf32>
    %392 = arith.select %47, %391, %387 : vector<8x256xi1>, vector<8x256xf32>
    %393 = vector.extract_strided_slice %392 {offsets = [0, 0], sizes = [8, 64], strides = [1, 1]} : vector<8x256xf32> to vector<8x64xf32>
    %394 = vector.extract_strided_slice %392 {offsets = [0, 64], sizes = [8, 64], strides = [1, 1]} : vector<8x256xf32> to vector<8x64xf32>
    %395 = vector.extract_strided_slice %392 {offsets = [0, 128], sizes = [8, 64], strides = [1, 1]} : vector<8x256xf32> to vector<8x64xf32>
    %396 = vector.extract_strided_slice %392 {offsets = [0, 192], sizes = [8, 64], strides = [1, 1]} : vector<8x256xf32> to vector<8x64xf32>
    %397 = arith.mulf %394, %372 : vector<8x64xf32>
    %398 = arith.mulf %393, %395 : vector<8x64xf32>
    %399 = arith.addf %397, %398 : vector<8x64xf32>
    %400 = math.tanh %399 : vector<8x64xf32>
    %401 = arith.mulf %396, %400 : vector<8x64xf32>
    %c0_189 = arith.constant 0 : index
    %402 = arith.index_cast %c0_i32_179 : i32 to index
    %c0_190 = arith.constant 0 : index
    %c0_191 = arith.constant 0 : index
    %403 = vector.load %arg19[%c0_189, %402, %c0_190, %c0_191] : memref<2x8x8x64xf32, #tpu.memory_space<vmem>>, vector<1x1x8x64xf32>
    %404 = vector.shape_cast %403 : vector<1x1x8x64xf32> to vector<8x64xf32>
    %405 = vector.shape_cast %401 : vector<8x64xf32> to vector<1x1x8x64xf32>
    tpu.vector_store %arg19[%c0_189, %402, %c0_190, %c0_191], %405 {strides = array<i32>} : memref<2x8x8x64xf32, #tpu.memory_space<vmem>>, vector<1x1x8x64xf32>,
    %c1_192 = arith.constant 1 : index
    %406 = arith.index_cast %373 : i32 to index
    %c0_193 = arith.constant 0 : index
    %c0_194 = arith.constant 0 : index
    %407 = vector.load %arg19[%c1_192, %406, %c0_193, %c0_194] : memref<2x8x8x64xf32, #tpu.memory_space<vmem>>, vector<1x1x8x64xf32>
    %408 = vector.shape_cast %407 : vector<1x1x8x64xf32> to vector<8x64xf32>
    %409 = vector.shape_cast %401 : vector<8x64xf32> to vector<1x1x8x64xf32>
    tpu.vector_store %arg19[%c1_192, %406, %c0_193, %c0_194], %409 {strides = array<i32>} : memref<2x8x8x64xf32, #tpu.memory_space<vmem>>, vector<1x1x8x64xf32>,
    %c1_i32_195 = arith.constant 1 : i32
    %c7_i32_196 = arith.constant 7 : i32
    %410 = arith.subi %c7_i32_196, %c1_i32_195 : i32
    %411 = arith.index_cast %c1_i32_195 : i32 to index
    %c0_197 = arith.constant 0 : index
    %c0_198 = arith.constant 0 : index
    %412 = vector.load %arg18[%411, %c0_197, %c0_198] : memref<8x8x256xf32, #tpu.memory_space<vmem>>, vector<1x8x256xf32>
    %413 = vector.shape_cast %412 : vector<1x8x256xf32> to vector<8x256xf32>
    %414 = arith.index_cast %410 : i32 to index
    %c0_199 = arith.constant 0 : index
    %c0_200 = arith.constant 0 : index
    %415 = vector.load %arg18[%414, %c0_199, %c0_200] : memref<8x8x256xf32, #tpu.memory_space<vmem>>, vector<1x8x256xf32>
    %416 = vector.shape_cast %415 : vector<1x8x256xf32> to vector<8x256xf32>
    %417 = arith.select %42, %413, %416 : vector<8x256xi1>, vector<8x256xf32>
    %cst_201 = arith.constant dense<0.000000e+00> : vector<8x256xf32>
    %418 = tpu.matmul %401, %371, %cst_201 {dimension_numbers = #tpu.dot_dimension_numbers<[1], [0], [0], [1], [0, 0, 1, 1], [], []>} : vector<8x64xf32>, vector<64x256xf32>, vector<8x256xf32> -> vector<8x256xf32>
    %419 = arith.addf %417, %418 : vector<8x256xf32>
    %420 = arith.negf %419 : vector<8x256xf32>
    %421 = math.exp %420 : vector<8x256xf32>
    %cst_202 = arith.constant 1.000000e+00 : f32
    %422 = vector.broadcast %cst_202 : f32 to vector<8x256xf32>
    %423 = arith.addf %422, %421 : vector<8x256xf32>
    %424 = arith.divf %422, %423 : vector<8x256xf32>
    %cst_203 = arith.constant 2.000000e+00 : f32
    %425 = vector.broadcast %cst_203 : f32 to vector<8x256xf32>
    %426 = arith.mulf %425, %424 : vector<8x256xf32>
    %cst_204 = arith.constant 1.000000e+00 : f32
    %427 = vector.broadcast %cst_204 : f32 to vector<8x256xf32>
    %428 = arith.subf %426, %427 : vector<8x256xf32>
    %429 = arith.select %47, %428, %424 : vector<8x256xi1>, vector<8x256xf32>
    %430 = vector.extract_strided_slice %429 {offsets = [0, 0], sizes = [8, 64], strides = [1, 1]} : vector<8x256xf32> to vector<8x64xf32>
    %431 = vector.extract_strided_slice %429 {offsets = [0, 64], sizes = [8, 64], strides = [1, 1]} : vector<8x256xf32> to vector<8x64xf32>
    %432 = vector.extract_strided_slice %429 {offsets = [0, 128], sizes = [8, 64], strides = [1, 1]} : vector<8x256xf32> to vector<8x64xf32>
    %433 = vector.extract_strided_slice %429 {offsets = [0, 192], sizes = [8, 64], strides = [1, 1]} : vector<8x256xf32> to vector<8x64xf32>
    %434 = arith.mulf %431, %399 : vector<8x64xf32>
    %435 = arith.mulf %430, %432 : vector<8x64xf32>
    %436 = arith.addf %434, %435 : vector<8x64xf32>
    %437 = math.tanh %436 : vector<8x64xf32>
    %438 = arith.mulf %433, %437 : vector<8x64xf32>
    %c0_205 = arith.constant 0 : index
    %439 = arith.index_cast %c1_i32_195 : i32 to index
    %c0_206 = arith.constant 0 : index
    %c0_207 = arith.constant 0 : index
    %440 = vector.load %arg19[%c0_205, %439, %c0_206, %c0_207] : memref<2x8x8x64xf32, #tpu.memory_space<vmem>>, vector<1x1x8x64xf32>
    %441 = vector.shape_cast %440 : vector<1x1x8x64xf32> to vector<8x64xf32>
    %442 = vector.shape_cast %438 : vector<8x64xf32> to vector<1x1x8x64xf32>
    tpu.vector_store %arg19[%c0_205, %439, %c0_206, %c0_207], %442 {strides = array<i32>} : memref<2x8x8x64xf32, #tpu.memory_space<vmem>>, vector<1x1x8x64xf32>,
    %c1_208 = arith.constant 1 : index
    %443 = arith.index_cast %410 : i32 to index
    %c0_209 = arith.constant 0 : index
    %c0_210 = arith.constant 0 : index
    %444 = vector.load %arg19[%c1_208, %443, %c0_209, %c0_210] : memref<2x8x8x64xf32, #tpu.memory_space<vmem>>, vector<1x1x8x64xf32>
    %445 = vector.shape_cast %444 : vector<1x1x8x64xf32> to vector<8x64xf32>
    %446 = vector.shape_cast %438 : vector<8x64xf32> to vector<1x1x8x64xf32>
    tpu.vector_store %arg19[%c1_208, %443, %c0_209, %c0_210], %446 {strides = array<i32>} : memref<2x8x8x64xf32, #tpu.memory_space<vmem>>, vector<1x1x8x64xf32>,
    %c2_i32_211 = arith.constant 2 : i32
    %c7_i32_212 = arith.constant 7 : i32
    %447 = arith.subi %c7_i32_212, %c2_i32_211 : i32
    %448 = arith.index_cast %c2_i32_211 : i32 to index
    %c0_213 = arith.constant 0 : index
    %c0_214 = arith.constant 0 : index
    %449 = vector.load %arg18[%448, %c0_213, %c0_214] : memref<8x8x256xf32, #tpu.memory_space<vmem>>, vector<1x8x256xf32>
    %450 = vector.shape_cast %449 : vector<1x8x256xf32> to vector<8x256xf32>
    %451 = arith.index_cast %447 : i32 to index
    %c0_215 = arith.constant 0 : index
    %c0_216 = arith.constant 0 : index
    %452 = vector.load %arg18[%451, %c0_215, %c0_216] : memref<8x8x256xf32, #tpu.memory_space<vmem>>, vector<1x8x256xf32>
    %453 = vector.shape_cast %452 : vector<1x8x256xf32> to vector<8x256xf32>
    %454 = arith.select %42, %450, %453 : vector<8x256xi1>, vector<8x256xf32>
    %cst_217 = arith.constant dense<0.000000e+00> : vector<8x256xf32>
    %455 = tpu.matmul %438, %371, %cst_217 {dimension_numbers = #tpu.dot_dimension_numbers<[1], [0], [0], [1], [0, 0, 1, 1], [], []>} : vector<8x64xf32>, vector<64x256xf32>, vector<8x256xf32> -> vector<8x256xf32>
    %456 = arith.addf %454, %455 : vector<8x256xf32>
    %457 = arith.negf %456 : vector<8x256xf32>
    %458 = math.exp %457 : vector<8x256xf32>
    %cst_218 = arith.constant 1.000000e+00 : f32
    %459 = vector.broadcast %cst_218 : f32 to vector<8x256xf32>
    %460 = arith.addf %459, %458 : vector<8x256xf32>
    %461 = arith.divf %459, %460 : vector<8x256xf32>
    %cst_219 = arith.constant 2.000000e+00 : f32
    %462 = vector.broadcast %cst_219 : f32 to vector<8x256xf32>
    %463 = arith.mulf %462, %461 : vector<8x256xf32>
    %cst_220 = arith.constant 1.000000e+00 : f32
    %464 = vector.broadcast %cst_220 : f32 to vector<8x256xf32>
    %465 = arith.subf %463, %464 : vector<8x256xf32>
    %466 = arith.select %47, %465, %461 : vector<8x256xi1>, vector<8x256xf32>
    %467 = vector.extract_strided_slice %466 {offsets = [0, 0], sizes = [8, 64], strides = [1, 1]} : vector<8x256xf32> to vector<8x64xf32>
    %468 = vector.extract_strided_slice %466 {offsets = [0, 64], sizes = [8, 64], strides = [1, 1]} : vector<8x256xf32> to vector<8x64xf32>
    %469 = vector.extract_strided_slice %466 {offsets = [0, 128], sizes = [8, 64], strides = [1, 1]} : vector<8x256xf32> to vector<8x64xf32>
    %470 = vector.extract_strided_slice %466 {offsets = [0, 192], sizes = [8, 64], strides = [1, 1]} : vector<8x256xf32> to vector<8x64xf32>
    %471 = arith.mulf %468, %436 : vector<8x64xf32>
    %472 = arith.mulf %467, %469 : vector<8x64xf32>
    %473 = arith.addf %471, %472 : vector<8x64xf32>
    %474 = math.tanh %473 : vector<8x64xf32>
    %475 = arith.mulf %470, %474 : vector<8x64xf32>
    %c0_221 = arith.constant 0 : index
    %476 = arith.index_cast %c2_i32_211 : i32 to index
    %c0_222 = arith.constant 0 : index
    %c0_223 = arith.constant 0 : index
    %477 = vector.load %arg19[%c0_221, %476, %c0_222, %c0_223] : memref<2x8x8x64xf32, #tpu.memory_space<vmem>>, vector<1x1x8x64xf32>
    %478 = vector.shape_cast %477 : vector<1x1x8x64xf32> to vector<8x64xf32>
    %479 = vector.shape_cast %475 : vector<8x64xf32> to vector<1x1x8x64xf32>
    tpu.vector_store %arg19[%c0_221, %476, %c0_222, %c0_223], %479 {strides = array<i32>} : memref<2x8x8x64xf32, #tpu.memory_space<vmem>>, vector<1x1x8x64xf32>,
    %c1_224 = arith.constant 1 : index
    %480 = arith.index_cast %447 : i32 to index
    %c0_225 = arith.constant 0 : index
    %c0_226 = arith.constant 0 : index
    %481 = vector.load %arg19[%c1_224, %480, %c0_225, %c0_226] : memref<2x8x8x64xf32, #tpu.memory_space<vmem>>, vector<1x1x8x64xf32>
    %482 = vector.shape_cast %481 : vector<1x1x8x64xf32> to vector<8x64xf32>
    %483 = vector.shape_cast %475 : vector<8x64xf32> to vector<1x1x8x64xf32>
    tpu.vector_store %arg19[%c1_224, %480, %c0_225, %c0_226], %483 {strides = array<i32>} : memref<2x8x8x64xf32, #tpu.memory_space<vmem>>, vector<1x1x8x64xf32>,
    %c3_i32_227 = arith.constant 3 : i32
    %c7_i32_228 = arith.constant 7 : i32
    %484 = arith.subi %c7_i32_228, %c3_i32_227 : i32
    %485 = arith.index_cast %c3_i32_227 : i32 to index
    %c0_229 = arith.constant 0 : index
    %c0_230 = arith.constant 0 : index
    %486 = vector.load %arg18[%485, %c0_229, %c0_230] : memref<8x8x256xf32, #tpu.memory_space<vmem>>, vector<1x8x256xf32>
    %487 = vector.shape_cast %486 : vector<1x8x256xf32> to vector<8x256xf32>
    %488 = arith.index_cast %484 : i32 to index
    %c0_231 = arith.constant 0 : index
    %c0_232 = arith.constant 0 : index
    %489 = vector.load %arg18[%488, %c0_231, %c0_232] : memref<8x8x256xf32, #tpu.memory_space<vmem>>, vector<1x8x256xf32>
    %490 = vector.shape_cast %489 : vector<1x8x256xf32> to vector<8x256xf32>
    %491 = arith.select %42, %487, %490 : vector<8x256xi1>, vector<8x256xf32>
    %cst_233 = arith.constant dense<0.000000e+00> : vector<8x256xf32>
    %492 = tpu.matmul %475, %371, %cst_233 {dimension_numbers = #tpu.dot_dimension_numbers<[1], [0], [0], [1], [0, 0, 1, 1], [], []>} : vector<8x64xf32>, vector<64x256xf32>, vector<8x256xf32> -> vector<8x256xf32>
    %493 = arith.addf %491, %492 : vector<8x256xf32>
    %494 = arith.negf %493 : vector<8x256xf32>
    %495 = math.exp %494 : vector<8x256xf32>
    %cst_234 = arith.constant 1.000000e+00 : f32
    %496 = vector.broadcast %cst_234 : f32 to vector<8x256xf32>
    %497 = arith.addf %496, %495 : vector<8x256xf32>
    %498 = arith.divf %496, %497 : vector<8x256xf32>
    %cst_235 = arith.constant 2.000000e+00 : f32
    %499 = vector.broadcast %cst_235 : f32 to vector<8x256xf32>
    %500 = arith.mulf %499, %498 : vector<8x256xf32>
    %cst_236 = arith.constant 1.000000e+00 : f32
    %501 = vector.broadcast %cst_236 : f32 to vector<8x256xf32>
    %502 = arith.subf %500, %501 : vector<8x256xf32>
    %503 = arith.select %47, %502, %498 : vector<8x256xi1>, vector<8x256xf32>
    %504 = vector.extract_strided_slice %503 {offsets = [0, 0], sizes = [8, 64], strides = [1, 1]} : vector<8x256xf32> to vector<8x64xf32>
    %505 = vector.extract_strided_slice %503 {offsets = [0, 64], sizes = [8, 64], strides = [1, 1]} : vector<8x256xf32> to vector<8x64xf32>
    %506 = vector.extract_strided_slice %503 {offsets = [0, 128], sizes = [8, 64], strides = [1, 1]} : vector<8x256xf32> to vector<8x64xf32>
    %507 = vector.extract_strided_slice %503 {offsets = [0, 192], sizes = [8, 64], strides = [1, 1]} : vector<8x256xf32> to vector<8x64xf32>
    %508 = arith.mulf %505, %473 : vector<8x64xf32>
    %509 = arith.mulf %504, %506 : vector<8x64xf32>
    %510 = arith.addf %508, %509 : vector<8x64xf32>
    %511 = math.tanh %510 : vector<8x64xf32>
    %512 = arith.mulf %507, %511 : vector<8x64xf32>
    %c0_237 = arith.constant 0 : index
    %513 = arith.index_cast %c3_i32_227 : i32 to index
    %c0_238 = arith.constant 0 : index
    %c0_239 = arith.constant 0 : index
    %514 = vector.load %arg19[%c0_237, %513, %c0_238, %c0_239] : memref<2x8x8x64xf32, #tpu.memory_space<vmem>>, vector<1x1x8x64xf32>
    %515 = vector.shape_cast %514 : vector<1x1x8x64xf32> to vector<8x64xf32>
    %516 = vector.shape_cast %512 : vector<8x64xf32> to vector<1x1x8x64xf32>
    tpu.vector_store %arg19[%c0_237, %513, %c0_238, %c0_239], %516 {strides = array<i32>} : memref<2x8x8x64xf32, #tpu.memory_space<vmem>>, vector<1x1x8x64xf32>,
    %c1_240 = arith.constant 1 : index
    %517 = arith.index_cast %484 : i32 to index
    %c0_241 = arith.constant 0 : index
    %c0_242 = arith.constant 0 : index
    %518 = vector.load %arg19[%c1_240, %517, %c0_241, %c0_242] : memref<2x8x8x64xf32, #tpu.memory_space<vmem>>, vector<1x1x8x64xf32>
    %519 = vector.shape_cast %518 : vector<1x1x8x64xf32> to vector<8x64xf32>
    %520 = vector.shape_cast %512 : vector<8x64xf32> to vector<1x1x8x64xf32>
    tpu.vector_store %arg19[%c1_240, %517, %c0_241, %c0_242], %520 {strides = array<i32>} : memref<2x8x8x64xf32, #tpu.memory_space<vmem>>, vector<1x1x8x64xf32>,
    %c4_i32_243 = arith.constant 4 : i32
    %c7_i32_244 = arith.constant 7 : i32
    %521 = arith.subi %c7_i32_244, %c4_i32_243 : i32
    %522 = arith.index_cast %c4_i32_243 : i32 to index
    %c0_245 = arith.constant 0 : index
    %c0_246 = arith.constant 0 : index
    %523 = vector.load %arg18[%522, %c0_245, %c0_246] : memref<8x8x256xf32, #tpu.memory_space<vmem>>, vector<1x8x256xf32>
    %524 = vector.shape_cast %523 : vector<1x8x256xf32> to vector<8x256xf32>
    %525 = arith.index_cast %521 : i32 to index
    %c0_247 = arith.constant 0 : index
    %c0_248 = arith.constant 0 : index
    %526 = vector.load %arg18[%525, %c0_247, %c0_248] : memref<8x8x256xf32, #tpu.memory_space<vmem>>, vector<1x8x256xf32>
    %527 = vector.shape_cast %526 : vector<1x8x256xf32> to vector<8x256xf32>
    %528 = arith.select %42, %524, %527 : vector<8x256xi1>, vector<8x256xf32>
    %cst_249 = arith.constant dense<0.000000e+00> : vector<8x256xf32>
    %529 = tpu.matmul %512, %371, %cst_249 {dimension_numbers = #tpu.dot_dimension_numbers<[1], [0], [0], [1], [0, 0, 1, 1], [], []>} : vector<8x64xf32>, vector<64x256xf32>, vector<8x256xf32> -> vector<8x256xf32>
    %530 = arith.addf %528, %529 : vector<8x256xf32>
    %531 = arith.negf %530 : vector<8x256xf32>
    %532 = math.exp %531 : vector<8x256xf32>
    %cst_250 = arith.constant 1.000000e+00 : f32
    %533 = vector.broadcast %cst_250 : f32 to vector<8x256xf32>
    %534 = arith.addf %533, %532 : vector<8x256xf32>
    %535 = arith.divf %533, %534 : vector<8x256xf32>
    %cst_251 = arith.constant 2.000000e+00 : f32
    %536 = vector.broadcast %cst_251 : f32 to vector<8x256xf32>
    %537 = arith.mulf %536, %535 : vector<8x256xf32>
    %cst_252 = arith.constant 1.000000e+00 : f32
    %538 = vector.broadcast %cst_252 : f32 to vector<8x256xf32>
    %539 = arith.subf %537, %538 : vector<8x256xf32>
    %540 = arith.select %47, %539, %535 : vector<8x256xi1>, vector<8x256xf32>
    %541 = vector.extract_strided_slice %540 {offsets = [0, 0], sizes = [8, 64], strides = [1, 1]} : vector<8x256xf32> to vector<8x64xf32>
    %542 = vector.extract_strided_slice %540 {offsets = [0, 64], sizes = [8, 64], strides = [1, 1]} : vector<8x256xf32> to vector<8x64xf32>
    %543 = vector.extract_strided_slice %540 {offsets = [0, 128], sizes = [8, 64], strides = [1, 1]} : vector<8x256xf32> to vector<8x64xf32>
    %544 = vector.extract_strided_slice %540 {offsets = [0, 192], sizes = [8, 64], strides = [1, 1]} : vector<8x256xf32> to vector<8x64xf32>
    %545 = arith.mulf %542, %510 : vector<8x64xf32>
    %546 = arith.mulf %541, %543 : vector<8x64xf32>
    %547 = arith.addf %545, %546 : vector<8x64xf32>
    %548 = math.tanh %547 : vector<8x64xf32>
    %549 = arith.mulf %544, %548 : vector<8x64xf32>
    %c0_253 = arith.constant 0 : index
    %550 = arith.index_cast %c4_i32_243 : i32 to index
    %c0_254 = arith.constant 0 : index
    %c0_255 = arith.constant 0 : index
    %551 = vector.load %arg19[%c0_253, %550, %c0_254, %c0_255] : memref<2x8x8x64xf32, #tpu.memory_space<vmem>>, vector<1x1x8x64xf32>
    %552 = vector.shape_cast %551 : vector<1x1x8x64xf32> to vector<8x64xf32>
    %553 = vector.shape_cast %549 : vector<8x64xf32> to vector<1x1x8x64xf32>
    tpu.vector_store %arg19[%c0_253, %550, %c0_254, %c0_255], %553 {strides = array<i32>} : memref<2x8x8x64xf32, #tpu.memory_space<vmem>>, vector<1x1x8x64xf32>,
    %c1_256 = arith.constant 1 : index
    %554 = arith.index_cast %521 : i32 to index
    %c0_257 = arith.constant 0 : index
    %c0_258 = arith.constant 0 : index
    %555 = vector.load %arg19[%c1_256, %554, %c0_257, %c0_258] : memref<2x8x8x64xf32, #tpu.memory_space<vmem>>, vector<1x1x8x64xf32>
    %556 = vector.shape_cast %555 : vector<1x1x8x64xf32> to vector<8x64xf32>
    %557 = vector.shape_cast %549 : vector<8x64xf32> to vector<1x1x8x64xf32>
    tpu.vector_store %arg19[%c1_256, %554, %c0_257, %c0_258], %557 {strides = array<i32>} : memref<2x8x8x64xf32, #tpu.memory_space<vmem>>, vector<1x1x8x64xf32>,
    %c5_i32_259 = arith.constant 5 : i32
    %c7_i32_260 = arith.constant 7 : i32
    %558 = arith.subi %c7_i32_260, %c5_i32_259 : i32
    %559 = arith.index_cast %c5_i32_259 : i32 to index
    %c0_261 = arith.constant 0 : index
    %c0_262 = arith.constant 0 : index
    %560 = vector.load %arg18[%559, %c0_261, %c0_262] : memref<8x8x256xf32, #tpu.memory_space<vmem>>, vector<1x8x256xf32>
    %561 = vector.shape_cast %560 : vector<1x8x256xf32> to vector<8x256xf32>
    %562 = arith.index_cast %558 : i32 to index
    %c0_263 = arith.constant 0 : index
    %c0_264 = arith.constant 0 : index
    %563 = vector.load %arg18[%562, %c0_263, %c0_264] : memref<8x8x256xf32, #tpu.memory_space<vmem>>, vector<1x8x256xf32>
    %564 = vector.shape_cast %563 : vector<1x8x256xf32> to vector<8x256xf32>
    %565 = arith.select %42, %561, %564 : vector<8x256xi1>, vector<8x256xf32>
    %cst_265 = arith.constant dense<0.000000e+00> : vector<8x256xf32>
    %566 = tpu.matmul %549, %371, %cst_265 {dimension_numbers = #tpu.dot_dimension_numbers<[1], [0], [0], [1], [0, 0, 1, 1], [], []>} : vector<8x64xf32>, vector<64x256xf32>, vector<8x256xf32> -> vector<8x256xf32>
    %567 = arith.addf %565, %566 : vector<8x256xf32>
    %568 = arith.negf %567 : vector<8x256xf32>
    %569 = math.exp %568 : vector<8x256xf32>
    %cst_266 = arith.constant 1.000000e+00 : f32
    %570 = vector.broadcast %cst_266 : f32 to vector<8x256xf32>
    %571 = arith.addf %570, %569 : vector<8x256xf32>
    %572 = arith.divf %570, %571 : vector<8x256xf32>
    %cst_267 = arith.constant 2.000000e+00 : f32
    %573 = vector.broadcast %cst_267 : f32 to vector<8x256xf32>
    %574 = arith.mulf %573, %572 : vector<8x256xf32>
    %cst_268 = arith.constant 1.000000e+00 : f32
    %575 = vector.broadcast %cst_268 : f32 to vector<8x256xf32>
    %576 = arith.subf %574, %575 : vector<8x256xf32>
    %577 = arith.select %47, %576, %572 : vector<8x256xi1>, vector<8x256xf32>
    %578 = vector.extract_strided_slice %577 {offsets = [0, 0], sizes = [8, 64], strides = [1, 1]} : vector<8x256xf32> to vector<8x64xf32>
    %579 = vector.extract_strided_slice %577 {offsets = [0, 64], sizes = [8, 64], strides = [1, 1]} : vector<8x256xf32> to vector<8x64xf32>
    %580 = vector.extract_strided_slice %577 {offsets = [0, 128], sizes = [8, 64], strides = [1, 1]} : vector<8x256xf32> to vector<8x64xf32>
    %581 = vector.extract_strided_slice %577 {offsets = [0, 192], sizes = [8, 64], strides = [1, 1]} : vector<8x256xf32> to vector<8x64xf32>
    %582 = arith.mulf %579, %547 : vector<8x64xf32>
    %583 = arith.mulf %578, %580 : vector<8x64xf32>
    %584 = arith.addf %582, %583 : vector<8x64xf32>
    %585 = math.tanh %584 : vector<8x64xf32>
    %586 = arith.mulf %581, %585 : vector<8x64xf32>
    %c0_269 = arith.constant 0 : index
    %587 = arith.index_cast %c5_i32_259 : i32 to index
    %c0_270 = arith.constant 0 : index
    %c0_271 = arith.constant 0 : index
    %588 = vector.load %arg19[%c0_269, %587, %c0_270, %c0_271] : memref<2x8x8x64xf32, #tpu.memory_space<vmem>>, vector<1x1x8x64xf32>
    %589 = vector.shape_cast %588 : vector<1x1x8x64xf32> to vector<8x64xf32>
    %590 = vector.shape_cast %586 : vector<8x64xf32> to vector<1x1x8x64xf32>
    tpu.vector_store %arg19[%c0_269, %587, %c0_270, %c0_271], %590 {strides = array<i32>} : memref<2x8x8x64xf32, #tpu.memory_space<vmem>>, vector<1x1x8x64xf32>,
    %c1_272 = arith.constant 1 : index
    %591 = arith.index_cast %558 : i32 to index
    %c0_273 = arith.constant 0 : index
    %c0_274 = arith.constant 0 : index
    %592 = vector.load %arg19[%c1_272, %591, %c0_273, %c0_274] : memref<2x8x8x64xf32, #tpu.memory_space<vmem>>, vector<1x1x8x64xf32>
    %593 = vector.shape_cast %592 : vector<1x1x8x64xf32> to vector<8x64xf32>
    %594 = vector.shape_cast %586 : vector<8x64xf32> to vector<1x1x8x64xf32>
    tpu.vector_store %arg19[%c1_272, %591, %c0_273, %c0_274], %594 {strides = array<i32>} : memref<2x8x8x64xf32, #tpu.memory_space<vmem>>, vector<1x1x8x64xf32>,
    %c6_i32_275 = arith.constant 6 : i32
    %c7_i32_276 = arith.constant 7 : i32
    %595 = arith.subi %c7_i32_276, %c6_i32_275 : i32
    %596 = arith.index_cast %c6_i32_275 : i32 to index
    %c0_277 = arith.constant 0 : index
    %c0_278 = arith.constant 0 : index
    %597 = vector.load %arg18[%596, %c0_277, %c0_278] : memref<8x8x256xf32, #tpu.memory_space<vmem>>, vector<1x8x256xf32>
    %598 = vector.shape_cast %597 : vector<1x8x256xf32> to vector<8x256xf32>
    %599 = arith.index_cast %595 : i32 to index
    %c0_279 = arith.constant 0 : index
    %c0_280 = arith.constant 0 : index
    %600 = vector.load %arg18[%599, %c0_279, %c0_280] : memref<8x8x256xf32, #tpu.memory_space<vmem>>, vector<1x8x256xf32>
    %601 = vector.shape_cast %600 : vector<1x8x256xf32> to vector<8x256xf32>
    %602 = arith.select %42, %598, %601 : vector<8x256xi1>, vector<8x256xf32>
    %cst_281 = arith.constant dense<0.000000e+00> : vector<8x256xf32>
    %603 = tpu.matmul %586, %371, %cst_281 {dimension_numbers = #tpu.dot_dimension_numbers<[1], [0], [0], [1], [0, 0, 1, 1], [], []>} : vector<8x64xf32>, vector<64x256xf32>, vector<8x256xf32> -> vector<8x256xf32>
    %604 = arith.addf %602, %603 : vector<8x256xf32>
    %605 = arith.negf %604 : vector<8x256xf32>
    %606 = math.exp %605 : vector<8x256xf32>
    %cst_282 = arith.constant 1.000000e+00 : f32
    %607 = vector.broadcast %cst_282 : f32 to vector<8x256xf32>
    %608 = arith.addf %607, %606 : vector<8x256xf32>
    %609 = arith.divf %607, %608 : vector<8x256xf32>
    %cst_283 = arith.constant 2.000000e+00 : f32
    %610 = vector.broadcast %cst_283 : f32 to vector<8x256xf32>
    %611 = arith.mulf %610, %609 : vector<8x256xf32>
    %cst_284 = arith.constant 1.000000e+00 : f32
    %612 = vector.broadcast %cst_284 : f32 to vector<8x256xf32>
    %613 = arith.subf %611, %612 : vector<8x256xf32>
    %614 = arith.select %47, %613, %609 : vector<8x256xi1>, vector<8x256xf32>
    %615 = vector.extract_strided_slice %614 {offsets = [0, 0], sizes = [8, 64], strides = [1, 1]} : vector<8x256xf32> to vector<8x64xf32>
    %616 = vector.extract_strided_slice %614 {offsets = [0, 64], sizes = [8, 64], strides = [1, 1]} : vector<8x256xf32> to vector<8x64xf32>
    %617 = vector.extract_strided_slice %614 {offsets = [0, 128], sizes = [8, 64], strides = [1, 1]} : vector<8x256xf32> to vector<8x64xf32>
    %618 = vector.extract_strided_slice %614 {offsets = [0, 192], sizes = [8, 64], strides = [1, 1]} : vector<8x256xf32> to vector<8x64xf32>
    %619 = arith.mulf %616, %584 : vector<8x64xf32>
    %620 = arith.mulf %615, %617 : vector<8x64xf32>
    %621 = arith.addf %619, %620 : vector<8x64xf32>
    %622 = math.tanh %621 : vector<8x64xf32>
    %623 = arith.mulf %618, %622 : vector<8x64xf32>
    %c0_285 = arith.constant 0 : index
    %624 = arith.index_cast %c6_i32_275 : i32 to index
    %c0_286 = arith.constant 0 : index
    %c0_287 = arith.constant 0 : index
    %625 = vector.load %arg19[%c0_285, %624, %c0_286, %c0_287] : memref<2x8x8x64xf32, #tpu.memory_space<vmem>>, vector<1x1x8x64xf32>
    %626 = vector.shape_cast %625 : vector<1x1x8x64xf32> to vector<8x64xf32>
    %627 = vector.shape_cast %623 : vector<8x64xf32> to vector<1x1x8x64xf32>
    tpu.vector_store %arg19[%c0_285, %624, %c0_286, %c0_287], %627 {strides = array<i32>} : memref<2x8x8x64xf32, #tpu.memory_space<vmem>>, vector<1x1x8x64xf32>,
    %c1_288 = arith.constant 1 : index
    %628 = arith.index_cast %595 : i32 to index
    %c0_289 = arith.constant 0 : index
    %c0_290 = arith.constant 0 : index
    %629 = vector.load %arg19[%c1_288, %628, %c0_289, %c0_290] : memref<2x8x8x64xf32, #tpu.memory_space<vmem>>, vector<1x1x8x64xf32>
    %630 = vector.shape_cast %629 : vector<1x1x8x64xf32> to vector<8x64xf32>
    %631 = vector.shape_cast %623 : vector<8x64xf32> to vector<1x1x8x64xf32>
    tpu.vector_store %arg19[%c1_288, %628, %c0_289, %c0_290], %631 {strides = array<i32>} : memref<2x8x8x64xf32, #tpu.memory_space<vmem>>, vector<1x1x8x64xf32>,
    %c7_i32_291 = arith.constant 7 : i32
    %c7_i32_292 = arith.constant 7 : i32
    %632 = arith.subi %c7_i32_292, %c7_i32_291 : i32
    %633 = arith.index_cast %c7_i32_291 : i32 to index
    %c0_293 = arith.constant 0 : index
    %c0_294 = arith.constant 0 : index
    %634 = vector.load %arg18[%633, %c0_293, %c0_294] : memref<8x8x256xf32, #tpu.memory_space<vmem>>, vector<1x8x256xf32>
    %635 = vector.shape_cast %634 : vector<1x8x256xf32> to vector<8x256xf32>
    %636 = arith.index_cast %632 : i32 to index
    %c0_295 = arith.constant 0 : index
    %c0_296 = arith.constant 0 : index
    %637 = vector.load %arg18[%636, %c0_295, %c0_296] : memref<8x8x256xf32, #tpu.memory_space<vmem>>, vector<1x8x256xf32>
    %638 = vector.shape_cast %637 : vector<1x8x256xf32> to vector<8x256xf32>
    %639 = arith.select %42, %635, %638 : vector<8x256xi1>, vector<8x256xf32>
    %cst_297 = arith.constant dense<0.000000e+00> : vector<8x256xf32>
    %640 = tpu.matmul %623, %371, %cst_297 {dimension_numbers = #tpu.dot_dimension_numbers<[1], [0], [0], [1], [0, 0, 1, 1], [], []>} : vector<8x64xf32>, vector<64x256xf32>, vector<8x256xf32> -> vector<8x256xf32>
    %641 = arith.addf %639, %640 : vector<8x256xf32>
    %642 = arith.negf %641 : vector<8x256xf32>
    %643 = math.exp %642 : vector<8x256xf32>
    %cst_298 = arith.constant 1.000000e+00 : f32
    %644 = vector.broadcast %cst_298 : f32 to vector<8x256xf32>
    %645 = arith.addf %644, %643 : vector<8x256xf32>
    %646 = arith.divf %644, %645 : vector<8x256xf32>
    %cst_299 = arith.constant 2.000000e+00 : f32
    %647 = vector.broadcast %cst_299 : f32 to vector<8x256xf32>
    %648 = arith.mulf %647, %646 : vector<8x256xf32>
    %cst_300 = arith.constant 1.000000e+00 : f32
    %649 = vector.broadcast %cst_300 : f32 to vector<8x256xf32>
    %650 = arith.subf %648, %649 : vector<8x256xf32>
    %651 = arith.select %47, %650, %646 : vector<8x256xi1>, vector<8x256xf32>
    %652 = vector.extract_strided_slice %651 {offsets = [0, 0], sizes = [8, 64], strides = [1, 1]} : vector<8x256xf32> to vector<8x64xf32>
    %653 = vector.extract_strided_slice %651 {offsets = [0, 64], sizes = [8, 64], strides = [1, 1]} : vector<8x256xf32> to vector<8x64xf32>
    %654 = vector.extract_strided_slice %651 {offsets = [0, 128], sizes = [8, 64], strides = [1, 1]} : vector<8x256xf32> to vector<8x64xf32>
    %655 = vector.extract_strided_slice %651 {offsets = [0, 192], sizes = [8, 64], strides = [1, 1]} : vector<8x256xf32> to vector<8x64xf32>
    %656 = arith.mulf %653, %621 : vector<8x64xf32>
    %657 = arith.mulf %652, %654 : vector<8x64xf32>
    %658 = arith.addf %656, %657 : vector<8x64xf32>
    %659 = math.tanh %658 : vector<8x64xf32>
    %660 = arith.mulf %655, %659 : vector<8x64xf32>
    %c0_301 = arith.constant 0 : index
    %661 = arith.index_cast %c7_i32_291 : i32 to index
    %c0_302 = arith.constant 0 : index
    %c0_303 = arith.constant 0 : index
    %662 = vector.load %arg19[%c0_301, %661, %c0_302, %c0_303] : memref<2x8x8x64xf32, #tpu.memory_space<vmem>>, vector<1x1x8x64xf32>
    %663 = vector.shape_cast %662 : vector<1x1x8x64xf32> to vector<8x64xf32>
    %664 = vector.shape_cast %660 : vector<8x64xf32> to vector<1x1x8x64xf32>
    tpu.vector_store %arg19[%c0_301, %661, %c0_302, %c0_303], %664 {strides = array<i32>} : memref<2x8x8x64xf32, #tpu.memory_space<vmem>>, vector<1x1x8x64xf32>,
    %c1_304 = arith.constant 1 : index
    %665 = arith.index_cast %632 : i32 to index
    %c0_305 = arith.constant 0 : index
    %c0_306 = arith.constant 0 : index
    %666 = vector.load %arg19[%c1_304, %665, %c0_305, %c0_306] : memref<2x8x8x64xf32, #tpu.memory_space<vmem>>, vector<1x1x8x64xf32>
    %667 = vector.shape_cast %666 : vector<1x1x8x64xf32> to vector<8x64xf32>
    %668 = vector.shape_cast %660 : vector<8x64xf32> to vector<1x1x8x64xf32>
    tpu.vector_store %arg19[%c1_304, %665, %c0_305, %c0_306], %668 {strides = array<i32>} : memref<2x8x8x64xf32, #tpu.memory_space<vmem>>, vector<1x1x8x64xf32>,
    %c8_i32_307 = arith.constant 8 : i32
    %c0_308 = arith.constant 0 : index
    %c0_309 = arith.constant 0 : index
    %c0_310 = arith.constant 0 : index
    %c0_311 = arith.constant 0 : index
    %669 = vector.load %arg19[%c0_308, %c0_309, %c0_310, %c0_311] : memref<2x8x8x64xf32, #tpu.memory_space<vmem>>, vector<1x8x8x64xf32>
    %670 = vector.shape_cast %669 : vector<1x8x8x64xf32> to vector<8x8x64xf32>
    %671 = vector.shape_cast %670 : vector<8x8x64xf32> to vector<64x64xf32>
    %c1_312 = arith.constant 1 : index
    %c0_313 = arith.constant 0 : index
    %c0_314 = arith.constant 0 : index
    %c0_315 = arith.constant 0 : index
    %672 = vector.load %arg19[%c1_312, %c0_313, %c0_314, %c0_315] : memref<2x8x8x64xf32, #tpu.memory_space<vmem>>, vector<1x8x8x64xf32>
    %673 = vector.shape_cast %672 : vector<1x8x8x64xf32> to vector<8x8x64xf32>
    %674 = vector.shape_cast %673 : vector<8x8x64xf32> to vector<64x64xf32>
    %c0_316 = arith.constant 0 : index
    %c0_317 = arith.constant 0 : index
    %675 = vector.load %arg14[%c0_316, %c0_317] : memref<64x128xf32, #tpu.memory_space<vmem>>, vector<64x128xf32>
    %cst_318 = arith.constant dense<0.000000e+00> : vector<64x128xf32>
    %676 = tpu.matmul %671, %675, %cst_318 {dimension_numbers = #tpu.dot_dimension_numbers<[1], [0], [0], [1], [0, 0, 1, 1], [], []>} : vector<64x64xf32>, vector<64x128xf32>, vector<64x128xf32> -> vector<64x128xf32>
    %c0_319 = arith.constant 0 : index
    %c0_320 = arith.constant 0 : index
    %677 = vector.load %arg15[%c0_319, %c0_320] : memref<64x128xf32, #tpu.memory_space<vmem>>, vector<64x128xf32>
    %cst_321 = arith.constant dense<0.000000e+00> : vector<64x128xf32>
    %678 = tpu.matmul %674, %677, %cst_321 {dimension_numbers = #tpu.dot_dimension_numbers<[1], [0], [0], [1], [0, 0, 1, 1], [], []>} : vector<64x64xf32>, vector<64x128xf32>, vector<64x128xf32> -> vector<64x128xf32>
    %679 = arith.addf %676, %678 : vector<64x128xf32>
    %c0_322 = arith.constant 0 : index
    %c0_323 = arith.constant 0 : index
    %680 = vector.load %arg16[%c0_322, %c0_323] : memref<1x128xf32, #tpu.memory_space<vmem>>, vector<1x128xf32>
    %681 = vector.broadcast %680 : vector<1x128xf32> to vector<64x128xf32>
    %682 = arith.addf %679, %681 : vector<64x128xf32>
    %683 = vector.shape_cast %682 : vector<64x128xf32> to vector<8x8x128xf32>
    %c0_324 = arith.constant 0 : index
    %c0_325 = arith.constant 0 : index
    %c0_326 = arith.constant 0 : index
    %684 = vector.load %arg17[%c0_324, %c0_325, %c0_326] : memref<8x8x128xf32, #tpu.memory_space<vmem>>, vector<8x8x128xf32>
    tpu.vector_store %arg17[%c0_324, %c0_325, %c0_326], %683 {strides = array<i32>} : memref<8x8x128xf32, #tpu.memory_space<vmem>>, vector<8x8x128xf32>,
    return
  }
  func.func @transform_0(%arg0: i32) -> (i32, i32, i32) {
    %c0_i32 = arith.constant 0 : i32
    %c0_i32_0 = arith.constant 0 : i32
    %c0_i32_1 = arith.constant 0 : i32
    return %c0_i32, %arg0, %c0_i32_0 : i32, i32, i32
  }
  func.func @transform_1(%arg0: i32) -> (i32, i32) {
    %c0_i32 = arith.constant 0 : i32
    %c0_i32_0 = arith.constant 0 : i32
    return %arg0, %c0_i32 : i32, i32
  }
  func.func @transform_2(%arg0: i32) -> (i32, i32) {
    %c0_i32 = arith.constant 0 : i32
    %c0_i32_0 = arith.constant 0 : i32
    %c0_i32_1 = arith.constant 0 : i32
    return %c0_i32, %c0_i32_0 : i32, i32
  }
  func.func @transform_3(%arg0: i32) -> (i32, i32) {
    %c0_i32 = arith.constant 0 : i32
    %c0_i32_0 = arith.constant 0 : i32
    %c0_i32_1 = arith.constant 0 : i32
    return %c0_i32, %c0_i32_0 : i32, i32
  }
  func.func @transform_4(%arg0: i32) -> (i32, i32) {
    %c0_i32 = arith.constant 0 : i32
    %c0_i32_0 = arith.constant 0 : i32
    %c0_i32_1 = arith.constant 0 : i32
    return %c0_i32, %c0_i32_0 : i32, i32
  }
  func.func @transform_5(%arg0: i32) -> (i32, i32) {
    %c0_i32 = arith.constant 0 : i32
    %c0_i32_0 = arith.constant 0 : i32
    %c0_i32_1 = arith.constant 0 : i32
    return %c0_i32, %c0_i32_0 : i32, i32
  }
  func.func @transform_6(%arg0: i32) -> (i32, i32) {
    %c0_i32 = arith.constant 0 : i32
    %c0_i32_0 = arith.constant 0 : i32
    %c0_i32_1 = arith.constant 0 : i32
    return %c0_i32, %c0_i32_0 : i32, i32
  }
  func.func @transform_7(%arg0: i32) -> (i32, i32) {
    %c0_i32 = arith.constant 0 : i32
    %c0_i32_0 = arith.constant 0 : i32
    %c0_i32_1 = arith.constant 0 : i32
    return %c0_i32, %c0_i32_0 : i32, i32
  }
  func.func @transform_8(%arg0: i32) -> (i32, i32) {
    %c0_i32 = arith.constant 0 : i32
    %c0_i32_0 = arith.constant 0 : i32
    %c0_i32_1 = arith.constant 0 : i32
    return %c0_i32, %c0_i32_0 : i32, i32
  }
  func.func @transform_9(%arg0: i32) -> (i32, i32) {
    %c0_i32 = arith.constant 0 : i32
    %c0_i32_0 = arith.constant 0 : i32
    %c0_i32_1 = arith.constant 0 : i32
    return %c0_i32, %c0_i32_0 : i32, i32
  }
  func.func @transform_10(%arg0: i32) -> (i32, i32) {
    %c0_i32 = arith.constant 0 : i32
    %c0_i32_0 = arith.constant 0 : i32
    %c0_i32_1 = arith.constant 0 : i32
    return %c0_i32, %c0_i32_0 : i32, i32
  }
  func.func @transform_11(%arg0: i32) -> (i32, i32) {
    %c0_i32 = arith.constant 0 : i32
    %c0_i32_0 = arith.constant 0 : i32
    %c0_i32_1 = arith.constant 0 : i32
    return %c0_i32, %c0_i32_0 : i32, i32
  }
  func.func @transform_12(%arg0: i32) -> (i32, i32) {
    %c0_i32 = arith.constant 0 : i32
    %c0_i32_0 = arith.constant 0 : i32
    %c0_i32_1 = arith.constant 0 : i32
    return %c0_i32, %c0_i32_0 : i32, i32
  }
  func.func @transform_13(%arg0: i32) -> (i32, i32) {
    %c0_i32 = arith.constant 0 : i32
    %c0_i32_0 = arith.constant 0 : i32
    %c0_i32_1 = arith.constant 0 : i32
    return %c0_i32, %c0_i32_0 : i32, i32
  }
  func.func @transform_14(%arg0: i32) -> (i32, i32) {
    %c0_i32 = arith.constant 0 : i32
    %c0_i32_0 = arith.constant 0 : i32
    %c0_i32_1 = arith.constant 0 : i32
    return %c0_i32, %c0_i32_0 : i32, i32
  }
  func.func @transform_15(%arg0: i32) -> (i32, i32) {
    %c0_i32 = arith.constant 0 : i32
    %c0_i32_0 = arith.constant 0 : i32
    %c0_i32_1 = arith.constant 0 : i32
    return %c0_i32, %c0_i32_0 : i32, i32
  }
  func.func @transform_16(%arg0: i32) -> (i32, i32, i32) {
    %c0_i32 = arith.constant 0 : i32
    %c0_i32_0 = arith.constant 0 : i32
    %c0_i32_1 = arith.constant 0 : i32
    return %c0_i32, %arg0, %c0_i32_0 : i32, i32, i32
  }
}

</mosaic_0001>

<bundles_post_ra>
// kernel: tpu_custom_call.1
= control target key start
LH: loop header
LB: loop body
LE: loop exit
PB: predicated region body
PF: predicated region fallthrough
CT: control target
= control target key end

     0   :  { %s4812_s0 = inlined_call_operand.hbm [shape: f32[8,8,16], index: 0, kind: input, shape index: {}]   ;;  %s4813_s1 = inlined_call_operand.hbm [shape: f32[8,8], index: 1, kind: input, shape index: {}]   ;;  %s4814_s2 = inlined_call_operand.hbm [shape: f32[8,16], index: 2, kind: input, shape index: {}]   ;;  %s4815_s3 = inlined_call_operand.hbm [shape: f32[1,16], index: 3, kind: input, shape index: {}]   ;;  %s4816_s4 = inlined_call_operand.hbm [shape: f32[8,64], index: 4, kind: input, shape index: {}]   ;;  %s4817_s5 = inlined_call_operand.hbm [shape: f32[1,64], index: 5, kind: input, shape index: {}]   ;;  %s4818_s6 = inlined_call_operand.hbm [shape: f32[16,256], index: 6, kind: input, shape index: {}]   ;;  %s4819_s7 = inlined_call_operand.vmem [shape: f32[1,256], index: 7, kind: input, shape index: {}]   ;;  %s4820_s8 = inlined_call_operand.hbm [shape: f32[64,256], index: 8, kind: input, shape index: {}]   ;;  %s4821_s9 = inlined_call_operand.hbm [shape: f32[64,256], index: 9, kind: input, shape index: {}]   ;;  %s4822_s10 = inlined_call_operand.hbm [shape: f32[64,256], index: 10, kind: input, shape index: {}]   ;;  %s4823_s11 = inlined_call_operand.vmem [shape: f32[1,256], index: 11, kind: input, shape index: {}]   ;;  %s4824_s12 = inlined_call_operand.hbm [shape: f32[64,256], index: 12, kind: input, shape index: {}]   ;;  %s4825_s13 = inlined_call_operand.hbm [shape: f32[64,128], index: 13, kind: input, shape index: {}]   ;;  %s4826_s14 = inlined_call_operand.hbm [shape: f32[64,128], index: 14, kind: input, shape index: {}]   ;;  %s4827_s15 = inlined_call_operand.vmem [shape: f32[1,128], index: 15, kind: input, shape index: {}]   ;;  %s4828_s16 = inlined_call_operand.hbm [shape: f32[8,8,128], index: 16, kind: output, shape index: {}]  }
   0x1   :  { %4831 = sst [smem:[#allocation34_spill]] %s4812_s0 }
   0x2   :  { %21 = vsyncpa [#allocation5], 0 }
   0x3   :  { %22 = vsyncpa [#allocation8], 0 }
   0x4   :  { %23 = vsyncpa [#allocation11], 0 }
   0x5   :  { %24 = vsyncpa [#allocation14], 0 }
   0x6   :  { %25 = vsyncpa [#allocation17], 0 }
   0x7   :  { %26 = vsyncpa [#allocation20], 0 }
   0x8   :  { %27 = vsyncpa [#allocation23], 0  ;;  %s47_s23 = sshll.u32 %s4813_s1, 4  ;;  %s48_s23 = int_to_ptr.hbm [resolvable:$true] %s47_s23 }
   0x9   :  { %28 = vsyncpa [#allocation6], 0  ;;  %s3659_s24 = smov [#allocation7]   ;;  %s69_s28 = sshll.u32 %s4815_s3, 4  ;;  %s70_s28 = int_to_ptr.hbm [resolvable:$true] %s69_s28 }
   0xa   :  { %s49_s25 = sshll.u32 %s3659_s24, 4  ;;  %s3660_s29 = smov [#allocation10]   ;;  %s50_s25 = int_to_ptr.vmem [resolvable:$true] %s49_s25 }
   0xb   :  { %52 = dma.hbm_to_vmem [thread:$0]  %s48_s23, 128, %s50_s25, [#allocation8]  }
   0xc   :  { %s71_s30 = sshll.u32 %s3660_s29, 4  ;;  %s91_s18 = sshll.u32 %s4817_s5, 4  ;;  %s72_s30 = int_to_ptr.vmem [resolvable:$true] %s71_s30  ;;  %s92_s18 = int_to_ptr.hbm [resolvable:$true] %s91_s18 }
   0xd   :  { %74 = dma.hbm_to_vmem [thread:$0]  %s70_s28, 16, %s72_s30, [#allocation11]  }
   0xe   :  { %s3661_s1 = smov [#allocation13]   ;;  %s116_s22 = sshll.u32 %s4820_s8, 4  ;;  %s117_s22 = int_to_ptr.hbm [resolvable:$true] %s116_s22 }
   0xf   :  { %s93_s19 = sshll.u32 %s3661_s1, 4  ;;  %s3662_s3 = smov [#allocation16]   ;;  %s94_s19 = int_to_ptr.vmem [resolvable:$true] %s93_s19 }
  0x10   :  { %96 = dma.hbm_to_vmem [thread:$0]  %s92_s18, 16, %s94_s19, [#allocation14]  }
  0x11   :  { %s118_s23 = sshll.u32 %s3662_s3, 4  ;;  %s142_s26 = sshll.u32 %s4822_s10, 4  ;;  %s119_s23 = int_to_ptr.vmem [resolvable:$true] %s118_s23  ;;  %s143_s26 = int_to_ptr.hbm [resolvable:$true] %s142_s26 }
  0x12   :  { %s3663_s5 = smov 256   ;;  %s3664_s27 = smov 16  }
  0x13   :  { %124 = dma.hbm_to_vmem [thread:$0]  %s117_s22, 2048, %s119_s23, [#allocation17], %s3663_s5, %s3663_s5, %s3664_s27  }
  0x14   :  { %s3665_s28 = smov [#allocation19]   ;;  %s170_s0 = sshll.u32 %s4825_s13, 4  ;;  %s171_s0 = int_to_ptr.hbm [resolvable:$true] %s170_s0 }
  0x15   :  { %s144_s29 = sshll.u32 %s3665_s28, 4  ;;  %s3666_s10 = smov [#allocation22]   ;;  %s145_s29 = int_to_ptr.vmem [resolvable:$true] %s144_s29 }
  0x16   :  { %150 = dma.hbm_to_vmem [thread:$0]  %s143_s26, 2048, %s145_s29, [#allocation20], %s3663_s5, %s3663_s5, %s3664_s27  }
  0x17   :  { %s172_s17 = sshll.u32 %s3666_s10, 4  ;;  %s4832_s19 = sld [smem:[#allocation34_spill]]  ;;  %s173_s17 = int_to_ptr.vmem [resolvable:$true] %s172_s17 }
  0x18   :  { %s3667_s21 = smov 128   ;;  %s3668_s22 = smov 8  }
  0x19   :  { %178 = dma.hbm_to_vmem [thread:$0]  %s171_s0, 1024, %s173_s17, [#allocation23], %s3667_s21, %s3667_s21, %s3668_s22  }
  0x1a   :  { %s58_s23 = sshll.u32 %s4814_s2, 4  ;;  %s3669_s24 = smov [#allocation4]   ;;  %s59_s23 = int_to_ptr.hbm [resolvable:$true] %s58_s23 }
  0x1b   :  { %s35_s25 = sshll.u32 %s3669_s24, 4  ;;  %s3670_s26 = smov [#allocation9]   ;;  %s36_s25 = int_to_ptr.vmem [resolvable:$true] %s35_s25 }
  0x1c   :  { %s60_s28 = sshll.u32 %s3670_s26, 4  ;;  %s80_s30 = sshll.u32 %s4816_s4, 4  ;;  %s61_s28 = int_to_ptr.vmem [resolvable:$true] %s60_s28  ;;  %s81_s30 = int_to_ptr.hbm [resolvable:$true] %s80_s30 }
  0x1d   :  { %s33_s20 = sshll.u32 %s4832_s19, 4  ;;  %s101_s2 = sshll.u32 %s4818_s6, 4  ;;  %s34_s20 = int_to_ptr.hbm [resolvable:$true] %s33_s20  ;;  %s102_s2 = int_to_ptr.hbm [resolvable:$true] %s101_s2 }
  0x1e   :  { %41 = dma.hbm_to_vmem [thread:$0]  %s34_s20, 1024, %s36_s25, [#allocation5], %s3667_s21, %s3667_s21, %s3668_s22  }
  0x1f   :  { %63 = dma.hbm_to_vmem [thread:$0]  %s59_s23, 128, %s61_s28, [#allocation8]  }
  0x20   :  { %s3671_s17 = smov [#allocation12]   ;;  %s3672_s1 = smov [#allocation15]  }
  0x21   :  { %s82_s18 = sshll.u32 %s3671_s17, 4  ;;  %s103_s19 = sshll.u32 %s3672_s1, 4  ;;  %s83_s18 = int_to_ptr.vmem [resolvable:$true] %s82_s18  ;;  %s104_s19 = int_to_ptr.vmem [resolvable:$true] %s103_s19 }
  0x22   :  { %85 = dma.hbm_to_vmem [thread:$0]  %s81_s30, 128, %s83_s18, [#allocation11]  }
  0x23   :  { %s129_s3 = sshll.u32 %s4821_s9, 4  ;;  %s157_s6 = sshll.u32 %s4824_s12, 4  ;;  %s130_s3 = int_to_ptr.hbm [resolvable:$true] %s129_s3  ;;  %s158_s6 = int_to_ptr.hbm [resolvable:$true] %s157_s6 }
  0x24   :  { %109 = dma.hbm_to_vmem [thread:$0]  %s102_s2, 512, %s104_s19, [#allocation14], %s3663_s5, %s3663_s5, %s3664_s27  }
  0x25   :  { %s3673_s24 = smov [#allocation18]   ;;  %s3674_s26 = smov [#allocation21]  }
  0x26   :  { %s131_s25 = sshll.u32 %s3673_s24, 4  ;;  %s159_s9 = sshll.u32 %s3674_s26, 4  ;;  %s132_s25 = int_to_ptr.vmem [resolvable:$true] %s131_s25  ;;  %s160_s9 = int_to_ptr.vmem [resolvable:$true] %s159_s9 }
  0x27   :  { %137 = dma.hbm_to_vmem [thread:$0]  %s130_s3, 2048, %s132_s25, [#allocation17], %s3663_s5, %s3663_s5, %s3664_s27  }
  0x28   :  { %s183_s8 = sshll.u32 %s4826_s14, 4  ;;  %s3675_s12 = smov [#allocation24]   ;;  %s184_s8 = int_to_ptr.hbm [resolvable:$true] %s183_s8 }
  0x29   :  { %165 = dma.hbm_to_vmem [thread:$0]  %s158_s6, 2048, %s160_s9, [#allocation20], %s3663_s5, %s3663_s5, %s3664_s27  }
  0x2a   :  { %s185_s30 = sshll.u32 %s3675_s12, 4  ;;  %s186_s30 = int_to_ptr.vmem [resolvable:$true] %s185_s30 }
  0x2b   :  { %191 = dma.hbm_to_vmem [thread:$0]  %s184_s8, 1024, %s186_s30, [#allocation23], %s3667_s21, %s3667_s21, %s3668_s22  }
  0x2c   :  { %3643 = dma.done.wait [#allocation5], 1024  }
  0x2d   :  { %3644 = vsyncadd [#allocation5], 4294966272 }
  0x2e   :  { %3645 = dma.done.wait [#allocation8], 256  }
  0x2f   :  { %3646 = vsyncadd [#allocation8], 4294967040 }
  0x30   :  { %3647 = dma.done.wait [#allocation11], 144  }
  0x31   :  { %3648 = vsyncadd [#allocation11], 4294967152 }
  0x32   :  { %3649 = dma.done.wait [#allocation14], 528  }
  0x33   :  { %3650 = vsyncadd [#allocation14], 4294966768 }
  0x34   :  { %3651 = dma.done.wait [#allocation17], 4096  }
  0x35   :  { %3652 = vsyncadd [#allocation17], 4294963200 }
  0x36   :  { %3653 = dma.done.wait [#allocation20], 4096  }
  0x37   :  { %3654 = vsyncadd [#allocation20], 4294963200 }
  0x38   :  { %3655 = dma.done.wait [#allocation23], 2048  }
  0x39   :  { %3656 = vsyncadd [#allocation23], 4294965248  ;;  %vm252_vm0 = vcmask 64512   ;;  %v247_v0 = vld [vmem:[#allocation9] sm:$0xff]  ;;  %v276_v1 = vld [vmem:[#allocation12] sm:$0xff]  ;;  %vm311_vm1 = vcmask 130048  }
  0x3a   :  { %v246_v2 = vld [vmem:[#allocation7] sm:$0xff]  ;;  %271 = vmatpush.msra.mxu0 %v247_v0  ;;  %296 = vmatpush.msra.mxu1 %v276_v1  ;;  %v385_v3 = vld [vmem:[#allocation19 + $0x70] sm:$0xff]  ;;  %v386_v4 = vld [vmem:[#allocation19 + $0x78] sm:$0xff]  ;;  %vm387_vm2 = vcmask 523264   ;;  %s2937_s1 = sshll.u32 %s4828_s16, 4  ;;  %s2938_s1 = int_to_ptr.hbm [resolvable:$true] %s2937_s1 }
  0x3b   :  { %2956 = vmatmul.msk.f32.vlgmr.msra.gmra.mxu0 %vm252_vm0, %v246_v2  ;;  %2957 = vmatmul.msk.f32.vlgmr.msra.gmra.mxu1 %vm252_vm0, %v246_v2  ;;  %v383_v5 = vld [vmem:[#allocation19 + $0x60] sm:$0xff]  ;;  %v384_v6 = vld [vmem:[#allocation19 + $0x68] sm:$0xff]  ;;  %v381_v7 = vld [vmem:[#allocation19 + $0x50] sm:$0xff] }
  0x3c   :  { %399 = vmatpush.msrb.mxu0 %v385_v3  ;;  %419 = vmatpush.msrb.mxu1 %v386_v4  ;;  %v3827_v8 = vld [vmem:[#allocation15 + $0x10] sm:$0xff]  ;;  %v3829_v9 = vld [vmem:[#allocation15 + $0x18] sm:$0xff]  ;;  %v3833_v11 = vld [vmem:[#allocation15] sm:$0xff] }
  0x3d   :  { %v382_v10 = vld [vmem:[#allocation19 + $0x58] sm:$0xff]  ;;  %329 = vmatpush.msra.mxu2 %v3827_v8  ;;  %349 = vmatpush.msra.mxu3 %v3829_v9  ;;  %v3835_v12 = vld [vmem:[#allocation15 + $0x8] sm:$0xff]  ;;  %v379_v13 = vld [vmem:[#allocation19 + $0x40] sm:$0xff] }
  0x3e   :  { %400 = vmatpush.msrb.mxu0 %v383_v5  ;;  %420 = vmatpush.msrb.mxu1 %v384_v6  ;;  %v369_v14 = vld [vmem:[#allocation18 + $0x70] sm:$0xff]  ;;  %v380_v15 = vld [vmem:[#allocation19 + $0x48] sm:$0xff]  ;;  %v370_v17 = vld [vmem:[#allocation18 + $0x78] sm:$0xff]  ;;  %v4829_v5 = vmov 0.0  }
  0x3f   :  { %330 = vmatpush.msra.mxu2 %v3833_v11  ;;  %350 = vmatpush.msra.mxu3 %v3835_v12  ;;  %v377_v16 = vld [vmem:[#allocation19 + $0x30] sm:$0xff]  ;;  %v367_v18 = vld [vmem:[#allocation18 + $0x60] sm:$0xff]  ;;  %v368_v19 = vld [vmem:[#allocation18 + $0x68] sm:$0xff] }
  0x40   :  { %401 = vmatpush.msrb.mxu0 %v381_v7  ;;  %421 = vmatpush.msrb.mxu1 %v382_v10  ;;  %v378_v20 = vld [vmem:[#allocation19 + $0x38] sm:$0xff]  ;;  %v375_v21 = vld [vmem:[#allocation19 + $0x20] sm:$0xff]  ;;  %v376_v22 = vld [vmem:[#allocation19 + $0x28] sm:$0xff] }
  0x41   :  { %439 = vmatpush.msrb.mxu2 %v369_v14  ;;  %459 = vmatpush.msrb.mxu3 %v370_v17  ;;  %v373_v23 = vld [vmem:[#allocation19 + $0x10] sm:$0xff]  ;;  %v374_v24 = vld [vmem:[#allocation19 + $0x18] sm:$0xff]  ;;  %v371_v27 = vld [vmem:[#allocation19] sm:$0xff] }
  0x42   :  { %402 = vmatpush.msrb.mxu0 %v379_v13  ;;  %422 = vmatpush.msrb.mxu1 %v380_v15  ;;  %v365_v25 = vld [vmem:[#allocation18 + $0x50] sm:$0xff]  ;;  %v366_v26 = vld [vmem:[#allocation18 + $0x58] sm:$0xff]  ;;  %v372_v28 = vld [vmem:[#allocation19 + $0x8] sm:$0xff]  ;;  %v479_v15 = vlaneseq }
  0x43   :  { %440 = vmatpush.msrb.mxu2 %v367_v18  ;;  %460 = vmatpush.msrb.mxu3 %v368_v19  ;;  %v363_v29 = vld [vmem:[#allocation18 + $0x40] sm:$0xff]  ;;  %v364_v30 = vld [vmem:[#allocation18 + $0x48] sm:$0xff]  ;;  %v361_v31 = vld [vmem:[#allocation18 + $0x30] sm:$0xff] }
  0x44   :  { %403 = vmatpush.msrb.mxu0 %v377_v16  ;;  %423 = vmatpush.msrb.mxu1 %v378_v20  ;;  %v362_v32 = vld [vmem:[#allocation18 + $0x38] sm:$0xff]  ;;  %v359_v33 = vld [vmem:[#allocation18 + $0x20] sm:$0xff]  ;;  %v360_v34 = vld [vmem:[#allocation18 + $0x28] sm:$0xff]  ;;  %v480_v20 = vand.u32 127, %v479_v15 }
  0x45   :  { %441 = vmatpush.msrb.mxu2 %v365_v25  ;;  %461 = vmatpush.msrb.mxu3 %v366_v26  ;;  %v357_v35 = vld [vmem:[#allocation18 + $0x10] sm:$0xff]  ;;  %v358_v36 = vld [vmem:[#allocation18 + $0x18] sm:$0xff]  ;;  %v355_v37 = vld [vmem:[#allocation18] sm:$0xff] }
  0x46   :  { %404 = vmatpush.msrb.mxu0 %v375_v21  ;;  %424 = vmatpush.msrb.mxu1 %v376_v22  ;;  %v356_v38 = vld [vmem:[#allocation18 + $0x8] sm:$0xff]  ;;  %v3144_v39 = vld [vmem:[#allocation10] ss:$0 sm:$0xff]  ;;  %v3145_v40 = vld [vmem:[#allocation13] ss:$0 sm:$0xff]  ;;  %v3994_v25 = vadd.s32 128, %v480_v20 }
  0x47   :  { %442 = vmatpush.msrb.mxu2 %v363_v29  ;;  %462 = vmatpush.msrb.mxu3 %v364_v30  ;;  %v3849_v45 = vld [vmem:[#allocation16 + $0x78] sm:$0xff]  ;;  %v3851_v46 = vld [vmem:[#allocation16 + $0x70] sm:$0xff]  ;;  %v3857_v47 = vld [vmem:[#allocation16 + $0x68] sm:$0xff]  ;;  %v486_v30 = vand.u32 63, %v480_v20 }
  0x48   :  { %405 = vmatpush.msrb.mxu0 %v373_v23  ;;  %425 = vmatpush.msrb.mxu1 %v374_v24  ;;  %v3859_v48 = vld [vmem:[#allocation16 + $0x60] sm:$0xff]  ;;  %v3863_v50 = vld [vmem:[#allocation16 + $0x58] sm:$0xff]  ;;  %v3865_v51 = vld [vmem:[#allocation16 + $0x50] sm:$0xff]  ;;  %vm511_vm12 = vcmp.lt.s32.totalorder %v3994_v25, 192 }
  0x49   :  { %443 = vmatpush.msrb.mxu2 %v361_v31  ;;  %463 = vmatpush.msrb.mxu3 %v362_v32  ;;  %v514_v49 = vld [vmem:[#allocation4] sm:$0xff]  ;;  %v3883_v54 = vld [vmem:[#allocation16 + $0x38] sm:$0xff]  ;;  %v3885_v55 = vld [vmem:[#allocation16 + $0x30] sm:$0xff]  ;;  %v493_v31 = vand.u32 63, %v3994_v25  ;;  %vm4001_vm3 = vcmp.lt.s32.totalorder %v486_v30, 32 }
  0x4a   :  { %406 = vmatpush.msrb.mxu0 %v371_v27  ;;  %426 = vmatpush.msrb.mxu1 %v372_v28  ;;  %v3875_v52 = vld [vmem:[#allocation16 + $0x48] sm:$0xff]  ;;  %v3877_v53 = vld [vmem:[#allocation16 + $0x40] sm:$0xff]  ;;  %v3903_v60 = vld [vmem:[#allocation16 + $0x18] sm:$0xff] }
  0x4b   :  { %444 = vmatpush.msrb.mxu2 %v359_v33  ;;  %464 = vmatpush.msrb.mxu3 %v360_v34  ;;  %v518_v56 = vld [vmem:[#allocation4 + $0x20] sm:$0xff]  ;;  %v515_v57 = vld [vmem:[#allocation4 + $0x8] sm:$0xff]  ;;  %v516_v1 = vld [vmem:[#allocation4 + $0x10] sm:$0xff]  ;;  %vm4005_vm4 = vcmp.lt.s32.totalorder %v493_v31, 32 }
  0x4c   :  { %560 = vmatpush.msra.mxu0 %v3827_v8  ;;  %601 = vmatpush.msra.mxu1 %v3829_v9  ;;  %v3891_v58 = vld [vmem:[#allocation16 + $0x28] sm:$0xff]  ;;  %v3893_v59 = vld [vmem:[#allocation16 + $0x20] sm:$0xff]  ;;  %v3905_v61 = vld [vmem:[#allocation16 + $0x10] sm:$0xff] }
  0x4d   :  { %445 = vmatpush.msrb.mxu2 %v357_v35  ;;  %465 = vmatpush.msrb.mxu3 %v358_v36  ;;  %v3911_v62 = vld [vmem:[#allocation16 + $0x8] sm:$0xff]  ;;  %v3913_v63 = vld [vmem:[#allocation16] sm:$0xff]  ;;  %v520_v2 = vld [vmem:[#allocation4 + $0x30] sm:$0xff] }
  0x4e   :  { %561 = vmatpush.msra.mxu0 %v3833_v11  ;;  %602 = vmatpush.msra.mxu1 %v3835_v12  ;;  %v519_v0 = vld [vmem:[#allocation4 + $0x28] sm:$0xff]  ;;  %v517_v3 = vld [vmem:[#allocation4 + $0x18] sm:$0xff] }
  0x4f   :  { %446 = vmatpush.msrb.mxu2 %v355_v37  ;;  %466 = vmatpush.msrb.mxu3 %v356_v38  ;;  %v521_v4 = vld [vmem:[#allocation4 + $0x38] sm:$0xff] }
  0x50   :  { %v2776_v25 = vld [vmem:[#allocation24 + $0x18] sm:$0xff] }
  0xb8   :  { %v273_v41 = vpop.f32.mrf.mxu0  ;;  %v298_v42 = vpop.f32.mrf.mxu1 }
  0xb9   :  { %v274_v43 = vadd.f32 %v3144_v39, %v273_v41  ;;  %v299_v44 = vadd.f32 %v3145_v40, %v298_v42 }
  0xbb   :  { %2958 = vmatmul.msk.f32.vlgmr.msra.gmra.mxu2 %vm311_vm1, %v274_v43  ;;  %2959 = vmatmul.msk.f32.vlgmr.msra.gmra.mxu3 %vm311_vm1, %v274_v43 }
  0xbc   :  { %2960 = vmatmul.msk.f32.vlgmr.msrb.gmra.mxu0 %vm387_vm2, %v299_v44  ;;  %2961 = vmatmul.msk.f32.vlgmr.msrb.gmra.mxu1 %vm387_vm2, %v299_v44 }
  0xbd   :  { %3122 = vmatpush.msra.mxu3 %v3829_v9  ;;  %3120 = vmatpush.msra.mxu2 %v3827_v8 }
  0xbe   :  { %1163 = vmatpush.msrb.mxu1 %v3849_v45  ;;  %1143 = vmatpush.msrb.mxu0 %v3851_v46 }
  0xbf   :  { %3123 = vmatpush.msra.mxu3 %v3835_v12  ;;  %3121 = vmatpush.msra.mxu2 %v3833_v11  ;;  %v305_v12 = vld [vmem:[%s4819_s7] sm:$0x3]  ;;  %s3677_s7 = smov 64  }
  0xc0   :  { %1164 = vmatpush.msrb.mxu1 %v3857_v47  ;;  %1144 = vmatpush.msrb.mxu0 %v3859_v48  ;;  %v307_v16 = vperm.slane %v305_v12, 0  ;;  %v308_v17 = vperm.slane %v305_v12, 1 }
  0xc2   :  { %1165 = vmatpush.msrb.mxu1 %v3863_v50  ;;  %1145 = vmatpush.msrb.mxu0 %v3865_v51 }
  0xc3   :  { %2962 = vmatmul.msk.f32.vlgmr.msrb.gmra.mxu2 %vm387_vm2, %v299_v44  ;;  %2963 = vmatmul.msk.f32.vlgmr.msrb.gmra.mxu3 %vm387_vm2, %v299_v44 }
  0xc4   :  { %2964 = vmatmul.msk.f32.vlgmr.msra.gmra.mxu0 %vm311_vm1, %v514_v49  ;;  %2972 = vmatmul.msk.f32.vlgmr.msra.gmra.mxu1 %vm311_vm1, %v514_v49 }
  0xc5   :  { %714 = vmatpush.msrb.mxu3 %v3849_v45  ;;  %694 = vmatpush.msrb.mxu2 %v3851_v46 }
  0xc6   :  { %1166 = vmatpush.msrb.mxu1 %v3875_v52  ;;  %1146 = vmatpush.msrb.mxu0 %v3877_v53 }
  0xc7   :  { %715 = vmatpush.msrb.mxu3 %v3857_v47  ;;  %695 = vmatpush.msrb.mxu2 %v3859_v48 }
  0xc8   :  { %1167 = vmatpush.msrb.mxu1 %v3883_v54  ;;  %1147 = vmatpush.msrb.mxu0 %v3885_v55 }
  0xc9   :  { %716 = vmatpush.msrb.mxu3 %v3863_v50  ;;  %696 = vmatpush.msrb.mxu2 %v3865_v51 }
  0xca   :  { %1168 = vmatpush.msrb.mxu1 %v3891_v58  ;;  %1148 = vmatpush.msrb.mxu0 %v3893_v59 }
  0xcb   :  { %2968 = vmatmul.msk.f32.vlgmr.msra.gmra.mxu2 %vm311_vm1, %v518_v56  ;;  %2976 = vmatmul.msk.f32.vlgmr.msra.gmra.mxu3 %vm311_vm1, %v518_v56 }
  0xcc   :  { %2965 = vmatmul.msk.f32.gmra.mxu0 %vm311_vm1, %v515_v57  ;;  %2973 = vmatmul.msk.f32.gmra.mxu1 %vm311_vm1, %v515_v57 }
  0xcd   :  { %717 = vmatpush.msrb.mxu3 %v3875_v52  ;;  %697 = vmatpush.msrb.mxu2 %v3877_v53 }
  0xce   :  { %1169 = vmatpush.msrb.mxu1 %v3903_v60  ;;  %1149 = vmatpush.msrb.mxu0 %v3905_v61 }
  0xcf   :  { %718 = vmatpush.msrb.mxu3 %v3883_v54  ;;  %698 = vmatpush.msrb.mxu2 %v3885_v55 }
  0xd0   :  { %1170 = vmatpush.msrb.mxu1 %v3911_v62  ;;  %1150 = vmatpush.msrb.mxu0 %v3913_v63 }
  0xd1   :  { %719 = vmatpush.msrb.mxu3 %v3891_v58  ;;  %699 = vmatpush.msrb.mxu2 %v3893_v59 }
  0xd2   :  { %1365 = vmatpush.msra.mxu0 %v3851_v46  ;;  %1385 = vmatpush.msra.mxu1 %v3849_v45 }
  0xd3   :  { %2969 = vmatmul.msk.f32.gmra.mxu2 %vm311_vm1, %v519_v0  ;;  %2977 = vmatmul.msk.f32.gmra.mxu3 %vm311_vm1, %v519_v0 }
  0xd4   :  { %2966 = vmatmul.msk.f32.gmra.mxu0 %vm311_vm1, %v516_v1  ;;  %2974 = vmatmul.msk.f32.gmra.mxu1 %vm311_vm1, %v516_v1 }
  0xd5   :  { %720 = vmatpush.msrb.mxu3 %v3903_v60  ;;  %700 = vmatpush.msrb.mxu2 %v3905_v61 }
  0xd6   :  { %1366 = vmatpush.msra.mxu0 %v3859_v48  ;;  %1386 = vmatpush.msra.mxu1 %v3857_v47 }
  0xd7   :  { %721 = vmatpush.msrb.mxu3 %v3911_v62  ;;  %701 = vmatpush.msrb.mxu2 %v3913_v63 }
  0xd8   :  { %1367 = vmatpush.msra.mxu0 %v3865_v51  ;;  %1387 = vmatpush.msra.mxu1 %v3863_v50 }
  0xd9   :  { %806 = vmatpush.msra.mxu2 %v3851_v46  ;;  %826 = vmatpush.msra.mxu3 %v3849_v45 }
  0xda   :  { %1368 = vmatpush.msra.mxu0 %v3877_v53  ;;  %1388 = vmatpush.msra.mxu1 %v3875_v52 }
  0xdb   :  { %807 = vmatpush.msra.mxu2 %v3859_v48  ;;  %827 = vmatpush.msra.mxu3 %v3857_v47 }
  0xdc   :  { %2970 = vmatmul.msk.f32.gmra.mxu2 %vm311_vm1, %v520_v2  ;;  %2978 = vmatmul.msk.f32.gmra.mxu3 %vm311_vm1, %v520_v2 }
  0xdd   :  { %2967 = vmatmul.msk.f32.gmra.mxu0 %vm311_vm1, %v517_v3  ;;  %2975 = vmatmul.msk.f32.gmra.mxu1 %vm311_vm1, %v517_v3 }
  0xde   :  { %808 = vmatpush.msra.mxu2 %v3865_v51  ;;  %828 = vmatpush.msra.mxu3 %v3863_v50 }
  0xdf   :  { %1369 = vmatpush.msra.mxu0 %v3885_v55  ;;  %1389 = vmatpush.msra.mxu1 %v3883_v54 }
  0xe0   :  { %809 = vmatpush.msra.mxu2 %v3877_v53  ;;  %829 = vmatpush.msra.mxu3 %v3875_v52 }
  0xe1   :  { %1370 = vmatpush.msra.mxu0 %v3893_v59  ;;  %1390 = vmatpush.msra.mxu1 %v3891_v58 }
  0xe2   :  { %810 = vmatpush.msra.mxu2 %v3885_v55  ;;  %830 = vmatpush.msra.mxu3 %v3883_v54 }
  0xe3   :  { %1371 = vmatpush.msra.mxu0 %v3905_v61  ;;  %1391 = vmatpush.msra.mxu1 %v3903_v60 }
  0xe4   :  { %2971 = vmatmul.msk.f32.gmra.mxu2 %vm311_vm1, %v521_v4  ;;  %2979 = vmatmul.msk.f32.gmra.mxu3 %vm311_vm1, %v521_v4 }
  0xe5   :  { %811 = vmatpush.msra.mxu2 %v3893_v59  ;;  %831 = vmatpush.msra.mxu3 %v3891_v58 }
  0xe6   :  { %1372 = vmatpush.msra.mxu0 %v3913_v63  ;;  %1392 = vmatpush.msra.mxu1 %v3911_v62 }
  0xe7   :  { %812 = vmatpush.msra.mxu2 %v3905_v61  ;;  %832 = vmatpush.msra.mxu3 %v3903_v60 }
  0xe9   :  { %813 = vmatpush.msra.mxu2 %v3913_v63  ;;  %833 = vmatpush.msra.mxu3 %v3911_v62 }
  0xec   :  { %702 = vmatmul.f32.vlgmr.msrb.gmra.mxu2 %v4829_v5  ;;  %722 = vmatmul.f32.vlgmr.msrb.gmra.mxu3 %v4829_v5 }
  0xed   :  { %919 = vmatpush.msrb.mxu2 %v3851_v46  ;;  %939 = vmatpush.msrb.mxu3 %v3849_v45 }
  0xef   :  { %920 = vmatpush.msrb.mxu2 %v3859_v48  ;;  %940 = vmatpush.msrb.mxu3 %v3857_v47 }
  0xf1   :  { %921 = vmatpush.msrb.mxu2 %v3865_v51  ;;  %941 = vmatpush.msrb.mxu3 %v3863_v50 }
  0xf3   :  { %922 = vmatpush.msrb.mxu2 %v3877_v53  ;;  %942 = vmatpush.msrb.mxu3 %v3875_v52 }
  0xf5   :  { %923 = vmatpush.msrb.mxu2 %v3885_v55  ;;  %943 = vmatpush.msrb.mxu3 %v3883_v54 }
  0xf7   :  { %924 = vmatpush.msrb.mxu2 %v3893_v59  ;;  %944 = vmatpush.msrb.mxu3 %v3891_v58 }
  0xf9   :  { %925 = vmatpush.msrb.mxu2 %v3905_v61  ;;  %945 = vmatpush.msrb.mxu3 %v3903_v60 }
  0xfb   :  { %926 = vmatpush.msrb.mxu2 %v3913_v63  ;;  %946 = vmatpush.msrb.mxu3 %v3911_v62 }
 0x139   :  { %v3983_v6 = vpop.f32.mrf.mxu0  ;;  %v3985_v7 = vpop.f32.mrf.mxu1 }
 0x13e   :  { %v332_v8 = vpop.f32.mrf.mxu2  ;;  %v352_v9 = vpop.f32.mrf.mxu3 }
 0x13f   :  { %v333_v21 = vadd.f32 %v332_v8, %v307_v16  ;;  %v353_v22 = vadd.f32 %v352_v9, %v308_v17 }
 0x141   :  { %v563_v10 = vpop.f32.mrf.mxu0  ;;  %v604_v11 = vpop.f32.mrf.mxu1 }
 0x146   :  { %v3990_v13 = vpop.f32.mrf.mxu2  ;;  %v3992_v14 = vpop.f32.mrf.mxu3 }
 0x149   :  { %v566_v18 = vpop.f32.mrf.mxu0  ;;  %v607_v19 = vpop.f32.mrf.mxu1 }
 0x14a   :  { %v4053_v9 = vadd.f32 %v566_v18, %v333_v21  ;;  %v4055_v12 = vadd.f32 %v607_v19, %v353_v22 }
 0x14e   :  { %v575_v23 = vpop.f32.mrf.mxu2  ;;  %v616_v24 = vpop.f32.mrf.mxu3 }
 0x14f   :  { %v3996_v26 = vadd.f32 %v575_v23, %v333_v21  ;;  %v3998_v27 = vadd.f32 %v616_v24, %v353_v22 }
 0x151   :  { %v569_v28 = vpop.f32.mrf.mxu0  ;;  %v610_v29 = vpop.f32.mrf.mxu1 }
 0x152   :  { %v4009_v36 = vadd.f32 %v569_v28, %v333_v21  ;;  %v4011_v37 = vadd.f32 %v610_v29, %v353_v22  ;;  %v4077_v28 = vadd.f32 %v563_v10, %v333_v21  ;;  %v4079_v29 = vadd.f32 %v604_v11, %v353_v22 }
 0x156   :  { %v578_v32 = vpop.f32.mrf.mxu2  ;;  %v619_v33 = vpop.f32.mrf.mxu3 }
 0x157   :  { %v4013_v38 = vadd.f32 %v578_v32, %v333_v21  ;;  %v4015_v39 = vadd.f32 %v619_v33, %v353_v22 }
 0x159   :  { %v907_v42 = vsel %vm4001_vm3, %v4009_v36, %v4013_v38  ;;  %v908_v43 = vsel %vm4005_vm4, %v4011_v37, %v4015_v39 }
 0x15a   :  { %v572_v40 = vpop.f32.mrf.mxu0  ;;  %v613_v41 = vpop.f32.mrf.mxu1 }
 0x15b   :  { %v4033_v56 = vadd.f32 %v572_v40, %v333_v21  ;;  %v4035_v57 = vadd.f32 %v613_v41, %v353_v22 }
 0x15d   :  { %v1020_v0 = vsel %vm4001_vm3, %v4033_v56, %v3996_v26 }
 0x15f   :  { %v581_v4 = vpop.f32.mrf.mxu2  ;;  %v622_v8 = vpop.f32.mrf.mxu3 }
 0x160   :  { %v4057_v15 = vadd.f32 %v581_v4, %v333_v21  ;;  %v4059_v16 = vadd.f32 %v622_v8, %v353_v22 }
 0x162   :  { %v794_v17 = vsel %vm4001_vm3, %v4053_v9, %v4057_v15  ;;  %v795_v20 = vsel %vm4005_vm4, %v4055_v12, %v4059_v16 }
 0x167   :  { %v584_v23 = vpop.f32.mrf.mxu2  ;;  %v625_v24 = vpop.f32.mrf.mxu3 }
 0x168   :  { %v4081_v30 = vadd.f32 %v584_v23, %v333_v21  ;;  %v4083_v31 = vadd.f32 %v625_v24, %v353_v22 }
 0x16a   :  { %v681_v10 = vsel %vm4001_vm3, %v4077_v28, %v4081_v30  ;;  %v682_v21 = vsel %vm4005_vm4, %v4079_v29, %v4083_v31 }
 0x16f   :  { %v703_v11 = vpop.f32.mrf.mxu2  ;;  %v723_v22 = vpop.f32.mrf.mxu3 }
 0x170   :  { %v726_v40 = vadd.f32 %v703_v11, %v681_v10  ;;  %v727_v41 = vadd.f32 %v723_v22, %v682_v21 }
 0x172   :  { %v2980_v4 = vmul.f32 -1.442695, %v726_v40  ;;  %v2981_v8 = vmul.f32 -1.442695, %v727_v41 }
 0x174   :  { %3147 = vpow2.f32 %v2980_v4 }
 0x175   :  { %3149 = vpow2.f32 %v2981_v8 }
 0x17a   :  { %v3148_v23 = vpop.eup %3147 }
 0x17b   :  { %v3150_v24 = vpop.eup %3149  ;;  %v734_v5 = vadd.f32 1.0, %v3148_v23 }
 0x17c   :  { %v735_v33 = vadd.f32 1.0, %v3150_v24 }
 0x17d   :  { %3151 = vrcp.f32 %v734_v5  ;;  %v747_v41 = vand.u32 2147483648, %v734_v5  ;;  %vm741_vm10 = vweird.f32 %v734_v5  ;;  %v745_v8 = vand.u32 2147483647, %v734_v5 }
 0x17e   :  { %3153 = vrcp.f32 %v735_v33  ;;  %v762_v1 = vand.u32 2147483648, %v735_v33  ;;  %v760_v11 = vand.u32 2147483647, %v735_v33  ;;  %vm756_vm6 = vweird.f32 %v735_v33 }
 0x17f   :  { %vm746_vm13 = vcmp.eq.f32.partialorder %v745_v8, 8.507059e+37 }
 0x180   :  { %v763_v40 = vor.u32 1.1754944e-38, %v762_v1  ;;  %vm761_vm9 = vcmp.eq.f32.partialorder %v760_v11, 8.507059e+37 }
 0x183   :  { %v3152_v32 = vpop.eup %3151 }
 0x184   :  { %v3154_v19 = vpop.eup %3153  ;;  %v737_v18 = vmul.f32 %v3152_v32, %v734_v5  ;;  %vm742_vm7 = vweird.f32 %v3152_v32 }
 0x185   :  { %v752_v49 = vmul.f32 %v3154_v19, %v735_v33  ;;  %vm757_vm5 = vweird.f32 %v3154_v19  ;;  %vm743_vm11 = vmor %vm741_vm10, %vm742_vm7 }
 0x186   :  { %v738_v44 = vsub.f32 1.0, %v737_v18  ;;  %vm758_vm8 = vmor %vm756_vm6, %vm757_vm5 }
 0x187   :  { %v753_v3 = vsub.f32 1.0, %v752_v49  ;;  %v748_v49 = vor.u32 1.1754944e-38, %v747_v41 }
 0x188   :  { %v739_v2 = vmul.f32 %v3152_v32, %v738_v44 }
 0x189   :  { %v754_v10 = vmul.f32 %v3154_v19, %v753_v3 }
 0x18a   :  { %v740_v22 = vadd.f32 %v3152_v32, %v739_v2 }
 0x18b   :  { %v755_v21 = vadd.f32 %v3154_v19, %v754_v10 }
 0x18c   :  { %v744_v44 = vsel %vm743_vm11, %v3152_v32, %v740_v22 }
 0x18d   :  { %v759_v4 = vsel %vm758_vm8, %v3154_v19, %v755_v21  ;;  %v749_v24 = vsel %vm746_vm13, %v748_v49, %v744_v44 }
 0x18e   :  { %v764_v23 = vsel %vm761_vm9, %v763_v40, %v759_v4  ;;  %v772_v1 = vmul.f32 0.0, %v749_v24 }
 0x18f   :  { %v767_v18 = vmul.f32 2.0, %v764_v23 }
 0x191   :  { %v2983_v3 = vadd.f32 -1.0, %v767_v18 }
 0x193   :  { %v771_v2 = vsel %vm511_vm12, %v2983_v3, %v764_v23 }
 0x194   :  { %v773_v33 = vmul.f32 %v771_v2, %v749_v24 }
 0x196   :  { %775 = vrot.lane.b32.xlu0 %v773_v33, %s3677_s7 }
 0x208   :  { %v776_v19 = vpop.permute.xlu0 %775 }
 0x209   :  { %v4105_v5 = vadd.f32 %v776_v19, %v772_v1 }
 0x20b   :  { %3155 = vtanh.f32 %v4105_v5 }
 0x211   :  { %v3156_v10 = vpop.eup %3155 }
 0x212   :  { %v780_v11 = vmul.f32 %v3156_v10, %v771_v2 }
 0x214   :  { %782 = vrot.lane.b32.xlu0 %v780_v11, %s3677_s7 }
 0x286   :  { %v783_v32 = vpop.permute.xlu0 %782 }
 0x287   :  { %785 = vst.msk [vmem:[#allocation3] sm:$0xff] %vm387_vm2, %v783_v32  ;;  %2984 = vmatmul.msk.f32.vlgmr.msra.gmra.mxu2 %vm387_vm2, %v783_v32  ;;  %2985 = vmatmul.msk.f32.vlgmr.msra.gmra.mxu3 %vm387_vm2, %v783_v32 }
 0x288   :  { %787 = vst.msk [vmem:[#allocation3 + $0x78] sm:$0xff] %vm387_vm2, %v783_v32  ;;  %1032 = vmatpush.msra.mxu2 %v3851_v46  ;;  %1052 = vmatpush.msra.mxu3 %v3849_v45 }
 0x28a   :  { %1033 = vmatpush.msra.mxu2 %v3859_v48  ;;  %1053 = vmatpush.msra.mxu3 %v3857_v47 }
 0x28c   :  { %1034 = vmatpush.msra.mxu2 %v3865_v51  ;;  %1054 = vmatpush.msra.mxu3 %v3863_v50 }
 0x28e   :  { %1035 = vmatpush.msra.mxu2 %v3877_v53  ;;  %1055 = vmatpush.msra.mxu3 %v3875_v52 }
 0x290   :  { %1036 = vmatpush.msra.mxu2 %v3885_v55  ;;  %1056 = vmatpush.msra.mxu3 %v3883_v54 }
 0x292   :  { %1037 = vmatpush.msra.mxu2 %v3893_v59  ;;  %1057 = vmatpush.msra.mxu3 %v3891_v58 }
 0x294   :  { %1038 = vmatpush.msra.mxu2 %v3905_v61  ;;  %1058 = vmatpush.msra.mxu3 %v3903_v60 }
 0x296   :  { %1039 = vmatpush.msra.mxu2 %v3913_v63  ;;  %1059 = vmatpush.msra.mxu3 %v3911_v62 }
 0x30a   :  { %v815_v21 = vpop.f32.mrf.mxu2  ;;  %v835_v22 = vpop.f32.mrf.mxu3 }
 0x30b   :  { %v838_v40 = vadd.f32 %v815_v21, %v794_v17  ;;  %v839_v41 = vadd.f32 %v835_v22, %v795_v20 }
 0x30d   :  { %v2986_v4 = vmul.f32 -1.442695, %v838_v40  ;;  %v2987_v8 = vmul.f32 -1.442695, %v839_v41 }
 0x30f   :  { %3157 = vpow2.f32 %v2986_v4 }
 0x310   :  { %3159 = vpow2.f32 %v2987_v8 }
 0x315   :  { %v3158_v23 = vpop.eup %3157 }
 0x316   :  { %v3160_v18 = vpop.eup %3159  ;;  %v846_v44 = vadd.f32 1.0, %v3158_v23 }
 0x317   :  { %v847_v49 = vadd.f32 1.0, %v3160_v18 }
 0x318   :  { %3161 = vrcp.f32 %v846_v44  ;;  %v859_v40 = vand.u32 2147483648, %v846_v44  ;;  %vm853_vm6 = vweird.f32 %v846_v44  ;;  %v857_v4 = vand.u32 2147483647, %v846_v44 }
 0x319   :  { %3163 = vrcp.f32 %v847_v49  ;;  %v874_v10 = vand.u32 2147483648, %v847_v49  ;;  %v872_v20 = vand.u32 2147483647, %v847_v49  ;;  %vm868_vm15 = vweird.f32 %v847_v49 }
 0x31a   :  { %vm858_vm8 = vcmp.eq.f32.partialorder %v857_v4, 8.507059e+37 }
 0x31b   :  { %v875_v22 = vor.u32 1.1754944e-38, %v874_v10  ;;  %vm873_vm5 = vcmp.eq.f32.partialorder %v872_v20, 8.507059e+37 }
 0x31e   :  { %v3162_v3 = vpop.eup %3161 }
 0x31f   :  { %v3164_v24 = vpop.eup %3163  ;;  %v849_v2 = vmul.f32 %v3162_v3, %v846_v44  ;;  %vm854_vm0 = vweird.f32 %v3162_v3 }
 0x320   :  { %v864_v17 = vmul.f32 %v3164_v24, %v847_v49  ;;  %vm869_vm14 = vweird.f32 %v3164_v24  ;;  %vm855_vm7 = vmor %vm853_vm6, %vm854_vm0 }
 0x321   :  { %v850_v33 = vsub.f32 1.0, %v849_v2  ;;  %vm870_vm1 = vmor %vm868_vm15, %vm869_vm14  ;;  %v860_v2 = vor.u32 1.1754944e-38, %v859_v40 }
 0x322   :  { %v865_v1 = vsub.f32 1.0, %v864_v17 }
 0x323   :  { %v851_v19 = vmul.f32 %v3162_v3, %v850_v33 }
 0x324   :  { %v866_v11 = vmul.f32 %v3164_v24, %v865_v1 }
 0x325   :  { %v852_v21 = vadd.f32 %v3162_v3, %v851_v19 }
 0x326   :  { %v867_v32 = vadd.f32 %v3164_v24, %v866_v11 }
 0x327   :  { %v856_v18 = vsel %vm855_vm7, %v3162_v3, %v852_v21 }
 0x328   :  { %v871_v41 = vsel %vm870_vm1, %v3164_v24, %v867_v32  ;;  %v861_v33 = vsel %vm858_vm8, %v860_v2, %v856_v18 }
 0x329   :  { %v876_v8 = vsel %vm873_vm5, %v875_v22, %v871_v41  ;;  %v884_v19 = vmul.f32 %v861_v33, %v4105_v5 }
 0x32a   :  { %v879_v23 = vmul.f32 2.0, %v876_v8 }
 0x32c   :  { %v2989_v17 = vadd.f32 -1.0, %v879_v23 }
 0x32e   :  { %v883_v49 = vsel %vm511_vm12, %v2989_v17, %v876_v8 }
 0x32f   :  { %v885_v1 = vmul.f32 %v883_v49, %v861_v33 }
 0x331   :  { %887 = vrot.lane.b32.xlu1 %v885_v1, %s3677_s7 }
 0x3a3   :  { %v888_v24 = vpop.permute.xlu1 %887 }
 0x3a4   :  { %v4143_v10 = vadd.f32 %v888_v24, %v884_v19 }
 0x3a6   :  { %3165 = vtanh.f32 %v4143_v10 }
 0x3ac   :  { %v3166_v44 = vpop.eup %3165 }
 0x3ad   :  { %v892_v11 = vmul.f32 %v3166_v44, %v883_v49 }
 0x3af   :  { %894 = vrot.lane.b32.xlu1 %v892_v11, %s3677_s7 }
 0x421   :  { %v895_v3 = vpop.permute.xlu1 %894 }
 0x422   :  { %898 = vst.msk [vmem:[#allocation3 + $0x8] sm:$0xff] %vm387_vm2, %v895_v3  ;;  %2990 = vmatmul.msk.f32.vlgmr.msrb.gmra.mxu2 %vm387_vm2, %v895_v3  ;;  %2991 = vmatmul.msk.f32.vlgmr.msrb.gmra.mxu3 %vm387_vm2, %v895_v3 }
 0x423   :  { %900 = vst.msk [vmem:[#allocation3 + $0x70] sm:$0xff] %vm387_vm2, %v895_v3  ;;  %1254 = vmatpush.msrb.mxu2 %v3851_v46  ;;  %1274 = vmatpush.msrb.mxu3 %v3849_v45 }
 0x425   :  { %1255 = vmatpush.msrb.mxu2 %v3859_v48  ;;  %1275 = vmatpush.msrb.mxu3 %v3857_v47 }
 0x427   :  { %1256 = vmatpush.msrb.mxu2 %v3865_v51  ;;  %1276 = vmatpush.msrb.mxu3 %v3863_v50 }
 0x429   :  { %1257 = vmatpush.msrb.mxu2 %v3877_v53  ;;  %1277 = vmatpush.msrb.mxu3 %v3875_v52 }
 0x42b   :  { %1258 = vmatpush.msrb.mxu2 %v3885_v55  ;;  %1278 = vmatpush.msrb.mxu3 %v3883_v54 }
 0x42d   :  { %1259 = vmatpush.msrb.mxu2 %v3893_v59  ;;  %1279 = vmatpush.msrb.mxu3 %v3891_v58 }
 0x42f   :  { %1260 = vmatpush.msrb.mxu2 %v3905_v61  ;;  %1280 = vmatpush.msrb.mxu3 %v3903_v60 }
 0x431   :  { %1261 = vmatpush.msrb.mxu2 %v3913_v63  ;;  %1281 = vmatpush.msrb.mxu3 %v3911_v62 }
 0x4a5   :  { %v928_v5 = vpop.f32.mrf.mxu2  ;;  %v948_v20 = vpop.f32.mrf.mxu3 }
 0x4a6   :  { %v951_v32 = vadd.f32 %v928_v5, %v907_v42  ;;  %v952_v21 = vadd.f32 %v948_v20, %v908_v43 }
 0x4a8   :  { %v2992_v22 = vmul.f32 -1.442695, %v951_v32  ;;  %v2993_v40 = vmul.f32 -1.442695, %v952_v21 }
 0x4aa   :  { %3167 = vpow2.f32 %v2992_v22 }
 0x4ab   :  { %3169 = vpow2.f32 %v2993_v40 }
 0x4b0   :  { %v3168_v41 = vpop.eup %3167 }
 0x4b1   :  { %v3170_v4 = vpop.eup %3169  ;;  %v959_v8 = vadd.f32 1.0, %v3168_v41 }
 0x4b2   :  { %v960_v23 = vadd.f32 1.0, %v3170_v4 }
 0x4b3   :  { %3171 = vrcp.f32 %v959_v8  ;;  %v972_v5 = vand.u32 2147483648, %v959_v8  ;;  %vm966_vm15 = vweird.f32 %v959_v8  ;;  %v970_v32 = vand.u32 2147483647, %v959_v8 }
 0x4b4   :  { %3173 = vrcp.f32 %v960_v23  ;;  %v987_v19 = vand.u32 2147483648, %v960_v23  ;;  %v985_v43 = vand.u32 2147483647, %v960_v23  ;;  %vm981_vm10 = vweird.f32 %v960_v23 }
 0x4b5   :  { %v973_v41 = vor.u32 1.1754944e-38, %v972_v5  ;;  %vm971_vm1 = vcmp.eq.f32.partialorder %v970_v32, 8.507059e+37 }
 0x4b6   :  { %v988_v3 = vor.u32 1.1754944e-38, %v987_v19  ;;  %vm986_vm14 = vcmp.eq.f32.partialorder %v985_v43, 8.507059e+37 }
 0x4b9   :  { %v3172_v18 = vpop.eup %3171 }
 0x4ba   :  { %v3174_v2 = vpop.eup %3173  ;;  %v962_v17 = vmul.f32 %v3172_v18, %v959_v8  ;;  %vm967_vm11 = vweird.f32 %v3172_v18 }
 0x4bb   :  { %v977_v42 = vmul.f32 %v3174_v2, %v960_v23  ;;  %vm982_vm9 = vweird.f32 %v3174_v2  ;;  %vm968_vm0 = vmor %vm966_vm15, %vm967_vm11 }
 0x4bc   :  { %v963_v33 = vsub.f32 1.0, %v962_v17  ;;  %vm983_vm13 = vmor %vm981_vm10, %vm982_vm9 }
 0x4bd   :  { %v978_v49 = vsub.f32 1.0, %v977_v42 }
 0x4be   :  { %v964_v1 = vmul.f32 %v3172_v18, %v963_v33 }
 0x4bf   :  { %v979_v24 = vmul.f32 %v3174_v2, %v978_v49 }
 0x4c0   :  { %v965_v11 = vadd.f32 %v3172_v18, %v964_v1 }
 0x4c1   :  { %v980_v44 = vadd.f32 %v3174_v2, %v979_v24 }
 0x4c2   :  { %v969_v40 = vsel %vm968_vm0, %v3172_v18, %v965_v11 }
 0x4c3   :  { %v984_v20 = vsel %vm983_vm13, %v3174_v2, %v980_v44  ;;  %v974_v17 = vsel %vm971_vm1, %v973_v41, %v969_v40 }
 0x4c4   :  { %v989_v21 = vsel %vm986_vm14, %v988_v3, %v984_v20  ;;  %v997_v33 = vmul.f32 %v974_v17, %v4143_v10 }
 0x4c5   :  { %v992_v22 = vmul.f32 2.0, %v989_v21 }
 0x4c7   :  { %v2995_v4 = vadd.f32 -1.0, %v992_v22 }
 0x4c9   :  { %v996_v23 = vsel %vm511_vm12, %v2995_v4, %v989_v21 }
 0x4ca   :  { %v998_v42 = vmul.f32 %v996_v23, %v974_v17 }
 0x4cc   :  { %1000 = vrot.lane.b32.xlu2 %v998_v42, %s3677_s7 }
 0x526   :  { %v1001_v2 = vpop.permute.xlu2 %1000 }
 0x527   :  { %v4181_v49 = vadd.f32 %v1001_v2, %v997_v33 }
 0x529   :  { %3175 = vtanh.f32 %v4181_v49 }
 0x52f   :  { %v3176_v8 = vpop.eup %3175 }
 0x530   :  { %v1005_v1 = vmul.f32 %v3176_v8, %v996_v23 }
 0x532   :  { %1007 = vrot.lane.b32.xlu2 %v1005_v1, %s3677_s7 }
 0x58c   :  { %v1008_v18 = vpop.permute.xlu2 %1007 }
 0x58d   :  { %1011 = vst.msk [vmem:[#allocation3 + $0x10] sm:$0xff] %vm387_vm2, %v1008_v18  ;;  %2996 = vmatmul.msk.f32.vlgmr.msra.gmra.mxu2 %vm387_vm2, %v1008_v18  ;;  %2997 = vmatmul.msk.f32.vlgmr.msra.gmra.mxu3 %vm387_vm2, %v1008_v18 }
 0x58e   :  { %1013 = vst.msk [vmem:[#allocation3 + $0x68] sm:$0xff] %vm387_vm2, %v1008_v18  ;;  %1476 = vmatpush.msra.mxu2 %v3851_v46  ;;  %1496 = vmatpush.msra.mxu3 %v3849_v45 }
 0x590   :  { %1477 = vmatpush.msra.mxu2 %v3859_v48  ;;  %1497 = vmatpush.msra.mxu3 %v3857_v47  ;;  %v4837_v48 = vsel %vm4005_vm4, %v4035_v57, %v3998_v27 }
 0x592   :  { %1478 = vmatpush.msra.mxu2 %v3865_v51  ;;  %1498 = vmatpush.msra.mxu3 %v3863_v50 }
 0x594   :  { %1479 = vmatpush.msra.mxu2 %v3877_v53  ;;  %1499 = vmatpush.msra.mxu3 %v3875_v52 }
 0x596   :  { %1480 = vmatpush.msra.mxu2 %v3885_v55  ;;  %1500 = vmatpush.msra.mxu3 %v3883_v54 }
 0x598   :  { %1481 = vmatpush.msra.mxu2 %v3893_v59  ;;  %1501 = vmatpush.msra.mxu3 %v3891_v58 }
 0x59a   :  { %1482 = vmatpush.msra.mxu2 %v3905_v61  ;;  %1502 = vmatpush.msra.mxu3 %v3903_v60 }
 0x59c   :  { %1483 = vmatpush.msra.mxu2 %v3913_v63  ;;  %1503 = vmatpush.msra.mxu3 %v3911_v62 }
 0x610   :  { %v1041_v45 = vpop.f32.mrf.mxu2  ;;  %v1061_v46 = vpop.f32.mrf.mxu3 }
 0x611   :  { %v1064_v47 = vadd.f32 %v1041_v45, %v1020_v0  ;;  %v1065_v50 = vadd.f32 %v1061_v46, %v4837_v48 }
 0x613   :  { %v2998_v51 = vmul.f32 -1.442695, %v1064_v47  ;;  %v2999_v52 = vmul.f32 -1.442695, %v1065_v50  ;;  %v4839_v50 = vsel %vm4005_vm4, %v3998_v27, %v4035_v57 }
 0x615   :  { %3177 = vpow2.f32 %v2998_v51 }
 0x616   :  { %3179 = vpow2.f32 %v2999_v52 }
 0x61b   :  { %v3178_v53 = vpop.eup %3177 }
 0x61c   :  { %v3180_v54 = vpop.eup %3179  ;;  %v1072_v55 = vadd.f32 1.0, %v3178_v53 }
 0x61d   :  { %v1073_v58 = vadd.f32 1.0, %v3180_v54 }
 0x61e   :  { %3181 = vrcp.f32 %v1072_v55  ;;  %v1085_v5 = vand.u32 2147483648, %v1072_v55  ;;  %vm1079_vm10 = vweird.f32 %v1072_v55  ;;  %v1083_v32 = vand.u32 2147483647, %v1072_v55 }
 0x61f   :  { %3183 = vrcp.f32 %v1073_v58  ;;  %v1100_v19 = vand.u32 2147483648, %v1073_v58  ;;  %v1098_v43 = vand.u32 2147483647, %v1073_v58  ;;  %vm1094_vm6 = vweird.f32 %v1073_v58 }
 0x620   :  { %v1086_v41 = vor.u32 1.1754944e-38, %v1085_v5  ;;  %vm1084_vm13 = vcmp.eq.f32.partialorder %v1083_v32, 8.507059e+37 }
 0x621   :  { %v1101_v3 = vor.u32 1.1754944e-38, %v1100_v19  ;;  %vm1099_vm9 = vcmp.eq.f32.partialorder %v1098_v43, 8.507059e+37 }
 0x624   :  { %v3182_v59 = vpop.eup %3181 }
 0x625   :  { %v3184_v60 = vpop.eup %3183  ;;  %v1075_v61 = vmul.f32 %v3182_v59, %v1072_v55  ;;  %vm1080_vm7 = vweird.f32 %v3182_v59 }
 0x626   :  { %v1090_v62 = vmul.f32 %v3184_v60, %v1073_v58  ;;  %vm1095_vm5 = vweird.f32 %v3184_v60  ;;  %vm1081_vm11 = vmor %vm1079_vm10, %vm1080_vm7 }
 0x627   :  { %v1076_v63 = vsub.f32 1.0, %v1075_v61  ;;  %vm1096_vm8 = vmor %vm1094_vm6, %vm1095_vm5 }
 0x628   :  { %v1091_v0 = vsub.f32 1.0, %v1090_v62 }
 0x629   :  { %v1077_v10 = vmul.f32 %v3182_v59, %v1076_v63 }
 0x62a   :  { %v1092_v24 = vmul.f32 %v3184_v60, %v1091_v0 }
 0x62b   :  { %v1078_v11 = vadd.f32 %v3182_v59, %v1077_v10 }
 0x62c   :  { %v1093_v44 = vadd.f32 %v3184_v60, %v1092_v24 }
 0x62d   :  { %v1082_v40 = vsel %vm1081_vm11, %v3182_v59, %v1078_v11 }
 0x62e   :  { %v1097_v20 = vsel %vm1096_vm8, %v3184_v60, %v1093_v44  ;;  %v1087_v17 = vsel %vm1084_vm13, %v1086_v41, %v1082_v40 }
 0x62f   :  { %v1102_v21 = vsel %vm1099_vm9, %v1101_v3, %v1097_v20  ;;  %v1110_v33 = vmul.f32 %v1087_v17, %v4181_v49  ;;  %v4838_v49 = vsel %vm4001_vm3, %v3996_v26, %v4033_v56 }
 0x630   :  { %v1105_v22 = vmul.f32 2.0, %v1102_v21 }
 0x632   :  { %v3001_v4 = vadd.f32 -1.0, %v1105_v22 }
 0x634   :  { %v1109_v23 = vsel %vm511_vm12, %v3001_v4, %v1102_v21 }
 0x635   :  { %v1111_v42 = vmul.f32 %v1109_v23, %v1087_v17 }
 0x637   :  { %1113 = vrot.lane.b32.xlu0 %v1111_v42, %s3677_s7 }
 0x6a9   :  { %v1114_v2 = vpop.permute.xlu0 %1113 }
 0x6aa   :  { %v1116_v8 = vadd.f32 %v1114_v2, %v1110_v33 }
 0x6ac   :  { %3185 = vtanh.f32 %v1116_v8 }
 0x6b2   :  { %v3186_v1 = vpop.eup %3185 }
 0x6b3   :  { %v1118_v18 = vmul.f32 %v3186_v1, %v1109_v23 }
 0x6b5   :  { %1120 = vrot.lane.b32.xlu1 %v1118_v18, %s3677_s7 }
 0x727   :  { %v1121_v45 = vpop.permute.xlu1 %1120 }
 0x728   :  { %1124 = vst.msk [vmem:[#allocation3 + $0x18] sm:$0xff] %vm387_vm2, %v1121_v45  ;;  %3002 = vmatmul.msk.f32.vlgmr.msrb.gmra.mxu0 %vm387_vm2, %v1121_v45  ;;  %3003 = vmatmul.msk.f32.vlgmr.msrb.gmra.mxu1 %vm387_vm2, %v1121_v45 }
 0x729   :  { %1126 = vst.msk [vmem:[#allocation3 + $0x60] sm:$0xff] %vm387_vm2, %v1121_v45 }
 0x7a5   :  { %v1152_v46 = vpop.f32.mrf.mxu0  ;;  %v1172_v47 = vpop.f32.mrf.mxu1 }
 0x7a6   :  { %v1175_v48 = vadd.f32 %v1152_v46, %v4838_v49  ;;  %v1176_v51 = vadd.f32 %v1172_v47, %v4839_v50  ;;  %v4841_v47 = vsel %vm4005_vm4, %v4015_v39, %v4011_v37 }
 0x7a8   :  { %v3004_v52 = vmul.f32 -1.442695, %v1175_v48  ;;  %v3005_v53 = vmul.f32 -1.442695, %v1176_v51 }
 0x7aa   :  { %3187 = vpow2.f32 %v3004_v52 }
 0x7ab   :  { %3189 = vpow2.f32 %v3005_v53 }
 0x7b0   :  { %v3188_v54 = vpop.eup %3187 }
 0x7b1   :  { %v3190_v55 = vpop.eup %3189  ;;  %v1183_v58 = vadd.f32 1.0, %v3188_v54 }
 0x7b2   :  { %v1184_v59 = vadd.f32 1.0, %v3190_v55 }
 0x7b3   :  { %3191 = vrcp.f32 %v1183_v58  ;;  %v1196_v44 = vand.u32 2147483648, %v1183_v58  ;;  %vm1190_vm6 = vweird.f32 %v1183_v58  ;;  %v1194_v3 = vand.u32 2147483647, %v1183_v58 }
 0x7b4   :  { %3193 = vrcp.f32 %v1184_v59  ;;  %v1211_v10 = vand.u32 2147483648, %v1184_v59  ;;  %v1209_v57 = vand.u32 2147483647, %v1184_v59  ;;  %vm1205_vm15 = vweird.f32 %v1184_v59 }
 0x7b5   :  { %v1197_v21 = vor.u32 1.1754944e-38, %v1196_v44  ;;  %vm1195_vm8 = vcmp.eq.f32.partialorder %v1194_v3, 8.507059e+37 }
 0x7b6   :  { %v1212_v43 = vor.u32 1.1754944e-38, %v1211_v10  ;;  %vm1210_vm5 = vcmp.eq.f32.partialorder %v1209_v57, 8.507059e+37 }
 0x7b9   :  { %v3192_v60 = vpop.eup %3191 }
 0x7ba   :  { %v3194_v61 = vpop.eup %3193  ;;  %v1186_v26 = vmul.f32 %v3192_v60, %v1183_v58  ;;  %vm1191_vm0 = vweird.f32 %v3192_v60 }
 0x7bb   :  { %v1201_v56 = vmul.f32 %v3194_v61, %v1184_v59  ;;  %vm1206_vm14 = vweird.f32 %v3194_v61  ;;  %vm1192_vm7 = vmor %vm1190_vm6, %vm1191_vm0 }
 0x7bc   :  { %v1187_v62 = vsub.f32 1.0, %v1186_v26  ;;  %vm1207_vm1 = vmor %vm1205_vm15, %vm1206_vm14 }
 0x7bd   :  { %v1202_v63 = vsub.f32 1.0, %v1201_v56 }
 0x7be   :  { %v1188_v0 = vmul.f32 %v3192_v60, %v1187_v62 }
 0x7bf   :  { %v1203_v27 = vmul.f32 %v3194_v61, %v1202_v63 }
 0x7c0   :  { %v1189_v24 = vadd.f32 %v3192_v60, %v1188_v0 }
 0x7c1   :  { %v1204_v19 = vadd.f32 %v3194_v61, %v1203_v27 }
 0x7c2   :  { %v1193_v32 = vsel %vm1192_vm7, %v3192_v60, %v1189_v24 }
 0x7c3   :  { %v1208_v11 = vsel %vm1207_vm1, %v3194_v61, %v1204_v19  ;;  %v1198_v40 = vsel %vm1195_vm8, %v1197_v21, %v1193_v32 }
 0x7c4   :  { %v1213_v5 = vsel %vm1210_vm5, %v1212_v43, %v1208_v11  ;;  %v1221_v17 = vmul.f32 %v1198_v40, %v1116_v8  ;;  %v4840_v8 = vsel %vm4001_vm3, %v4013_v38, %v4009_v36 }
 0x7c5   :  { %v1216_v20 = vmul.f32 2.0, %v1213_v5 }
 0x7c7   :  { %v3007_v22 = vadd.f32 -1.0, %v1216_v20 }
 0x7c9   :  { %v1220_v41 = vsel %vm511_vm12, %v3007_v22, %v1213_v5 }
 0x7ca   :  { %v1222_v4 = vmul.f32 %v1220_v41, %v1198_v40 }
 0x7cc   :  { %1224 = vrot.lane.b32.xlu2 %v1222_v4, %s3677_s7 }
 0x826   :  { %v1225_v23 = vpop.permute.xlu2 %1224 }
 0x827   :  { %v1227_v42 = vadd.f32 %v1225_v23, %v1221_v17  ;;  %v4842_v23 = vsel %vm4001_vm3, %v4057_v15, %v4053_v9 }
 0x829   :  { %3195 = vtanh.f32 %v1227_v42 }
 0x82f   :  { %v3196_v33 = vpop.eup %3195 }
 0x830   :  { %v1229_v2 = vmul.f32 %v3196_v33, %v1220_v41  ;;  %v4843_v33 = vsel %vm4005_vm4, %v4059_v16, %v4055_v12 }
 0x832   :  { %1231 = vrot.lane.b32.xlu0 %v1229_v2, %s3677_s7 }
 0x8a4   :  { %v1232_v1 = vpop.permute.xlu0 %1231 }
 0x8a5   :  { %1235 = vst.msk [vmem:[#allocation3 + $0x20] sm:$0xff] %vm387_vm2, %v1232_v1  ;;  %3008 = vmatmul.msk.f32.vlgmr.msrb.gmra.mxu2 %vm387_vm2, %v1232_v1  ;;  %3009 = vmatmul.msk.f32.vlgmr.msrb.gmra.mxu3 %vm387_vm2, %v1232_v1 }
 0x8a6   :  { %1237 = vst.msk [vmem:[#allocation3 + $0x58] sm:$0xff] %vm387_vm2, %v1232_v1 }
 0x928   :  { %v1263_v18 = vpop.f32.mrf.mxu2  ;;  %v1283_v45 = vpop.f32.mrf.mxu3 }
 0x929   :  { %v1286_v46 = vadd.f32 %v1263_v18, %v4840_v8  ;;  %v1287_v49 = vadd.f32 %v1283_v45, %v4841_v47 }
 0x92b   :  { %v3010_v48 = vmul.f32 -1.442695, %v1286_v46  ;;  %v3011_v50 = vmul.f32 -1.442695, %v1287_v49 }
 0x92d   :  { %3197 = vpow2.f32 %v3010_v48 }
 0x92e   :  { %3199 = vpow2.f32 %v3011_v50 }
 0x933   :  { %v3198_v51 = vpop.eup %3197 }
 0x934   :  { %v3200_v52 = vpop.eup %3199  ;;  %v1294_v53 = vadd.f32 1.0, %v3198_v51 }
 0x935   :  { %v1295_v54 = vadd.f32 1.0, %v3200_v52 }
 0x936   :  { %3201 = vrcp.f32 %v1294_v53  ;;  %v1307_v0 = vand.u32 2147483648, %v1294_v53  ;;  %vm1301_vm15 = vweird.f32 %v1294_v53  ;;  %v1305_v27 = vand.u32 2147483647, %v1294_v53 }
 0x937   :  { %3203 = vrcp.f32 %v1295_v54  ;;  %v1322_v26 = vand.u32 2147483648, %v1295_v54  ;;  %v1320_v39 = vand.u32 2147483647, %v1295_v54  ;;  %vm1316_vm10 = vweird.f32 %v1295_v54 }
 0x938   :  { %v1308_v43 = vor.u32 1.1754944e-38, %v1307_v0  ;;  %vm1306_vm1 = vcmp.eq.f32.partialorder %v1305_v27, 8.507059e+37  ;;  %v1601_v0 = vld [vmem:[#allocation18 + $0x70] sm:$0xff]  ;;  %v1599_v27 = vld [vmem:[#allocation18 + $0x60] sm:$0xff] }
 0x939   :  { %v1323_v63 = vor.u32 1.1754944e-38, %v1322_v26  ;;  %vm1321_vm14 = vcmp.eq.f32.partialorder %v1320_v39, 8.507059e+37  ;;  %1757 = vmatpush.msrb.mxu2 %v1601_v0 }
 0x93b   :  { %1758 = vmatpush.msrb.mxu2 %v1599_v27 }
 0x93c   :  { %v3202_v55 = vpop.eup %3201 }
 0x93d   :  { %v3204_v58 = vpop.eup %3203  ;;  %v1297_v36 = vmul.f32 %v3202_v55, %v1294_v53  ;;  %vm1302_vm11 = vweird.f32 %v3202_v55 }
 0x93e   :  { %v1312_v38 = vmul.f32 %v3204_v58, %v1295_v54  ;;  %vm1317_vm9 = vweird.f32 %v3204_v58  ;;  %vm1303_vm0 = vmor %vm1301_vm15, %vm1302_vm11 }
 0x93f   :  { %v1298_v59 = vsub.f32 1.0, %v1297_v36  ;;  %vm1318_vm13 = vmor %vm1316_vm10, %vm1317_vm9 }
 0x940   :  { %v1313_v60 = vsub.f32 1.0, %v1312_v38 }
 0x941   :  { %v1299_v61 = vmul.f32 %v3202_v55, %v1298_v59 }
 0x942   :  { %v1314_v37 = vmul.f32 %v3204_v58, %v1313_v60 }
 0x943   :  { %v1300_v62 = vadd.f32 %v3202_v55, %v1299_v61 }
 0x944   :  { %v1315_v56 = vadd.f32 %v3204_v58, %v1314_v37 }
 0x945   :  { %v1304_v24 = vsel %vm1303_vm0, %v3202_v55, %v1300_v62 }
 0x946   :  { %v1319_v10 = vsel %vm1318_vm13, %v3204_v58, %v1315_v56  ;;  %v1309_v11 = vsel %vm1306_vm1, %v1308_v43, %v1304_v24  ;;  %v1598_v24 = vld [vmem:[#allocation18 + $0x58] sm:$0xff]  ;;  %v1595_v43 = vld [vmem:[#allocation18 + $0x40] sm:$0xff] }
 0x947   :  { %v1324_v57 = vsel %vm1321_vm14, %v1323_v63, %v1319_v10  ;;  %v1332_v20 = vmul.f32 %v1309_v11, %v1227_v42  ;;  %v1602_v10 = vld [vmem:[#allocation18 + $0x78] sm:$0xff] }
 0x948   :  { %v1327_v19 = vmul.f32 2.0, %v1324_v57  ;;  %1798 = vmatpush.msrb.mxu3 %v1602_v10 }
 0x94a   :  { %v3013_v44 = vadd.f32 -1.0, %v1327_v19  ;;  %v1597_v19 = vld [vmem:[#allocation18 + $0x50] sm:$0xff] }
 0x94b   :  { %1759 = vmatpush.msrb.mxu2 %v1597_v19 }
 0x94c   :  { %v1331_v3 = vsel %vm511_vm12, %v3013_v44, %v1324_v57  ;;  %v1600_v57 = vld [vmem:[#allocation18 + $0x68] sm:$0xff] }
 0x94d   :  { %v1333_v5 = vmul.f32 %v1331_v3, %v1309_v11  ;;  %1799 = vmatpush.msrb.mxu3 %v1600_v57  ;;  %v1596_v44 = vld [vmem:[#allocation18 + $0x48] sm:$0xff]  ;;  %1760 = vmatpush.msrb.mxu2 %v1595_v43 }
 0x94f   :  { %1335 = vrot.lane.b32.xlu1 %v1333_v5, %s3677_s7  ;;  %1800 = vmatpush.msrb.mxu3 %v1598_v24 }
 0x951   :  { %1801 = vmatpush.msrb.mxu3 %v1596_v44 }
 0x9c1   :  { %v1336_v32 = vpop.permute.xlu1 %1335 }
 0x9c2   :  { %v4255_v21 = vadd.f32 %v1336_v32, %v1332_v20 }
 0x9c4   :  { %3205 = vtanh.f32 %v4255_v21 }
 0x9ca   :  { %v3206_v22 = vpop.eup %3205 }
 0x9cb   :  { %v1340_v40 = vmul.f32 %v3206_v22, %v1331_v3  ;;  %v1593_v22 = vld [vmem:[#allocation18 + $0x30] sm:$0xff] }
 0x9cc   :  { %1761 = vmatpush.msrb.mxu2 %v1593_v22  ;;  %v1613_v22 = vld [vmem:[#allocation19 + $0x50] sm:$0xff] }
 0x9cd   :  { %1342 = vrot.lane.b32.xlu2 %v1340_v40, %s3677_s7  ;;  %v1594_v40 = vld [vmem:[#allocation18 + $0x38] sm:$0xff] }
 0x9ce   :  { %1802 = vmatpush.msrb.mxu3 %v1594_v40  ;;  %v1614_v40 = vld [vmem:[#allocation19 + $0x58] sm:$0xff] }
 0xa27   :  { %v1343_v41 = vpop.permute.xlu2 %1342 }
 0xa28   :  { %1346 = vst.msk [vmem:[#allocation3 + $0x28] sm:$0xff] %vm387_vm2, %v1343_v41  ;;  %3014 = vmatmul.msk.f32.vlgmr.msra.gmra.mxu0 %vm387_vm2, %v1343_v41  ;;  %3015 = vmatmul.msk.f32.vlgmr.msra.gmra.mxu1 %vm387_vm2, %v1343_v41 }
 0xa29   :  { %1348 = vst.msk [vmem:[#allocation3 + $0x50] sm:$0xff] %vm387_vm2, %v1343_v41  ;;  %v1591_v41 = vld [vmem:[#allocation18 + $0x20] sm:$0xff] }
 0xa2a   :  { %1762 = vmatpush.msrb.mxu2 %v1591_v41  ;;  %v1611_v41 = vld [vmem:[#allocation19 + $0x40] sm:$0xff] }
 0xaa5   :  { %v1374_v4 = vpop.f32.mrf.mxu0  ;;  %v1394_v17 = vpop.f32.mrf.mxu1 }
 0xaa6   :  { %v1397_v42 = vadd.f32 %v1374_v4, %v4842_v23  ;;  %v1398_v2 = vadd.f32 %v1394_v17, %v4843_v33  ;;  %v1592_v4 = vld [vmem:[#allocation18 + $0x28] sm:$0xff]  ;;  %v1589_v17 = vld [vmem:[#allocation18 + $0x10] sm:$0xff]  ;;  %v1590_v23 = vld [vmem:[#allocation18 + $0x18] sm:$0xff] }
 0xaa7   :  { %1803 = vmatpush.msrb.mxu3 %v1592_v4  ;;  %1763 = vmatpush.msrb.mxu2 %v1589_v17  ;;  %v1612_v4 = vld [vmem:[#allocation19 + $0x48] sm:$0xff] }
 0xaa8   :  { %v3016_v1 = vmul.f32 -1.442695, %v1397_v42  ;;  %v3017_v18 = vmul.f32 -1.442695, %v1398_v2  ;;  %v1588_v42 = vld [vmem:[#allocation18 + $0x8] sm:$0xff] }
 0xaa9   :  { %1804 = vmatpush.msrb.mxu3 %v1590_v23  ;;  %v1571_v2 = vld [vmem:[#allocation3] sm:$0xff] }
 0xaaa   :  { %3207 = vpow2.f32 %v3016_v1  ;;  %v1572_v1 = vld [vmem:[#allocation3 + $0x8] sm:$0xff] }
 0xaab   :  { %3209 = vpow2.f32 %v3017_v18  ;;  %1805 = vmatpush.msrb.mxu3 %v1588_v42  ;;  %v1573_v18 = vld [vmem:[#allocation3 + $0x10] sm:$0xff] }
 0xab0   :  { %v3208_v45 = vpop.eup %3207 }
 0xab1   :  { %v3210_v8 = vpop.eup %3209  ;;  %v1405_v46 = vadd.f32 1.0, %v3208_v45  ;;  %v1574_v45 = vld [vmem:[#allocation3 + $0x18] sm:$0xff] }
 0xab2   :  { %v1406_v47 = vadd.f32 1.0, %v3210_v8  ;;  %v1575_v8 = vld [vmem:[#allocation3 + $0x20] sm:$0xff] }
 0xab3   :  { %3211 = vrcp.f32 %v1405_v46  ;;  %v1418_v36 = vand.u32 2147483648, %v1405_v46  ;;  %vm1412_vm10 = vweird.f32 %v1405_v46  ;;  %v1416_v59 = vand.u32 2147483647, %v1405_v46 }
 0xab4   :  { %3213 = vrcp.f32 %v1406_v47  ;;  %v1433_v53 = vand.u32 2147483648, %v1406_v47  ;;  %v1431_v16 = vand.u32 2147483647, %v1406_v47  ;;  %vm1427_vm6 = vweird.f32 %v1406_v47 }
 0xab5   :  { %v1419_v37 = vor.u32 1.1754944e-38, %v1418_v36  ;;  %vm1417_vm13 = vcmp.eq.f32.partialorder %v1416_v59, 8.507059e+37 }
 0xab6   :  { %v1434_v58 = vor.u32 1.1754944e-38, %v1433_v53  ;;  %vm1432_vm9 = vcmp.eq.f32.partialorder %v1431_v16, 8.507059e+37 }
 0xab9   :  { %v3212_v49 = vpop.eup %3211 }
 0xaba   :  { %v3214_v48 = vpop.eup %3213  ;;  %v1408_v9 = vmul.f32 %v3212_v49, %v1405_v46  ;;  %vm1413_vm7 = vweird.f32 %v3212_v49  ;;  %v1576_v46 = vld [vmem:[#allocation3 + $0x28] sm:$0xff] }
 0xabb   :  { %v1423_v15 = vmul.f32 %v3214_v48, %v1406_v47  ;;  %vm1428_vm5 = vweird.f32 %v3214_v48  ;;  %vm1414_vm11 = vmor %vm1412_vm10, %vm1413_vm7 }
 0xabc   :  { %v1409_v50 = vsub.f32 1.0, %v1408_v9  ;;  %vm1429_vm8 = vmor %vm1427_vm6, %vm1428_vm5  ;;  %v4844_v9 = vsel %vm4001_vm3, %v4081_v30, %v4077_v28 }
 0xabd   :  { %v1424_v51 = vsub.f32 1.0, %v1423_v15 }
 0xabe   :  { %v1410_v52 = vmul.f32 %v3212_v49, %v1409_v50  ;;  %v4845_v50 = vsel %vm4005_vm4, %v4083_v31, %v4079_v29 }
 0xabf   :  { %v1425_v12 = vmul.f32 %v3214_v48, %v1424_v51 }
 0xac0   :  { %v1411_v55 = vadd.f32 %v3212_v49, %v1410_v52 }
 0xac1   :  { %v1426_v54 = vadd.f32 %v3214_v48, %v1425_v12 }
 0xac2   :  { %v1415_v26 = vsel %vm1414_vm11, %v3212_v49, %v1411_v55 }
 0xac3   :  { %v1430_v38 = vsel %vm1429_vm8, %v3214_v48, %v1426_v54  ;;  %v1420_v56 = vsel %vm1417_vm13, %v1419_v37, %v1415_v26 }
 0xac4   :  { %v1435_v60 = vsel %vm1432_vm9, %v1434_v58, %v1430_v38  ;;  %v1443_v11 = vmul.f32 %v1420_v56, %v4255_v21  ;;  %v1587_v21 = vld [vmem:[#allocation18] sm:$0xff] }
 0xac5   :  { %v1438_v61 = vmul.f32 2.0, %v1435_v60  ;;  %1764 = vmatpush.msrb.mxu2 %v1587_v21 }
 0xac7   :  { %v3019_v39 = vadd.f32 -1.0, %v1438_v61 }
 0xac9   :  { %v1442_v62 = vsel %vm511_vm12, %v3019_v39, %v1435_v60 }
 0xaca   :  { %v1444_v63 = vmul.f32 %v1442_v62, %v1420_v56 }
 0xacc   :  { %1446 = vrot.lane.b32.xlu0 %v1444_v63, %s3677_s7 }
 0xb3e   :  { %v1447_v3 = vpop.permute.xlu0 %1446 }
 0xb3f   :  { %v4277_v5 = vadd.f32 %v1447_v3, %v1443_v11  ;;  %v1617_v11 = vld [vmem:[#allocation19 + $0x70] sm:$0xff]  ;;  %v1618_v3 = vld [vmem:[#allocation19 + $0x78] sm:$0xff] }
 0xb40   :  { %1651 = vmatpush.msrb.mxu0 %v1617_v11  ;;  %1692 = vmatpush.msrb.mxu1 %v1618_v3  ;;  %v469_v11 = vadd.f32 %v3992_v14, %v3985_v7 }
 0xb41   :  { %3215 = vtanh.f32 %v4277_v5 }
 0xb47   :  { %v3216_v20 = vpop.eup %3215 }
 0xb48   :  { %v1451_v32 = vmul.f32 %v3216_v20, %v1442_v62  ;;  %v1615_v20 = vld [vmem:[#allocation19 + $0x60] sm:$0xff] }
 0xb49   :  { %1652 = vmatpush.msrb.mxu0 %v1615_v20 }
 0xb4a   :  { %1453 = vrot.lane.b32.xlu1 %v1451_v32, %s3677_s7  ;;  %v1616_v32 = vld [vmem:[#allocation19 + $0x68] sm:$0xff] }
 0xb4b   :  { %1693 = vmatpush.msrb.mxu1 %v1616_v32  ;;  %1653 = vmatpush.msrb.mxu0 %v1613_v22 }
 0xb4d   :  { %1694 = vmatpush.msrb.mxu1 %v1614_v40  ;;  %1654 = vmatpush.msrb.mxu0 %v1611_v41 }
 0xb4f   :  { %1695 = vmatpush.msrb.mxu1 %v1612_v4 }
 0xbbc   :  { %v1454_v33 = vpop.permute.xlu1 %1453 }
 0xbbd   :  { %1457 = vst.msk [vmem:[#allocation3 + $0x30] sm:$0xff] %vm387_vm2, %v1454_v33  ;;  %3020 = vmatmul.msk.f32.vlgmr.msra.gmra.mxu2 %vm387_vm2, %v1454_v33  ;;  %3021 = vmatmul.msk.f32.vlgmr.msra.gmra.mxu3 %vm387_vm2, %v1454_v33 }
 0xbbe   :  { %1459 = vst.msk [vmem:[#allocation3 + $0x48] sm:$0xff] %vm387_vm2, %v1454_v33 }
 0xbc4   :  { %v1577_v47 = vld [vmem:[#allocation3 + $0x30] sm:$0xff] }
 0xbc5   :  { %3042 = vmatmul.msk.f32.vlgmr.msrb.gmra.mxu2 %vm387_vm2, %v1571_v2  ;;  %3050 = vmatmul.msk.f32.vlgmr.msrb.gmra.mxu3 %vm387_vm2, %v1571_v2  ;;  %v1609_v2 = vld [vmem:[#allocation19 + $0x30] sm:$0xff] }
 0xbc6   :  { %1655 = vmatpush.msrb.mxu0 %v1609_v2 }
 0xbcd   :  { %3043 = vmatmul.msk.f32.gmra.mxu2 %vm387_vm2, %v1572_v1  ;;  %3051 = vmatmul.msk.f32.gmra.mxu3 %vm387_vm2, %v1572_v1  ;;  %v1610_v1 = vld [vmem:[#allocation19 + $0x38] sm:$0xff] }
 0xbce   :  { %1696 = vmatpush.msrb.mxu1 %v1610_v1 }
 0xbd5   :  { %3044 = vmatmul.msk.f32.gmra.mxu2 %vm387_vm2, %v1573_v18  ;;  %3052 = vmatmul.msk.f32.gmra.mxu3 %vm387_vm2, %v1573_v18  ;;  %v1607_v18 = vld [vmem:[#allocation19 + $0x20] sm:$0xff] }
 0xbd6   :  { %1656 = vmatpush.msrb.mxu0 %v1607_v18 }
 0xbdd   :  { %3045 = vmatmul.msk.f32.gmra.mxu2 %vm387_vm2, %v1574_v45  ;;  %3053 = vmatmul.msk.f32.gmra.mxu3 %vm387_vm2, %v1574_v45  ;;  %v1608_v45 = vld [vmem:[#allocation19 + $0x28] sm:$0xff] }
 0xbde   :  { %1697 = vmatpush.msrb.mxu1 %v1608_v45 }
 0xbe5   :  { %3046 = vmatmul.msk.f32.gmra.mxu2 %vm387_vm2, %v1575_v8  ;;  %3054 = vmatmul.msk.f32.gmra.mxu3 %vm387_vm2, %v1575_v8  ;;  %v1605_v8 = vld [vmem:[#allocation19 + $0x10] sm:$0xff] }
 0xbe6   :  { %1657 = vmatpush.msrb.mxu0 %v1605_v8 }
 0xbed   :  { %3047 = vmatmul.msk.f32.gmra.mxu2 %vm387_vm2, %v1576_v46  ;;  %3055 = vmatmul.msk.f32.gmra.mxu3 %vm387_vm2, %v1576_v46  ;;  %v1606_v46 = vld [vmem:[#allocation19 + $0x18] sm:$0xff] }
 0xbee   :  { %1698 = vmatpush.msrb.mxu1 %v1606_v46 }
 0xbf5   :  { %3048 = vmatmul.msk.f32.gmra.mxu2 %vm387_vm2, %v1577_v47  ;;  %3056 = vmatmul.msk.f32.gmra.mxu3 %vm387_vm2, %v1577_v47  ;;  %v1603_v47 = vld [vmem:[#allocation19] sm:$0xff] }
 0xbf6   :  { %1658 = vmatpush.msrb.mxu0 %v1603_v47 }
 0xc40   :  { %v1485_v49 = vpop.f32.mrf.mxu2  ;;  %v1505_v48 = vpop.f32.mrf.mxu3 }
 0xc41   :  { %v1508_v15 = vadd.f32 %v1485_v49, %v4844_v9  ;;  %v1509_v51 = vadd.f32 %v1505_v48, %v4845_v50  ;;  %v1604_v49 = vld [vmem:[#allocation19 + $0x8] sm:$0xff]  ;;  %v4316_v48 = vld [vmem:[#allocation21 + $0x70] sm:$0xff]  ;;  %v4330_v50 = vld [vmem:[#allocation21 + $0x58] sm:$0xff] }
 0xc42   :  { %1699 = vmatpush.msrb.mxu1 %v1604_v49  ;;  %1893 = vmatpush.msra.mxu0 %v4316_v48  ;;  %v4322_v9 = vld [vmem:[#allocation21 + $0x68] sm:$0xff] }
 0xc43   :  { %v3022_v52 = vmul.f32 -1.442695, %v1508_v15  ;;  %v3023_v53 = vmul.f32 -1.442695, %v1509_v51  ;;  %2002 = vmatpush.msra.mxu2 %v4316_v48  ;;  %v4324_v15 = vld [vmem:[#allocation21 + $0x60] sm:$0xff]  ;;  %v4332_v51 = vld [vmem:[#allocation21 + $0x50] sm:$0xff] }
 0xc44   :  { %1894 = vmatpush.msra.mxu0 %v4324_v15 }
 0xc45   :  { %3217 = vpow2.f32 %v3022_v52  ;;  %2003 = vmatpush.msra.mxu2 %v4324_v15 }
 0xc46   :  { %3219 = vpow2.f32 %v3023_v53  ;;  %1895 = vmatpush.msra.mxu0 %v4332_v51  ;;  %v4340_v53 = vld [vmem:[#allocation21 + $0x48] sm:$0xff] }
 0xc47   :  { %2004 = vmatpush.msra.mxu2 %v4332_v51 }
 0xc4b   :  { %v3218_v12 = vpop.eup %3217 }
 0xc4c   :  { %v3220_v16 = vpop.eup %3219  ;;  %v1516_v54 = vadd.f32 1.0, %v3218_v12  ;;  %v4342_v12 = vld [vmem:[#allocation21 + $0x40] sm:$0xff] }
 0xc4d   :  { %v1517_v55 = vadd.f32 1.0, %v3220_v16  ;;  %1896 = vmatpush.msra.mxu0 %v4342_v12  ;;  %2005 = vmatpush.msra.mxu2 %v4342_v12 }
 0xc4e   :  { %3221 = vrcp.f32 %v1516_v54  ;;  %v1529_v56 = vand.u32 2147483648, %v1516_v54  ;;  %vm1523_vm6 = vweird.f32 %v1516_v54  ;;  %v1527_v63 = vand.u32 2147483647, %v1516_v54 }
 0xc4f   :  { %3223 = vrcp.f32 %v1517_v55  ;;  %v1544_v61 = vand.u32 2147483648, %v1517_v55  ;;  %v1542_v31 = vand.u32 2147483647, %v1517_v55  ;;  %vm1538_vm15 = vweird.f32 %v1517_v55 }
 0xc50   :  { %v1530_v57 = vor.u32 1.1754944e-38, %v1529_v56  ;;  %vm1528_vm8 = vcmp.eq.f32.partialorder %v1527_v63, 8.507059e+37  ;;  %v1586_v56 = vld [vmem:[#allocation3 + $0x78] sm:$0xff]  ;;  %v4448_v63 = vpop.f32.mrf.mxu2 }
 0xc51   :  { %v1545_v39 = vor.u32 1.1754944e-38, %v1544_v61  ;;  %vm1543_vm5 = vcmp.eq.f32.partialorder %v1542_v31, 8.507059e+37  ;;  %v1582_v61 = vld [vmem:[#allocation3 + $0x58] sm:$0xff] }
 0xc52   :  { %v4384_v31 = vld [vmem:[#allocation21] sm:$0xff] }
 0xc54   :  { %v3222_v58 = vpop.eup %3221 }
 0xc55   :  { %v3224_v36 = vpop.eup %3223  ;;  %v1519_v28 = vmul.f32 %v3222_v58, %v1516_v54  ;;  %vm1524_vm0 = vweird.f32 %v3222_v58 }
 0xc56   :  { %v1534_v30 = vmul.f32 %v3224_v36, %v1517_v55  ;;  %vm1539_vm14 = vweird.f32 %v3224_v36  ;;  %vm1525_vm7 = vmor %vm1523_vm6, %vm1524_vm0  ;;  %v4352_v55 = vld [vmem:[#allocation21 + $0x38] sm:$0xff] }
 0xc57   :  { %v1520_v38 = vsub.f32 1.0, %v1519_v28  ;;  %vm1540_vm1 = vmor %vm1538_vm15, %vm1539_vm14  ;;  %v4362_v28 = vld [vmem:[#allocation21 + $0x28] sm:$0xff] }
 0xc58   :  { %v1535_v59 = vsub.f32 1.0, %v1534_v30  ;;  %v4364_v30 = vld [vmem:[#allocation21 + $0x20] sm:$0xff] }
 0xc59   :  { %v1521_v60 = vmul.f32 %v3222_v58, %v1520_v38  ;;  %v1581_v38 = vld [vmem:[#allocation3 + $0x50] sm:$0xff] }
 0xc5a   :  { %v1536_v29 = vmul.f32 %v3224_v36, %v1535_v59  ;;  %v4372_v59 = vld [vmem:[#allocation21 + $0x18] sm:$0xff] }
 0xc5b   :  { %v1522_v37 = vadd.f32 %v3222_v58, %v1521_v60  ;;  %v4374_v60 = vld [vmem:[#allocation21 + $0x10] sm:$0xff] }
 0xc5c   :  { %v1537_v26 = vadd.f32 %v3224_v36, %v1536_v29  ;;  %v4382_v29 = vld [vmem:[#allocation21 + $0x8] sm:$0xff] }
 0xc5d   :  { %v1526_v27 = vsel %vm1525_vm7, %v3222_v58, %v1522_v37  ;;  %v4354_v58 = vld [vmem:[#allocation21 + $0x30] sm:$0xff] }
 0xc5e   :  { %v1541_v62 = vsel %vm1540_vm1, %v3224_v36, %v1537_v26  ;;  %v1531_v24 = vsel %vm1528_vm8, %v1530_v57, %v1526_v27  ;;  %1897 = vmatpush.msra.mxu0 %v4354_v58  ;;  %2006 = vmatpush.msra.mxu2 %v4354_v58  ;;  %v1580_v36 = vld [vmem:[#allocation3 + $0x48] sm:$0xff]  ;;  %v1583_v26 = vld [vmem:[#allocation3 + $0x60] sm:$0xff] }
 0xc5f   :  { %v1546_v0 = vsel %vm1543_vm5, %v1545_v39, %v1541_v62  ;;  %v1554_v17 = vmul.f32 %v1531_v24, %v4277_v5  ;;  %v4314_v5 = vld [vmem:[#allocation21 + $0x78] sm:$0xff]  ;;  %v1584_v37 = vld [vmem:[#allocation3 + $0x68] sm:$0xff]  ;;  %v4846_v62 = vmov 0.0  }
 0xc60   :  { %v1549_v10 = vmul.f32 2.0, %v1546_v0  ;;  %1913 = vmatpush.msra.mxu1 %v4314_v5  ;;  %2022 = vmatpush.msra.mxu3 %v4314_v5  ;;  %v1585_v39 = vld [vmem:[#allocation3 + $0x70] sm:$0xff] }
 0xc61   :  { %1898 = vmatpush.msra.mxu0 %v4364_v30  ;;  %2007 = vmatpush.msra.mxu2 %v4364_v30 }
 0xc62   :  { %v3025_v19 = vadd.f32 -1.0, %v1549_v10  ;;  %1914 = vmatpush.msra.mxu1 %v4322_v9  ;;  %2023 = vmatpush.msra.mxu3 %v4322_v9  ;;  %v1769_v10 = vpop.f32.mrf.mxu2 }
 0xc63   :  { %1899 = vmatpush.msra.mxu0 %v4374_v60  ;;  %2008 = vmatpush.msra.mxu2 %v4374_v60 }
 0xc64   :  { %v1553_v43 = vsel %vm511_vm12, %v3025_v19, %v1546_v0  ;;  %1915 = vmatpush.msra.mxu1 %v4330_v50  ;;  %2024 = vmatpush.msra.mxu3 %v4330_v50  ;;  %v4450_v0 = vpop.f32.mrf.mxu3 }
 0xc65   :  { %v1555_v44 = vmul.f32 %v1553_v43, %v1531_v24  ;;  %1900 = vmatpush.msra.mxu0 %v4384_v31  ;;  %2009 = vmatpush.msra.mxu2 %v4384_v31  ;;  %v471_v24 = vld [vmem:[%s4823_s11] sm:$0x3] }
 0xc66   :  { %1916 = vmatpush.msra.mxu1 %v4340_v53  ;;  %2025 = vmatpush.msra.mxu3 %v4340_v53  ;;  %v474_v3 = vperm.slane %v471_v24, 1 }
 0xc67   :  { %1557 = vrot.lane.b32.xlu2 %v1555_v44, %s3677_s7  ;;  %2220 = vmatpush.msrb.mxu2 %v4316_v48  ;;  %v473_v44 = vperm.slane %v471_v24, 0 }
 0xc68   :  { %1917 = vmatpush.msra.mxu1 %v4352_v55  ;;  %2026 = vmatpush.msra.mxu3 %v4352_v55  ;;  %v4465_v4 = vadd.f32 %v474_v3, %v469_v11 }
 0xc69   :  { %2221 = vmatpush.msrb.mxu2 %v4324_v15 }
 0xc6a   :  { %1918 = vmatpush.msra.mxu1 %v4362_v28  ;;  %2027 = vmatpush.msra.mxu3 %v4362_v28  ;;  %v1772_v20 = vpop.f32.mrf.mxu2 }
 0xc6b   :  { %2222 = vmatpush.msrb.mxu2 %v4332_v51 }
 0xc6c   :  { %1919 = vmatpush.msra.mxu1 %v4372_v59  ;;  %2028 = vmatpush.msra.mxu3 %v4372_v59  ;;  %v1810_v27 = vpop.f32.mrf.mxu3 }
 0xc6d   :  { %2223 = vmatpush.msrb.mxu2 %v4342_v12 }
 0xc6e   :  { %1920 = vmatpush.msra.mxu1 %v4382_v29  ;;  %2029 = vmatpush.msra.mxu3 %v4382_v29 }
 0xc6f   :  { %2224 = vmatpush.msrb.mxu2 %v4354_v58 }
 0xc70   :  { %2240 = vmatpush.msrb.mxu3 %v4314_v5 }
 0xc71   :  { %2225 = vmatpush.msrb.mxu2 %v4364_v30 }
 0xc72   :  { %2241 = vmatpush.msrb.mxu3 %v4322_v9  ;;  %v1775_v7 = vpop.f32.mrf.mxu2 }
 0xc73   :  { %2226 = vmatpush.msrb.mxu2 %v4374_v60 }
 0xc74   :  { %2242 = vmatpush.msrb.mxu3 %v4330_v50  ;;  %v1813_v32 = vpop.f32.mrf.mxu3 }
 0xc75   :  { %2227 = vmatpush.msrb.mxu2 %v4384_v31 }
 0xc76   :  { %2243 = vmatpush.msrb.mxu3 %v4340_v53 }
 0xc78   :  { %2244 = vmatpush.msrb.mxu3 %v4352_v55 }
 0xc7a   :  { %2245 = vmatpush.msrb.mxu3 %v4362_v28  ;;  %v1778_v49 = vpop.f32.mrf.mxu2 }
 0xc7c   :  { %2246 = vmatpush.msrb.mxu3 %v4372_v59  ;;  %v1816_v14 = vpop.f32.mrf.mxu3 }
 0xc7e   :  { %2247 = vmatpush.msrb.mxu3 %v4382_v29 }
 0xcc1   :  { %v1558_v23 = vpop.permute.xlu2 %1557 }
 0xcc2   :  { %v1560_v21 = vadd.f32 %v1558_v23, %v1554_v17 }
 0xcc4   :  { %3225 = vtanh.f32 %v1560_v21 }
 0xcca   :  { %v3226_v42 = vpop.eup %3225 }
 0xccb   :  { %v1562_v33 = vmul.f32 %v3226_v42, %v1553_v43  ;;  %v449_v43 = vadd.f32 %v3990_v13, %v3983_v6 }
 0xccd   :  { %1564 = vrot.lane.b32.xlu0 %v1562_v33, %s3677_s7  ;;  %v4463_v41 = vadd.f32 %v473_v44, %v449_v43 }
 0xd3f   :  { %v1565_v52 = vpop.permute.xlu0 %1564 }
 0xd40   :  { %1568 = vst.msk [vmem:[#allocation3 + $0x38] sm:$0xff] %vm387_vm2, %v1565_v52 }
 0xd41   :  { %1570 = vst.msk [vmem:[#allocation3 + $0x40] sm:$0xff] %vm387_vm2, %v1565_v52  ;;  %v1819_v52 = vpop.f32.mrf.mxu3 }
 0xd47   :  { %v1578_v16 = vld [vmem:[#allocation3 + $0x38] sm:$0xff] }
 0xd48   :  { %v1579_v54 = vld [vmem:[#allocation3 + $0x40] sm:$0xff]  ;;  %3049 = vmatmul.msk.f32.gmra.mxu2 %vm387_vm2, %v1578_v16  ;;  %3057 = vmatmul.msk.f32.gmra.mxu3 %vm387_vm2, %v1578_v16 }
 0xd49   :  { %3026 = vmatmul.msk.f32.vlgmr.msrb.gmra.mxu0 %vm387_vm2, %v1579_v54  ;;  %3034 = vmatmul.msk.f32.vlgmr.msrb.gmra.mxu1 %vm387_vm2, %v1579_v54 }
 0xd4a   :  { %2111 = vmatpush.msrb.mxu0 %v4316_v48  ;;  %2131 = vmatpush.msrb.mxu1 %v4314_v5 }
 0xd4c   :  { %2112 = vmatpush.msrb.mxu0 %v4324_v15  ;;  %2132 = vmatpush.msrb.mxu1 %v4322_v9 }
 0xd4e   :  { %2113 = vmatpush.msrb.mxu0 %v4332_v51  ;;  %2133 = vmatpush.msrb.mxu1 %v4330_v50 }
 0xd50   :  { %2114 = vmatpush.msrb.mxu0 %v4342_v12  ;;  %2134 = vmatpush.msrb.mxu1 %v4340_v53 }
 0xd51   :  { %3027 = vmatmul.msk.f32.gmra.mxu0 %vm387_vm2, %v1580_v36  ;;  %3035 = vmatmul.msk.f32.gmra.mxu1 %vm387_vm2, %v1580_v36 }
 0xd52   :  { %2115 = vmatpush.msrb.mxu0 %v4354_v58  ;;  %2135 = vmatpush.msrb.mxu1 %v4352_v55 }
 0xd54   :  { %2116 = vmatpush.msrb.mxu0 %v4364_v30  ;;  %2136 = vmatpush.msrb.mxu1 %v4362_v28 }
 0xd56   :  { %2117 = vmatpush.msrb.mxu0 %v4374_v60  ;;  %2137 = vmatpush.msrb.mxu1 %v4372_v59 }
 0xd58   :  { %2118 = vmatpush.msrb.mxu0 %v4384_v31  ;;  %2138 = vmatpush.msrb.mxu1 %v4382_v29 }
 0xd59   :  { %3028 = vmatmul.msk.f32.gmra.mxu0 %vm387_vm2, %v1581_v38  ;;  %3036 = vmatmul.msk.f32.gmra.mxu1 %vm387_vm2, %v1581_v38 }
 0xd61   :  { %3029 = vmatmul.msk.f32.gmra.mxu0 %vm387_vm2, %v1582_v61  ;;  %3037 = vmatmul.msk.f32.gmra.mxu1 %vm387_vm2, %v1582_v61 }
 0xd69   :  { %3030 = vmatmul.msk.f32.gmra.mxu0 %vm387_vm2, %v1583_v26  ;;  %3038 = vmatmul.msk.f32.gmra.mxu1 %vm387_vm2, %v1583_v26 }
 0xd71   :  { %3031 = vmatmul.msk.f32.gmra.mxu0 %vm387_vm2, %v1584_v37  ;;  %3039 = vmatmul.msk.f32.gmra.mxu1 %vm387_vm2, %v1584_v37 }
 0xd79   :  { %3032 = vmatmul.msk.f32.gmra.mxu0 %vm387_vm2, %v1585_v39  ;;  %3040 = vmatmul.msk.f32.gmra.mxu1 %vm387_vm2, %v1585_v39 }
 0xd81   :  { %3033 = vmatmul.msk.f32.gmra.mxu0 %vm387_vm2, %v1586_v56  ;;  %3041 = vmatmul.msk.f32.gmra.mxu1 %vm387_vm2, %v1586_v56  ;;  %v1781_v56 = vpop.f32.mrf.mxu2 }
 0xd89   :  { %1901 = vmatmul.f32.vlgmr.msra.gmra.mxu0 %v4846_v62  ;;  %1921 = vmatmul.f32.vlgmr.msra.gmra.mxu1 %v4846_v62  ;;  %v1822_v62 = vpop.f32.mrf.mxu3 }
 0xd8a   :  { %2329 = vmatpush.msra.mxu0 %v4316_v48  ;;  %2349 = vmatpush.msra.mxu1 %v4314_v5 }
 0xd8c   :  { %2330 = vmatpush.msra.mxu0 %v4324_v15  ;;  %2350 = vmatpush.msra.mxu1 %v4322_v9 }
 0xd8e   :  { %2331 = vmatpush.msra.mxu0 %v4332_v51  ;;  %2351 = vmatpush.msra.mxu1 %v4330_v50 }
 0xd90   :  { %2332 = vmatpush.msra.mxu0 %v4342_v12  ;;  %2352 = vmatpush.msra.mxu1 %v4340_v53 }
 0xd92   :  { %2333 = vmatpush.msra.mxu0 %v4354_v58  ;;  %2353 = vmatpush.msra.mxu1 %v4352_v55 }
 0xd94   :  { %2334 = vmatpush.msra.mxu0 %v4364_v30  ;;  %2354 = vmatpush.msra.mxu1 %v4362_v28 }
 0xd96   :  { %2335 = vmatpush.msra.mxu0 %v4374_v60  ;;  %2355 = vmatpush.msra.mxu1 %v4372_v59 }
 0xd98   :  { %2336 = vmatpush.msra.mxu0 %v4384_v31  ;;  %2356 = vmatpush.msra.mxu1 %v4382_v29 }
 0xdc6   :  { %v4452_v57 = vpop.f32.mrf.mxu0  ;;  %v4454_v19 = vpop.f32.mrf.mxu1 }
 0xdce   :  { %v1663_v22 = vpop.f32.mrf.mxu0  ;;  %v1704_v40 = vpop.f32.mrf.mxu1 }
 0xdcf   :  { %v1770_v17 = vadd.f32 %v1769_v10, %v1663_v22  ;;  %v1811_v23 = vadd.f32 %v1810_v27, %v1704_v40 }
 0xdd1   :  { %v4468_v21 = vadd.f32 %v1770_v17, %v4463_v41  ;;  %v4471_v6 = vadd.f32 %v1811_v23, %v4465_v4 }
 0xdd6   :  { %v1666_v13 = vpop.f32.mrf.mxu0  ;;  %v1707_v42 = vpop.f32.mrf.mxu1 }
 0xdd7   :  { %v1773_v33 = vadd.f32 %v1772_v20, %v1666_v13  ;;  %v1814_v2 = vadd.f32 %v1813_v32, %v1707_v42  ;;  %v1784_v42 = vpop.f32.mrf.mxu2 }
 0xdd9   :  { %v4474_v1 = vadd.f32 %v1773_v33, %v4463_v41  ;;  %v4477_v18 = vadd.f32 %v1814_v2, %v4465_v4 }
 0xdde   :  { %v1669_v45 = vpop.f32.mrf.mxu0  ;;  %v1710_v8 = vpop.f32.mrf.mxu1 }
 0xddf   :  { %v1776_v46 = vadd.f32 %v1775_v7, %v1669_v45  ;;  %v1817_v47 = vadd.f32 %v1816_v14, %v1710_v8  ;;  %v1825_v7 = vpop.f32.mrf.mxu3 }
 0xde1   :  { %v4480_v16 = vadd.f32 %v1776_v46, %v4463_v41  ;;  %v4483_v54 = vadd.f32 %v1817_v47, %v4465_v4 }
 0xde6   :  { %v1672_v36 = vpop.f32.mrf.mxu0  ;;  %v1713_v38 = vpop.f32.mrf.mxu1 }
 0xde7   :  { %v1779_v61 = vadd.f32 %v1778_v49, %v1672_v36  ;;  %v1820_v26 = vadd.f32 %v1819_v52, %v1713_v38  ;;  %v1767_v38 = vadd.f32 %v4448_v63, %v4452_v57 }
 0xde9   :  { %v4486_v37 = vadd.f32 %v1779_v61, %v4463_v41  ;;  %v4489_v39 = vadd.f32 %v1820_v26, %v4465_v4  ;;  %v1808_v61 = vadd.f32 %v4450_v0, %v4454_v19  ;;  %v1787_v26 = vpop.f32.mrf.mxu2 }
 0xdeb   :  { %v2208_v10 = vsel %vm4001_vm3, %v4480_v16, %v4486_v37  ;;  %v2209_v27 = vsel %vm4005_vm4, %v4483_v54, %v4489_v39  ;;  %v2317_v24 = vsel %vm4001_vm3, %v4486_v37, %v4480_v16  ;;  %v2318_v43 = vsel %vm4005_vm4, %v4489_v39, %v4483_v54 }
 0xdee   :  { %v1675_v44 = vpop.f32.mrf.mxu0  ;;  %v1716_v11 = vpop.f32.mrf.mxu1 }
 0xdef   :  { %v1782_v3 = vadd.f32 %v1781_v56, %v1675_v44  ;;  %v1823_v20 = vadd.f32 %v1822_v62, %v1716_v11  ;;  %v1828_v56 = vpop.f32.mrf.mxu3 }
 0xdf1   :  { %v4508_v32 = vadd.f32 %v1782_v3, %v4463_v41  ;;  %v4511_v22 = vadd.f32 %v1823_v20, %v4465_v4  ;;  %v4556_v20 = vadd.f32 %v1767_v38, %v4463_v41 }
 0xdf3   :  { %v2099_v40 = vsel %vm4001_vm3, %v4474_v1, %v4508_v32  ;;  %v2100_v17 = vsel %vm4005_vm4, %v4477_v18, %v4511_v22  ;;  %v2426_v23 = vsel %vm4001_vm3, %v4508_v32, %v4474_v1 }
 0xdf6   :  { %v1678_v14 = vpop.f32.mrf.mxu0  ;;  %v1719_v33 = vpop.f32.mrf.mxu1 }
 0xdf7   :  { %v1785_v2 = vadd.f32 %v1784_v42, %v1678_v14  ;;  %v1826_v45 = vadd.f32 %v1825_v7, %v1719_v33  ;;  %v4559_v42 = vadd.f32 %v1808_v61, %v4465_v4 }
 0xdf9   :  { %v4530_v8 = vadd.f32 %v1785_v2, %v4463_v41  ;;  %v4533_v46 = vadd.f32 %v1826_v45, %v4465_v4 }
 0xdfb   :  { %v1990_v47 = vsel %vm4001_vm3, %v4468_v21, %v4530_v8  ;;  %v1991_v49 = vsel %vm4005_vm4, %v4471_v6, %v4533_v46 }
 0xdfe   :  { %v1681_v62 = vpop.f32.mrf.mxu0  ;;  %v1722_v44 = vpop.f32.mrf.mxu1 }
 0xdff   :  { %v1788_v11 = vadd.f32 %v1787_v26, %v1681_v62  ;;  %v1829_v3 = vadd.f32 %v1828_v56, %v1722_v44 }
 0xe01   :  { %v4562_v7 = vadd.f32 %v1788_v11, %v4463_v41  ;;  %v4565_v63 = vadd.f32 %v1829_v3, %v4465_v4 }
 0xe03   :  { %v1883_v19 = vsel %vm4001_vm3, %v4556_v20, %v4562_v7  ;;  %v1884_v4 = vsel %vm4005_vm4, %v4559_v42, %v4565_v63 }
 0xe06   :  { %v1902_v41 = vpop.f32.mrf.mxu0  ;;  %v1922_v14 = vpop.f32.mrf.mxu1 }
 0xe07   :  { %v1925_v33 = vadd.f32 %v1902_v41, %v1883_v19  ;;  %v1926_v2 = vadd.f32 %v1922_v14, %v1884_v4 }
 0xe09   :  { %v3058_v45 = vmul.f32 -1.442695, %v1925_v33  ;;  %v3059_v38 = vmul.f32 -1.442695, %v1926_v2 }
 0xe0b   :  { %3227 = vpow2.f32 %v3058_v45 }
 0xe0c   :  { %3229 = vpow2.f32 %v3059_v38 }
 0xe11   :  { %v3228_v61 = vpop.eup %3227 }
 0xe12   :  { %v3230_v26 = vpop.eup %3229  ;;  %v1933_v56 = vadd.f32 1.0, %v3228_v61 }
 0xe13   :  { %v1934_v62 = vadd.f32 1.0, %v3230_v26 }
 0xe14   :  { %3231 = vrcp.f32 %v1933_v56  ;;  %v1946_v2 = vand.u32 2147483648, %v1933_v56  ;;  %vm1940_vm15 = vweird.f32 %v1933_v56  ;;  %v1944_v38 = vand.u32 2147483647, %v1933_v56 }
 0xe15   :  { %3233 = vrcp.f32 %v1934_v62  ;;  %v1961_v13 = vand.u32 2147483648, %v1934_v62  ;;  %v1959_v41 = vand.u32 2147483647, %v1934_v62  ;;  %vm1955_vm10 = vweird.f32 %v1934_v62 }
 0xe16   :  { %vm1945_vm1 = vcmp.eq.f32.partialorder %v1944_v38, 8.507059e+37 }
 0xe17   :  { %v1962_v33 = vor.u32 1.1754944e-38, %v1961_v13  ;;  %vm1960_vm14 = vcmp.eq.f32.partialorder %v1959_v41, 8.507059e+37 }
 0xe1a   :  { %v3232_v44 = vpop.eup %3231 }
 0xe1b   :  { %v3234_v11 = vpop.eup %3233  ;;  %v1936_v3 = vmul.f32 %v3232_v44, %v1933_v56  ;;  %vm1941_vm11 = vweird.f32 %v3232_v44 }
 0xe1c   :  { %v1951_v57 = vmul.f32 %v3234_v11, %v1934_v62  ;;  %vm1956_vm9 = vweird.f32 %v3234_v11  ;;  %vm1942_vm0 = vmor %vm1940_vm15, %vm1941_vm11 }
 0xe1d   :  { %v1937_v0 = vsub.f32 1.0, %v1936_v3  ;;  %vm1957_vm13 = vmor %vm1955_vm10, %vm1956_vm9 }
 0xe1e   :  { %v1952_v36 = vsub.f32 1.0, %v1951_v57 }
 0xe1f   :  { %v1938_v52 = vmul.f32 %v3232_v44, %v1937_v0  ;;  %v1947_v0 = vor.u32 1.1754944e-38, %v1946_v2 }
 0xe20   :  { %v1953_v19 = vmul.f32 %v3234_v11, %v1952_v36 }
 0xe21   :  { %v1939_v14 = vadd.f32 %v3232_v44, %v1938_v52 }
 0xe22   :  { %v1954_v4 = vadd.f32 %v3234_v11, %v1953_v19 }
 0xe23   :  { %v1943_v57 = vsel %vm1942_vm0, %v3232_v44, %v1939_v14 }
 0xe24   :  { %v1958_v45 = vsel %vm1957_vm13, %v3234_v11, %v1954_v4  ;;  %v1948_v36 = vsel %vm1945_vm1, %v1947_v0, %v1943_v57 }
 0xe25   :  { %v1963_v61 = vsel %vm1960_vm14, %v1962_v33, %v1958_v45  ;;  %v1971_v13 = vmul.f32 0.0, %v1948_v36 }
 0xe26   :  { %v1966_v26 = vmul.f32 2.0, %v1963_v61 }
 0xe28   :  { %v3061_v3 = vadd.f32 -1.0, %v1966_v26 }
 0xe2a   :  { %v1970_v62 = vsel %vm511_vm12, %v3061_v3, %v1963_v61 }
 0xe2b   :  { %v1972_v52 = vmul.f32 %v1970_v62, %v1948_v36 }
 0xe2d   :  { %1974 = vrot.lane.b32.xlu1 %v1972_v52, %s3677_s7 }
 0xe9f   :  { %v1975_v19 = vpop.permute.xlu1 %1974 }
 0xea0   :  { %v4586_v11 = vadd.f32 %v1975_v19, %v1971_v13 }
 0xea2   :  { %3235 = vtanh.f32 %v4586_v11 }
 0xea8   :  { %v3236_v56 = vpop.eup %3235 }
 0xea9   :  { %v1979_v41 = vmul.f32 %v3236_v56, %v1970_v62 }
 0xeab   :  { %1981 = vrot.lane.b32.xlu2 %v1979_v41, %s3677_s7 }
 0xf05   :  { %v1982_v44 = vpop.permute.xlu2 %1981 }
 0xf06   :  { %1984 = vst.msk [vmem:[#allocation3] sm:$0xff] %vm387_vm2, %v1982_v44  ;;  %3062 = vmatmul.msk.f32.vlgmr.msra.gmra.mxu2 %vm387_vm2, %v1982_v44  ;;  %3063 = vmatmul.msk.f32.vlgmr.msra.gmra.mxu3 %vm387_vm2, %v1982_v44 }
 0xf07   :  { %1985 = vst.msk [vmem:[#allocation3 + $0x78] sm:$0xff] %vm387_vm2, %v1982_v44  ;;  %2438 = vmatpush.msra.mxu2 %v4316_v48  ;;  %2458 = vmatpush.msra.mxu3 %v4314_v5 }
 0xf09   :  { %2439 = vmatpush.msra.mxu2 %v4324_v15  ;;  %2459 = vmatpush.msra.mxu3 %v4322_v9 }
 0xf0b   :  { %2440 = vmatpush.msra.mxu2 %v4332_v51  ;;  %2460 = vmatpush.msra.mxu3 %v4330_v50 }
 0xf0d   :  { %2441 = vmatpush.msra.mxu2 %v4342_v12  ;;  %2461 = vmatpush.msra.mxu3 %v4340_v53 }
 0xf0f   :  { %2442 = vmatpush.msra.mxu2 %v4354_v58  ;;  %2462 = vmatpush.msra.mxu3 %v4352_v55 }
 0xf11   :  { %2443 = vmatpush.msra.mxu2 %v4364_v30  ;;  %2463 = vmatpush.msra.mxu3 %v4362_v28 }
 0xf13   :  { %2444 = vmatpush.msra.mxu2 %v4374_v60  ;;  %2464 = vmatpush.msra.mxu3 %v4372_v59 }
 0xf15   :  { %2445 = vmatpush.msra.mxu2 %v4384_v31  ;;  %2465 = vmatpush.msra.mxu3 %v4382_v29 }
 0xf89   :  { %v2011_v4 = vpop.f32.mrf.mxu2  ;;  %v2031_v14 = vpop.f32.mrf.mxu3 }
 0xf8a   :  { %v2034_v33 = vadd.f32 %v2011_v4, %v1990_v47  ;;  %v2035_v2 = vadd.f32 %v2031_v14, %v1991_v49 }
 0xf8c   :  { %v3064_v45 = vmul.f32 -1.442695, %v2034_v33  ;;  %v3065_v38 = vmul.f32 -1.442695, %v2035_v2 }
 0xf8e   :  { %3237 = vpow2.f32 %v3064_v45 }
 0xf8f   :  { %3239 = vpow2.f32 %v3065_v38 }
 0xf94   :  { %v3238_v61 = vpop.eup %3237 }
 0xf95   :  { %v3240_v26 = vpop.eup %3239  ;;  %v2042_v57 = vadd.f32 1.0, %v3238_v61 }
 0xf96   :  { %v2043_v0 = vadd.f32 1.0, %v3240_v26 }
 0xf97   :  { %3241 = vrcp.f32 %v2042_v57  ;;  %v2055_v33 = vand.u32 2147483648, %v2042_v57  ;;  %vm2049_vm10 = vweird.f32 %v2042_v57  ;;  %v2053_v45 = vand.u32 2147483647, %v2042_v57 }
 0xf98   :  { %3243 = vrcp.f32 %v2043_v0  ;;  %v2070_v56 = vand.u32 2147483648, %v2043_v0  ;;  %v2068_v49 = vand.u32 2147483647, %v2043_v0  ;;  %vm2064_vm6 = vweird.f32 %v2043_v0 }
 0xf99   :  { %vm2054_vm13 = vcmp.eq.f32.partialorder %v2053_v45, 8.507059e+37 }
 0xf9a   :  { %v2071_v14 = vor.u32 1.1754944e-38, %v2070_v56  ;;  %vm2069_vm9 = vcmp.eq.f32.partialorder %v2068_v49, 8.507059e+37 }
 0xf9d   :  { %v3242_v3 = vpop.eup %3241 }
 0xf9e   :  { %v3244_v36 = vpop.eup %3243  ;;  %v2045_v62 = vmul.f32 %v3242_v3, %v2042_v57  ;;  %vm2050_vm7 = vweird.f32 %v3242_v3 }
 0xf9f   :  { %v2060_v47 = vmul.f32 %v3244_v36, %v2043_v0  ;;  %vm2065_vm5 = vweird.f32 %v3244_v36  ;;  %vm2051_vm11 = vmor %vm2049_vm10, %vm2050_vm7 }
 0xfa0   :  { %v2046_v52 = vsub.f32 1.0, %v2045_v62  ;;  %vm2066_vm8 = vmor %vm2064_vm6, %vm2065_vm5  ;;  %v2056_v62 = vor.u32 1.1754944e-38, %v2055_v33 }
 0xfa1   :  { %v2061_v13 = vsub.f32 1.0, %v2060_v47 }
 0xfa2   :  { %v2047_v19 = vmul.f32 %v3242_v3, %v2046_v52 }
 0xfa3   :  { %v2062_v41 = vmul.f32 %v3244_v36, %v2061_v13 }
 0xfa4   :  { %v2048_v4 = vadd.f32 %v3242_v3, %v2047_v19 }
 0xfa5   :  { %v2063_v44 = vadd.f32 %v3244_v36, %v2062_v41 }
 0xfa6   :  { %v2052_v26 = vsel %vm2051_vm11, %v3242_v3, %v2048_v4 }
 0xfa7   :  { %v2067_v2 = vsel %vm2066_vm8, %v3244_v36, %v2063_v44  ;;  %v2057_v52 = vsel %vm2054_vm13, %v2056_v62, %v2052_v26 }
 0xfa8   :  { %v2072_v38 = vsel %vm2069_vm9, %v2071_v14, %v2067_v2  ;;  %v2080_v19 = vmul.f32 %v2057_v52, %v4586_v11 }
 0xfa9   :  { %v2075_v61 = vmul.f32 2.0, %v2072_v38 }
 0xfab   :  { %v3067_v47 = vadd.f32 -1.0, %v2075_v61 }
 0xfad   :  { %v2079_v0 = vsel %vm511_vm12, %v3067_v47, %v2072_v38 }
 0xfae   :  { %v2081_v13 = vmul.f32 %v2079_v0, %v2057_v52 }
 0xfb0   :  { %2083 = vrot.lane.b32.xlu0 %v2081_v13, %s3677_s7 }
0x1022   :  { %v2084_v36 = vpop.permute.xlu0 %2083 }
0x1023   :  { %v4624_v56 = vadd.f32 %v2084_v36, %v2080_v19 }
0x1025   :  { %3245 = vtanh.f32 %v4624_v56 }
0x102b   :  { %v3246_v57 = vpop.eup %3245 }
0x102c   :  { %v2088_v41 = vmul.f32 %v3246_v57, %v2079_v0 }
0x102e   :  { %2090 = vrot.lane.b32.xlu1 %v2088_v41, %s3677_s7 }
0x10a0   :  { %v2091_v3 = vpop.permute.xlu1 %2090 }
0x10a1   :  { %2093 = vst.msk [vmem:[#allocation3 + $0x8] sm:$0xff] %vm387_vm2, %v2091_v3  ;;  %3068 = vmatmul.msk.f32.vlgmr.msrb.gmra.mxu0 %vm387_vm2, %v2091_v3  ;;  %3069 = vmatmul.msk.f32.vlgmr.msrb.gmra.mxu1 %vm387_vm2, %v2091_v3 }
0x10a2   :  { %2094 = vst.msk [vmem:[#allocation3 + $0x70] sm:$0xff] %vm387_vm2, %v2091_v3  ;;  %2567 = vmatpush.msrb.mxu1 %v4314_v5  ;;  %2547 = vmatpush.msrb.mxu0 %v4316_v48 }
0x10a4   :  { %2568 = vmatpush.msrb.mxu1 %v4322_v9  ;;  %2548 = vmatpush.msrb.mxu0 %v4324_v15 }
0x10a6   :  { %2569 = vmatpush.msrb.mxu1 %v4330_v50  ;;  %2549 = vmatpush.msrb.mxu0 %v4332_v51 }
0x10a8   :  { %2570 = vmatpush.msrb.mxu1 %v4340_v53  ;;  %2550 = vmatpush.msrb.mxu0 %v4342_v12 }
0x10aa   :  { %2571 = vmatpush.msrb.mxu1 %v4352_v55  ;;  %2551 = vmatpush.msrb.mxu0 %v4354_v58 }
0x10ac   :  { %2572 = vmatpush.msrb.mxu1 %v4362_v28  ;;  %2552 = vmatpush.msrb.mxu0 %v4364_v30 }
0x10ae   :  { %2573 = vmatpush.msrb.mxu1 %v4372_v59  ;;  %2553 = vmatpush.msrb.mxu0 %v4374_v60 }
0x10b0   :  { %2574 = vmatpush.msrb.mxu1 %v4382_v29  ;;  %2554 = vmatpush.msrb.mxu0 %v4384_v31 }
0x111e   :  { %v2120_v11 = vpop.f32.mrf.mxu0  ;;  %v2140_v49 = vpop.f32.mrf.mxu1 }
0x111f   :  { %v2143_v44 = vadd.f32 %v2120_v11, %v2099_v40  ;;  %v2144_v4 = vadd.f32 %v2140_v49, %v2100_v17 }
0x1121   :  { %v3070_v14 = vmul.f32 -1.442695, %v2143_v44  ;;  %v3071_v33 = vmul.f32 -1.442695, %v2144_v4 }
0x1123   :  { %3247 = vpow2.f32 %v3070_v14 }
0x1124   :  { %3249 = vpow2.f32 %v3071_v33 }
0x1129   :  { %v3248_v2 = vpop.eup %3247 }
0x112a   :  { %v3250_v45 = vpop.eup %3249  ;;  %v2151_v38 = vadd.f32 1.0, %v3248_v2 }
0x112b   :  { %v2152_v61 = vadd.f32 1.0, %v3250_v45 }
0x112c   :  { %3251 = vrcp.f32 %v2151_v38  ;;  %v2164_v11 = vand.u32 2147483648, %v2151_v38  ;;  %vm2158_vm6 = vweird.f32 %v2151_v38  ;;  %v2162_v44 = vand.u32 2147483647, %v2151_v38 }
0x112d   :  { %3253 = vrcp.f32 %v2152_v61  ;;  %v2179_v19 = vand.u32 2147483648, %v2152_v61  ;;  %v2177_v17 = vand.u32 2147483647, %v2152_v61  ;;  %vm2173_vm15 = vweird.f32 %v2152_v61 }
0x112e   :  { %v2165_v2 = vor.u32 1.1754944e-38, %v2164_v11  ;;  %vm2163_vm8 = vcmp.eq.f32.partialorder %v2162_v44, 8.507059e+37 }
0x112f   :  { %v2180_v3 = vor.u32 1.1754944e-38, %v2179_v19  ;;  %vm2178_vm5 = vcmp.eq.f32.partialorder %v2177_v17, 8.507059e+37 }
0x1132   :  { %v3252_v26 = vpop.eup %3251 }
0x1133   :  { %v3254_v62 = vpop.eup %3253  ;;  %v2154_v47 = vmul.f32 %v3252_v26, %v2151_v38  ;;  %vm2159_vm0 = vweird.f32 %v3252_v26 }
0x1134   :  { %v2169_v40 = vmul.f32 %v3254_v62, %v2152_v61  ;;  %vm2174_vm14 = vweird.f32 %v3254_v62  ;;  %vm2160_vm7 = vmor %vm2158_vm6, %vm2159_vm0 }
0x1135   :  { %v2155_v52 = vsub.f32 1.0, %v2154_v47  ;;  %vm2175_vm1 = vmor %vm2173_vm15, %vm2174_vm14 }
0x1136   :  { %v2170_v0 = vsub.f32 1.0, %v2169_v40 }
0x1137   :  { %v2156_v13 = vmul.f32 %v3252_v26, %v2155_v52 }
0x1138   :  { %v2171_v36 = vmul.f32 %v3254_v62, %v2170_v0 }
0x1139   :  { %v2157_v41 = vadd.f32 %v3252_v26, %v2156_v13 }
0x113a   :  { %v2172_v57 = vadd.f32 %v3254_v62, %v2171_v36 }
0x113b   :  { %v2161_v33 = vsel %vm2160_vm7, %v3252_v26, %v2157_v41 }
0x113c   :  { %v2176_v49 = vsel %vm2175_vm1, %v3254_v62, %v2172_v57  ;;  %v2166_v47 = vsel %vm2163_vm8, %v2165_v2, %v2161_v33 }
0x113d   :  { %v2181_v4 = vsel %vm2178_vm5, %v2180_v3, %v2176_v49  ;;  %v2189_v52 = vmul.f32 %v2166_v47, %v4624_v56 }
0x113e   :  { %v2184_v14 = vmul.f32 2.0, %v2181_v4 }
0x1140   :  { %v3073_v45 = vadd.f32 -1.0, %v2184_v14 }
0x1142   :  { %v2188_v61 = vsel %vm511_vm12, %v3073_v45, %v2181_v4 }
0x1143   :  { %v2190_v40 = vmul.f32 %v2188_v61, %v2166_v47 }
0x1145   :  { %2192 = vrot.lane.b32.xlu2 %v2190_v40, %s3677_s7 }
0x119f   :  { %v2193_v62 = vpop.permute.xlu2 %2192 }
0x11a0   :  { %v4662_v0 = vadd.f32 %v2193_v62, %v2189_v52 }
0x11a2   :  { %3255 = vtanh.f32 %v4662_v0 }
0x11a8   :  { %v3256_v38 = vpop.eup %3255 }
0x11a9   :  { %v2197_v13 = vmul.f32 %v3256_v38, %v2188_v61 }
0x11ab   :  { %2199 = vrot.lane.b32.xlu0 %v2197_v13, %s3677_s7 }
0x121d   :  { %v2200_v26 = vpop.permute.xlu0 %2199 }
0x121e   :  { %2202 = vst.msk [vmem:[#allocation3 + $0x10] sm:$0xff] %vm387_vm2, %v2200_v26  ;;  %3074 = vmatmul.msk.f32.vlgmr.msrb.gmra.mxu2 %vm387_vm2, %v2200_v26  ;;  %3075 = vmatmul.msk.f32.vlgmr.msrb.gmra.mxu3 %vm387_vm2, %v2200_v26 }
0x121f   :  { %2203 = vst.msk [vmem:[#allocation3 + $0x68] sm:$0xff] %vm387_vm2, %v2200_v26  ;;  %2656 = vmatpush.msrb.mxu2 %v4316_v48  ;;  %2676 = vmatpush.msrb.mxu3 %v4314_v5 }
0x1221   :  { %2657 = vmatpush.msrb.mxu2 %v4324_v15  ;;  %2677 = vmatpush.msrb.mxu3 %v4322_v9 }
0x1223   :  { %2658 = vmatpush.msrb.mxu2 %v4332_v51  ;;  %2678 = vmatpush.msrb.mxu3 %v4330_v50 }
0x1225   :  { %2659 = vmatpush.msrb.mxu2 %v4342_v12  ;;  %2679 = vmatpush.msrb.mxu3 %v4340_v53 }
0x1227   :  { %2660 = vmatpush.msrb.mxu2 %v4354_v58  ;;  %2680 = vmatpush.msrb.mxu3 %v4352_v55 }
0x1229   :  { %2661 = vmatpush.msrb.mxu2 %v4364_v30  ;;  %2681 = vmatpush.msrb.mxu3 %v4362_v28 }
0x122b   :  { %2662 = vmatpush.msrb.mxu2 %v4374_v60  ;;  %2682 = vmatpush.msrb.mxu3 %v4372_v59 }
0x122d   :  { %2663 = vmatpush.msrb.mxu2 %v4384_v31  ;;  %2683 = vmatpush.msrb.mxu3 %v4382_v29 }
0x12a1   :  { %v2229_v5 = vpop.f32.mrf.mxu2  ;;  %v2249_v48 = vpop.f32.mrf.mxu3 }
0x12a2   :  { %v2252_v9 = vadd.f32 %v2229_v5, %v2208_v10  ;;  %v2253_v15 = vadd.f32 %v2249_v48, %v2209_v27 }
0x12a4   :  { %v3076_v50 = vmul.f32 -1.442695, %v2252_v9  ;;  %v3077_v51 = vmul.f32 -1.442695, %v2253_v15 }
0x12a6   :  { %3257 = vpow2.f32 %v3076_v50 }
0x12a7   :  { %3259 = vpow2.f32 %v3077_v51 }
0x12ac   :  { %v3258_v53 = vpop.eup %3257 }
0x12ad   :  { %v3260_v12 = vpop.eup %3259  ;;  %v2260_v55 = vadd.f32 1.0, %v3258_v53 }
0x12ae   :  { %v2261_v58 = vadd.f32 1.0, %v3260_v12 }
0x12af   :  { %3261 = vrcp.f32 %v2260_v55  ;;  %v2273_v41 = vand.u32 2147483648, %v2260_v55  ;;  %vm2267_vm15 = vweird.f32 %v2260_v55  ;;  %v2271_v11 = vand.u32 2147483647, %v2260_v55 }
0x12b0   :  { %3263 = vrcp.f32 %v2261_v58  ;;  %v2288_v56 = vand.u32 2147483648, %v2261_v58  ;;  %v2286_v27 = vand.u32 2147483647, %v2261_v58  ;;  %vm2282_vm10 = vweird.f32 %v2261_v58 }
0x12b1   :  { %v2274_v14 = vor.u32 1.1754944e-38, %v2273_v41  ;;  %vm2272_vm1 = vcmp.eq.f32.partialorder %v2271_v11, 8.507059e+37 }
0x12b2   :  { %v2289_v57 = vor.u32 1.1754944e-38, %v2288_v56  ;;  %vm2287_vm14 = vcmp.eq.f32.partialorder %v2286_v27, 8.507059e+37 }
0x12b5   :  { %v3262_v28 = vpop.eup %3261 }
0x12b6   :  { %v3264_v30 = vpop.eup %3263  ;;  %v2263_v59 = vmul.f32 %v3262_v28, %v2260_v55  ;;  %vm2268_vm11 = vweird.f32 %v3262_v28 }
0x12b7   :  { %v2278_v60 = vmul.f32 %v3264_v30, %v2261_v58  ;;  %vm2283_vm9 = vweird.f32 %v3264_v30  ;;  %vm2269_vm0 = vmor %vm2267_vm15, %vm2268_vm11 }
0x12b8   :  { %v2264_v29 = vsub.f32 1.0, %v2263_v59  ;;  %vm2284_vm13 = vmor %vm2282_vm10, %vm2283_vm9 }
0x12b9   :  { %v2279_v31 = vsub.f32 1.0, %v2278_v60 }
0x12ba   :  { %v2265_v10 = vmul.f32 %v3262_v28, %v2264_v29 }
0x12bb   :  { %v2280_v19 = vmul.f32 %v3264_v30, %v2279_v31 }
0x12bc   :  { %v2266_v17 = vadd.f32 %v3262_v28, %v2265_v10 }
0x12bd   :  { %v2281_v36 = vadd.f32 %v3264_v30, %v2280_v19 }
0x12be   :  { %v2270_v4 = vsel %vm2269_vm0, %v3262_v28, %v2266_v17 }
0x12bf   :  { %v2285_v3 = vsel %vm2284_vm13, %v3264_v30, %v2281_v36  ;;  %v2275_v2 = vsel %vm2272_vm1, %v2274_v14, %v2270_v4 }
0x12c0   :  { %v2290_v49 = vsel %vm2287_vm14, %v2289_v57, %v2285_v3  ;;  %v2298_v61 = vmul.f32 %v2275_v2, %v4662_v0 }
0x12c1   :  { %v2293_v44 = vmul.f32 2.0, %v2290_v49 }
0x12c3   :  { %v3079_v33 = vadd.f32 -1.0, %v2293_v44 }
0x12c5   :  { %v2297_v45 = vsel %vm511_vm12, %v3079_v33, %v2290_v49 }
0x12c6   :  { %v2299_v47 = vmul.f32 %v2297_v45, %v2275_v2 }
0x12c8   :  { %2301 = vrot.lane.b32.xlu1 %v2299_v47, %s3677_s7 }
0x133a   :  { %v2302_v40 = vpop.permute.xlu1 %2301 }
0x133b   :  { %v2304_v52 = vadd.f32 %v2302_v40, %v2298_v61  ;;  %v4847_v40 = vsel %vm4005_vm4, %v4511_v22, %v4477_v18 }
0x133d   :  { %3265 = vtanh.f32 %v2304_v52 }
0x1343   :  { %v3266_v62 = vpop.eup %3265 }
0x1344   :  { %v2306_v38 = vmul.f32 %v3266_v62, %v2297_v45 }
0x1346   :  { %2308 = vrot.lane.b32.xlu2 %v2306_v38, %s3677_s7 }
0x13a0   :  { %v2309_v13 = vpop.permute.xlu2 %2308 }
0x13a1   :  { %2311 = vst.msk [vmem:[#allocation3 + $0x18] sm:$0xff] %vm387_vm2, %v2309_v13  ;;  %3080 = vmatmul.msk.f32.vlgmr.msra.gmra.mxu0 %vm387_vm2, %v2309_v13  ;;  %3081 = vmatmul.msk.f32.vlgmr.msra.gmra.mxu1 %vm387_vm2, %v2309_v13 }
0x13a2   :  { %2312 = vst.msk [vmem:[#allocation3 + $0x60] sm:$0xff] %vm387_vm2, %v2309_v13 }
0x141e   :  { %v2338_v26 = vpop.f32.mrf.mxu0  ;;  %v2358_v5 = vpop.f32.mrf.mxu1 }
0x141f   :  { %v2361_v0 = vadd.f32 %v2338_v26, %v2317_v24  ;;  %v2362_v48 = vadd.f32 %v2358_v5, %v2318_v43 }
0x1421   :  { %v3082_v9 = vmul.f32 -1.442695, %v2361_v0  ;;  %v3083_v15 = vmul.f32 -1.442695, %v2362_v48 }
0x1423   :  { %3267 = vpow2.f32 %v3082_v9 }
0x1424   :  { %3269 = vpow2.f32 %v3083_v15 }
0x1429   :  { %v3268_v50 = vpop.eup %3267 }
0x142a   :  { %v3270_v51 = vpop.eup %3269  ;;  %v2369_v53 = vadd.f32 1.0, %v3268_v50 }
0x142b   :  { %v2370_v12 = vadd.f32 1.0, %v3270_v51 }
0x142c   :  { %3271 = vrcp.f32 %v2369_v53  ;;  %v2382_v31 = vand.u32 2147483648, %v2369_v53  ;;  %vm2376_vm10 = vweird.f32 %v2369_v53  ;;  %v2380_v56 = vand.u32 2147483647, %v2369_v53 }
0x142d   :  { %3273 = vrcp.f32 %v2370_v12  ;;  %v2397_v59 = vand.u32 2147483648, %v2370_v12  ;;  %v2395_v39 = vand.u32 2147483647, %v2370_v12  ;;  %vm2391_vm6 = vweird.f32 %v2370_v12 }
0x142e   :  { %v2383_v17 = vor.u32 1.1754944e-38, %v2382_v31  ;;  %vm2381_vm13 = vcmp.eq.f32.partialorder %v2380_v56, 8.507059e+37  ;;  %v2771_v31 = vld [vmem:[#allocation22 + $0x30] sm:$0xff]  ;;  %v2769_v56 = vld [vmem:[#allocation22 + $0x20] sm:$0xff] }
0x142f   :  { %v2398_v29 = vor.u32 1.1754944e-38, %v2397_v59  ;;  %vm2396_vm9 = vcmp.eq.f32.partialorder %v2395_v39, 8.507059e+37 }
0x1432   :  { %v3272_v55 = vpop.eup %3271 }
0x1433   :  { %v3274_v58 = vpop.eup %3273  ;;  %v2372_v16 = vmul.f32 %v3272_v55, %v2369_v53  ;;  %vm2377_vm7 = vweird.f32 %v3272_v55 }
0x1434   :  { %v2387_v37 = vmul.f32 %v3274_v58, %v2370_v12  ;;  %vm2392_vm5 = vweird.f32 %v3274_v58  ;;  %vm2378_vm11 = vmor %vm2376_vm10, %vm2377_vm7 }
0x1435   :  { %v2373_v24 = vsub.f32 1.0, %v2372_v16  ;;  %vm2393_vm8 = vmor %vm2391_vm6, %vm2392_vm5 }
0x1436   :  { %v2388_v28 = vsub.f32 1.0, %v2387_v37 }
0x1437   :  { %v2374_v30 = vmul.f32 %v3272_v55, %v2373_v24 }
0x1438   :  { %v2389_v54 = vmul.f32 %v3274_v58, %v2388_v28 }
0x1439   :  { %v2375_v60 = vadd.f32 %v3272_v55, %v2374_v30 }
0x143a   :  { %v2390_v43 = vadd.f32 %v3274_v58, %v2389_v54 }
0x143b   :  { %v2379_v36 = vsel %vm2378_vm11, %v3272_v55, %v2375_v60 }
0x143c   :  { %v2394_v10 = vsel %vm2393_vm8, %v3274_v58, %v2390_v43  ;;  %v2384_v41 = vsel %vm2381_vm13, %v2383_v17, %v2379_v36 }
0x143d   :  { %v2399_v19 = vsel %vm2396_vm9, %v2398_v29, %v2394_v10  ;;  %v2407_v49 = vmul.f32 %v2384_v41, %v2304_v52  ;;  %v2772_v29 = vld [vmem:[#allocation22 + $0x38] sm:$0xff]  ;;  %v2770_v10 = vld [vmem:[#allocation22 + $0x28] sm:$0xff] }
0x143e   :  { %v2402_v27 = vmul.f32 2.0, %v2399_v19  ;;  %2878 = vmatpush.msra.mxu1 %v2772_v29 }
0x1440   :  { %v3085_v57 = vadd.f32 -1.0, %v2402_v27  ;;  %2879 = vmatpush.msra.mxu1 %v2771_v31 }
0x1442   :  { %v2406_v3 = vsel %vm511_vm12, %v3085_v57, %v2399_v19  ;;  %2880 = vmatpush.msra.mxu1 %v2770_v10 }
0x1443   :  { %v2408_v11 = vmul.f32 %v2406_v3, %v2384_v41  ;;  %v2768_v41 = vld [vmem:[#allocation22 + $0x18] sm:$0xff] }
0x1444   :  { %2881 = vmatpush.msra.mxu1 %v2769_v56 }
0x1445   :  { %2410 = vrot.lane.b32.xlu0 %v2408_v11, %s3677_s7  ;;  %v2766_v11 = vld [vmem:[#allocation22 + $0x8] sm:$0xff] }
0x1446   :  { %2882 = vmatpush.msra.mxu1 %v2768_v41 }
0x14b7   :  { %v2411_v44 = vpop.permute.xlu0 %2410 }
0x14b8   :  { %v4718_v4 = vadd.f32 %v2411_v44, %v2407_v49  ;;  %v2765_v49 = vld [vmem:[#allocation22] sm:$0xff] }
0x14ba   :  { %3275 = vtanh.f32 %v4718_v4 }
0x14c0   :  { %v3276_v14 = vpop.eup %3275 }
0x14c1   :  { %v2415_v33 = vmul.f32 %v3276_v14, %v2406_v3  ;;  %v2767_v3 = vld [vmem:[#allocation22 + $0x10] sm:$0xff] }
0x14c2   :  { %2883 = vmatpush.msra.mxu1 %v2767_v3  ;;  %v2750_v14 = vld [vmem:[#allocation3 + $0x8] sm:$0xff]  ;;  %v4851_v3 = vsel %vm4005_vm4, %v4565_v63, %v4559_v42 }
0x14c3   :  { %2417 = vrot.lane.b32.xlu1 %v2415_v33, %s3677_s7  ;;  %v2751_v33 = vld [vmem:[#allocation3 + $0x10] sm:$0xff] }
0x14c4   :  { %2884 = vmatpush.msra.mxu1 %v2766_v11 }
0x14c6   :  { %2885 = vmatpush.msra.mxu1 %v2765_v49 }
0x1535   :  { %v2418_v2 = vpop.permute.xlu1 %2417 }
0x1536   :  { %2420 = vst.msk [vmem:[#allocation3 + $0x20] sm:$0xff] %vm387_vm2, %v2418_v2  ;;  %3086 = vmatmul.msk.f32.vlgmr.msra.gmra.mxu2 %vm387_vm2, %v2418_v2  ;;  %3087 = vmatmul.msk.f32.vlgmr.msra.gmra.mxu3 %vm387_vm2, %v2418_v2 }
0x1537   :  { %2421 = vst.msk [vmem:[#allocation3 + $0x58] sm:$0xff] %vm387_vm2, %v2418_v2  ;;  %v2752_v2 = vld [vmem:[#allocation3 + $0x18] sm:$0xff] }
0x15b9   :  { %v2447_v45 = vpop.f32.mrf.mxu2  ;;  %v2467_v47 = vpop.f32.mrf.mxu3 }
0x15ba   :  { %v2470_v61 = vadd.f32 %v2447_v45, %v2426_v23  ;;  %v2471_v52 = vadd.f32 %v2467_v47, %v4847_v40  ;;  %v2753_v45 = vld [vmem:[#allocation3 + $0x20] sm:$0xff] }
0x15bc   :  { %v3088_v62 = vmul.f32 -1.442695, %v2470_v61  ;;  %v3089_v38 = vmul.f32 -1.442695, %v2471_v52  ;;  %v4848_v52 = vsel %vm4001_vm3, %v4530_v8, %v4468_v21 }
0x15be   :  { %3277 = vpow2.f32 %v3088_v62 }
0x15bf   :  { %3279 = vpow2.f32 %v3089_v38  ;;  %v4849_v38 = vsel %vm4005_vm4, %v4533_v46, %v4471_v6 }
0x15c4   :  { %v3278_v13 = vpop.eup %3277 }
0x15c5   :  { %v3280_v26 = vpop.eup %3279  ;;  %v2478_v5 = vadd.f32 1.0, %v3278_v13 }
0x15c6   :  { %v2479_v0 = vadd.f32 1.0, %v3280_v26 }
0x15c7   :  { %3281 = vrcp.f32 %v2478_v5  ;;  %v2491_v58 = vand.u32 2147483648, %v2478_v5  ;;  %vm2485_vm6 = vweird.f32 %v2478_v5  ;;  %v2489_v37 = vand.u32 2147483647, %v2478_v5 }
0x15c8   :  { %3283 = vrcp.f32 %v2479_v0  ;;  %v2506_v51 = vand.u32 2147483648, %v2479_v0  ;;  %v2504_v22 = vand.u32 2147483647, %v2479_v0  ;;  %vm2500_vm15 = vweird.f32 %v2479_v0 }
0x15c9   :  { %v2492_v59 = vor.u32 1.1754944e-38, %v2491_v58  ;;  %vm2490_vm8 = vcmp.eq.f32.partialorder %v2489_v37, 8.507059e+37 }
0x15ca   :  { %v2507_v55 = vor.u32 1.1754944e-38, %v2506_v51  ;;  %vm2505_vm5 = vcmp.eq.f32.partialorder %v2504_v22, 8.507059e+37 }
0x15cd   :  { %v3282_v48 = vpop.eup %3281 }
0x15ce   :  { %v3284_v9 = vpop.eup %3283  ;;  %v2481_v1 = vmul.f32 %v3282_v48, %v2478_v5  ;;  %vm2486_vm0 = vweird.f32 %v3282_v48 }
0x15cf   :  { %v2496_v32 = vmul.f32 %v3284_v9, %v2479_v0  ;;  %vm2501_vm14 = vweird.f32 %v3284_v9  ;;  %vm2487_vm7 = vmor %vm2485_vm6, %vm2486_vm0 }
0x15d0   :  { %v2482_v23 = vsub.f32 1.0, %v2481_v1  ;;  %vm2502_vm1 = vmor %vm2500_vm15, %vm2501_vm14 }
0x15d1   :  { %v2497_v15 = vsub.f32 1.0, %v2496_v32 }
0x15d2   :  { %v2483_v50 = vmul.f32 %v3282_v48, %v2482_v23 }
0x15d3   :  { %v2498_v18 = vmul.f32 %v3284_v9, %v2497_v15 }
0x15d4   :  { %v2484_v12 = vadd.f32 %v3282_v48, %v2483_v50 }
0x15d5   :  { %v2499_v53 = vadd.f32 %v3284_v9, %v2498_v18 }
0x15d6   :  { %v2488_v30 = vsel %vm2487_vm7, %v3282_v48, %v2484_v12 }
0x15d7   :  { %v2503_v16 = vsel %vm2502_vm1, %v3284_v9, %v2499_v53  ;;  %v2493_v39 = vsel %vm2490_vm8, %v2492_v59, %v2488_v30 }
0x15d8   :  { %v2508_v24 = vsel %vm2505_vm5, %v2507_v55, %v2503_v16  ;;  %v2516_v19 = vmul.f32 %v2493_v39, %v4718_v4  ;;  %v2749_v4 = vld [vmem:[#allocation3] sm:$0xff] }
0x15d9   :  { %v2511_v28 = vmul.f32 2.0, %v2508_v24 }
0x15db   :  { %v3091_v54 = vadd.f32 -1.0, %v2511_v28 }
0x15dd   :  { %v2515_v43 = vsel %vm511_vm12, %v3091_v54, %v2508_v24 }
0x15de   :  { %v2517_v60 = vmul.f32 %v2515_v43, %v2493_v39 }
0x15e0   :  { %2519 = vrot.lane.b32.xlu2 %v2517_v60, %s3677_s7 }
0x163a   :  { %v2520_v27 = vpop.permute.xlu2 %2519 }
0x163b   :  { %v4740_v36 = vadd.f32 %v2520_v27, %v2516_v19 }
0x163d   :  { %3285 = vtanh.f32 %v4740_v36 }
0x1643   :  { %v3286_v17 = vpop.eup %3285 }
0x1644   :  { %v2524_v57 = vmul.f32 %v3286_v17, %v2515_v43 }
0x1646   :  { %2526 = vrot.lane.b32.xlu0 %v2524_v57, %s3677_s7  ;;  %v4850_v57 = vsel %vm4001_vm3, %v4562_v7, %v4556_v20 }
0x16b8   :  { %v2527_v44 = vpop.permute.xlu0 %2526 }
0x16b9   :  { %2529 = vst.msk [vmem:[#allocation3 + $0x28] sm:$0xff] %vm387_vm2, %v2527_v44  ;;  %3092 = vmatmul.msk.f32.vlgmr.msrb.gmra.mxu0 %vm387_vm2, %v2527_v44  ;;  %3093 = vmatmul.msk.f32.vlgmr.msrb.gmra.mxu1 %vm387_vm2, %v2527_v44 }
0x16ba   :  { %2530 = vst.msk [vmem:[#allocation3 + $0x50] sm:$0xff] %vm387_vm2, %v2527_v44 }
0x16c0   :  { %v2754_v47 = vld [vmem:[#allocation3 + $0x28] sm:$0xff] }
0x16c1   :  { %3112 = vmatmul.msk.f32.vlgmr.msra.gmra.mxu1 %vm387_vm2, %v2749_v4 }
0x16c9   :  { %3113 = vmatmul.msk.f32.gmra.mxu1 %vm387_vm2, %v2750_v14 }
0x16d1   :  { %3114 = vmatmul.msk.f32.gmra.mxu1 %vm387_vm2, %v2751_v33 }
0x16d9   :  { %3115 = vmatmul.msk.f32.gmra.mxu1 %vm387_vm2, %v2752_v2 }
0x16e1   :  { %3116 = vmatmul.msk.f32.gmra.mxu1 %vm387_vm2, %v2753_v45 }
0x16e9   :  { %3117 = vmatmul.msk.f32.gmra.mxu1 %vm387_vm2, %v2754_v47 }
0x1736   :  { %v2556_v61 = vpop.f32.mrf.mxu0  ;;  %v2576_v40 = vpop.f32.mrf.mxu1 }
0x1737   :  { %v2579_v62 = vadd.f32 %v2556_v61, %v4848_v52  ;;  %v2580_v13 = vadd.f32 %v2576_v40, %v4849_v38 }
0x1739   :  { %v3094_v26 = vmul.f32 -1.442695, %v2579_v62  ;;  %v3095_v5 = vmul.f32 -1.442695, %v2580_v13 }
0x173b   :  { %3287 = vpow2.f32 %v3094_v26 }
0x173c   :  { %3289 = vpow2.f32 %v3095_v5 }
0x1741   :  { %v3288_v0 = vpop.eup %3287 }
0x1742   :  { %v3290_v48 = vpop.eup %3289  ;;  %v2587_v9 = vadd.f32 1.0, %v3288_v0 }
0x1743   :  { %v2588_v1 = vadd.f32 1.0, %v3290_v48 }
0x1744   :  { %3291 = vrcp.f32 %v2587_v9  ;;  %v2600_v55 = vand.u32 2147483648, %v2587_v9  ;;  %vm2594_vm15 = vweird.f32 %v2587_v9  ;;  %v2598_v16 = vand.u32 2147483647, %v2587_v9 }
0x1745   :  { %3293 = vrcp.f32 %v2588_v1  ;;  %v2615_v18 = vand.u32 2147483648, %v2588_v1  ;;  %v2613_v46 = vand.u32 2147483647, %v2588_v1  ;;  %vm2609_vm10 = vweird.f32 %v2588_v1 }
0x1746   :  { %v2601_v30 = vor.u32 1.1754944e-38, %v2600_v55  ;;  %vm2599_vm1 = vcmp.eq.f32.partialorder %v2598_v16, 8.507059e+37  ;;  %v2775_v55 = vld [vmem:[#allocation24 + $0x10] sm:$0xff]  ;;  %v2773_v16 = vld [vmem:[#allocation24] sm:$0xff] }
0x1747   :  { %v2616_v12 = vor.u32 1.1754944e-38, %v2615_v18  ;;  %vm2614_vm14 = vcmp.eq.f32.partialorder %v2613_v46, 8.507059e+37  ;;  %v2777_v18 = vld [vmem:[#allocation24 + $0x20] sm:$0xff] }
0x174a   :  { %v3292_v32 = vpop.eup %3291 }
0x174b   :  { %v3294_v23 = vpop.eup %3293  ;;  %v2590_v21 = vmul.f32 %v3292_v32, %v2587_v9  ;;  %vm2595_vm11 = vweird.f32 %v3292_v32 }
0x174c   :  { %v2605_v8 = vmul.f32 %v3294_v23, %v2588_v1  ;;  %vm2610_vm9 = vweird.f32 %v3294_v23  ;;  %vm2596_vm0 = vmor %vm2594_vm15, %vm2595_vm11 }
0x174d   :  { %v2591_v15 = vsub.f32 1.0, %v2590_v21  ;;  %vm2611_vm13 = vmor %vm2609_vm10, %vm2610_vm9 }
0x174e   :  { %v2606_v50 = vsub.f32 1.0, %v2605_v8 }
0x174f   :  { %v2592_v51 = vmul.f32 %v3292_v32, %v2591_v15  ;;  %v2780_v15 = vld [vmem:[#allocation24 + $0x38] sm:$0xff] }
0x1750   :  { %v2607_v6 = vmul.f32 %v3294_v23, %v2606_v50  ;;  %v2779_v50 = vld [vmem:[#allocation24 + $0x30] sm:$0xff]  ;;  %2813 = vmatpush.msra.mxu0 %v2780_v15 }
0x1751   :  { %v2593_v53 = vadd.f32 %v3292_v32, %v2592_v51  ;;  %v2778_v51 = vld [vmem:[#allocation24 + $0x28] sm:$0xff] }
0x1752   :  { %v2608_v22 = vadd.f32 %v3294_v23, %v2607_v6  ;;  %2814 = vmatpush.msra.mxu0 %v2779_v50 }
0x1753   :  { %v2597_v28 = vsel %vm2596_vm0, %v3292_v32, %v2593_v53 }
0x1754   :  { %v2612_v58 = vsel %vm2611_vm13, %v3294_v23, %v2608_v22  ;;  %v2602_v54 = vsel %vm2599_vm1, %v2601_v30, %v2597_v28  ;;  %2815 = vmatpush.msra.mxu0 %v2778_v51 }
0x1755   :  { %v2617_v37 = vsel %vm2614_vm14, %v2616_v12, %v2612_v58  ;;  %v2625_v60 = vmul.f32 %v2602_v54, %v4740_v36  ;;  %v2774_v58 = vld [vmem:[#allocation24 + $0x8] sm:$0xff] }
0x1756   :  { %v2620_v24 = vmul.f32 2.0, %v2617_v37  ;;  %2816 = vmatpush.msra.mxu0 %v2777_v18 }
0x1758   :  { %v3097_v59 = vadd.f32 -1.0, %v2620_v24  ;;  %2817 = vmatpush.msra.mxu0 %v2776_v25 }
0x175a   :  { %v2624_v39 = vsel %vm511_vm12, %v3097_v59, %v2617_v37  ;;  %2818 = vmatpush.msra.mxu0 %v2775_v55  ;;  %v2759_v59 = vld [vmem:[#allocation3 + $0x50] sm:$0xff] }
0x175b   :  { %v2626_v43 = vmul.f32 %v2624_v39, %v2602_v54  ;;  %v2760_v54 = vld [vmem:[#allocation3 + $0x58] sm:$0xff] }
0x175c   :  { %2819 = vmatpush.msra.mxu0 %v2774_v58 }
0x175d   :  { %2628 = vrot.lane.b32.xlu1 %v2626_v43, %s3677_s7  ;;  %v2762_v43 = vld [vmem:[#allocation3 + $0x68] sm:$0xff] }
0x175e   :  { %2820 = vmatpush.msra.mxu0 %v2773_v16 }
0x17cf   :  { %v2629_v29 = vpop.permute.xlu1 %2628 }
0x17d0   :  { %v4768_v31 = vadd.f32 %v2629_v29, %v2625_v60  ;;  %v2763_v60 = vld [vmem:[#allocation3 + $0x70] sm:$0xff]  ;;  %v2764_v29 = vld [vmem:[#allocation3 + $0x78] sm:$0xff] }
0x17d2   :  { %3295 = vtanh.f32 %v4768_v31 }
0x17d8   :  { %v3296_v10 = vpop.eup %3295 }
0x17d9   :  { %v2633_v56 = vmul.f32 %v3296_v10, %v2624_v39  ;;  %v2761_v39 = vld [vmem:[#allocation3 + $0x60] sm:$0xff] }
0x17da   :  { %v3146_v10 = vld [vmem:[%s4827_s15] ss:$0 sm:$0xff]  ;;  %s3678_s15 = smov [#allocation25]  }
0x17db   :  { %2635 = vrot.lane.b32.xlu2 %v2633_v56, %s3677_s7  ;;  %s2935_s2 = sshll.u32 %s3678_s15, 4  ;;  %s2936_s2 = int_to_ptr.vmem [resolvable:$true] %s2935_s2 }
0x1835   :  { %v2636_v19 = vpop.permute.xlu2 %2635 }
0x1836   :  { %2638 = vst.msk [vmem:[#allocation3 + $0x30] sm:$0xff] %vm387_vm2, %v2636_v19  ;;  %3098 = vmatmul.msk.f32.vlgmr.msrb.gmra.mxu2 %vm387_vm2, %v2636_v19  ;;  %3099 = vmatmul.msk.f32.vlgmr.msrb.gmra.mxu3 %vm387_vm2, %v2636_v19 }
0x1837   :  { %2639 = vst.msk [vmem:[#allocation3 + $0x48] sm:$0xff] %vm387_vm2, %v2636_v19 }
0x183d   :  { %v2755_v27 = vld [vmem:[#allocation3 + $0x30] sm:$0xff] }
0x183e   :  { %3118 = vmatmul.msk.f32.gmra.mxu1 %vm387_vm2, %v2755_v27  ;;  %v2758_v30 = vld [vmem:[#allocation3 + $0x48] sm:$0xff] }
0x18b9   :  { %v2665_v36 = vpop.f32.mrf.mxu2  ;;  %v2685_v17 = vpop.f32.mrf.mxu3 }
0x18ba   :  { %v2688_v41 = vadd.f32 %v2665_v36, %v4850_v57  ;;  %v2689_v11 = vadd.f32 %v2685_v17, %v4851_v3 }
0x18bc   :  { %v3100_v49 = vmul.f32 -1.442695, %v2688_v41  ;;  %v3101_v44 = vmul.f32 -1.442695, %v2689_v11 }
0x18be   :  { %3297 = vpow2.f32 %v3100_v49 }
0x18bf   :  { %3299 = vpow2.f32 %v3101_v44 }
0x18c4   :  { %v3298_v4 = vpop.eup %3297 }
0x18c5   :  { %v3300_v14 = vpop.eup %3299  ;;  %v2696_v33 = vadd.f32 1.0, %v3298_v4 }
0x18c6   :  { %v2697_v2 = vadd.f32 1.0, %v3300_v14 }
0x18c7   :  { %3301 = vrcp.f32 %v2696_v33  ;;  %v2709_v13 = vand.u32 2147483648, %v2696_v33  ;;  %vm2703_vm8 = vweird.f32 %v2696_v33  ;;  %v2707_v5 = vand.u32 2147483647, %v2696_v33 }
0x18c8   :  { %3303 = vrcp.f32 %v2697_v2  ;;  %v2724_v40 = vand.u32 2147483648, %v2697_v2  ;;  %v2722_v63 = vand.u32 2147483647, %v2697_v2  ;;  %vm2718_vm4 = vweird.f32 %v2697_v2 }
0x18c9   :  { %v2710_v1 = vor.u32 1.1754944e-38, %v2709_v13  ;;  %vm2708_vm10 = vcmp.eq.f32.partialorder %v2707_v5, 8.507059e+37 }
0x18ca   :  { %v2725_v38 = vor.u32 1.1754944e-38, %v2724_v40  ;;  %vm2723_vm7 = vcmp.eq.f32.partialorder %v2722_v63, 8.507059e+37 }
0x18cd   :  { %v3302_v34 = vpop.eup %3301 }
0x18ce   :  { %v3304_v45 = vpop.eup %3303  ;;  %v2699_v20 = vmul.f32 %v3302_v34, %v2696_v33  ;;  %vm2704_vm5 = vweird.f32 %v3302_v34 }
0x18cf   :  { %v2714_v7 = vmul.f32 %v3304_v45, %v2697_v2  ;;  %vm2719_vm3 = vweird.f32 %v3304_v45  ;;  %vm2705_vm9 = vmor %vm2703_vm8, %vm2704_vm5 }
0x18d0   :  { %v2700_v47 = vsub.f32 1.0, %v2699_v20  ;;  %vm2720_vm6 = vmor %vm2718_vm4, %vm2719_vm3 }
0x18d1   :  { %v2715_v35 = vsub.f32 1.0, %v2714_v7 }
0x18d2   :  { %v2701_v61 = vmul.f32 %v3302_v34, %v2700_v47 }
0x18d3   :  { %v2716_v42 = vmul.f32 %v3304_v45, %v2715_v35 }
0x18d4   :  { %v2702_v62 = vadd.f32 %v3302_v34, %v2701_v61 }
0x18d5   :  { %v2717_v52 = vadd.f32 %v3304_v45, %v2716_v42 }
0x18d6   :  { %v2706_v9 = vsel %vm2705_vm9, %v3302_v34, %v2702_v62 }
0x18d7   :  { %v2721_v26 = vsel %vm2720_vm6, %v3304_v45, %v2717_v52  ;;  %v2711_v23 = vsel %vm2708_vm10, %v2710_v1, %v2706_v9 }
0x18d8   :  { %v2726_v0 = vsel %vm2723_vm7, %v2725_v38, %v2721_v26  ;;  %v2734_v6 = vmul.f32 %v2711_v23, %v4768_v31  ;;  %v2887_v31 = vpop.f32.mrf.mxu1 }
0x18d9   :  { %v2729_v48 = vmul.f32 2.0, %v2726_v0 }
0x18db   :  { %v3103_v32 = vadd.f32 -1.0, %v2729_v48 }
0x18dd   :  { %v2733_v21 = vsel %vm511_vm12, %v3103_v32, %v2726_v0 }
0x18de   :  { %v2735_v8 = vmul.f32 %v2733_v21, %v2711_v23 }
0x18e0   :  { %2737 = vrot.lane.b32.xlu0 %v2735_v8, %s3677_s7  ;;  %v2890_v56 = vpop.f32.mrf.mxu1 }
0x18e8   :  { %v2893_v41 = vpop.f32.mrf.mxu1 }
0x18f0   :  { %v2896_v4 = vpop.f32.mrf.mxu1 }
0x18f8   :  { %v2899_v34 = vpop.f32.mrf.mxu1 }
0x1900   :  { %v2902_v47 = vpop.f32.mrf.mxu1 }
0x1908   :  { %v2905_v42 = vpop.f32.mrf.mxu1 }
0x1952   :  { %v2738_v46 = vpop.permute.xlu0 %2737 }
0x1953   :  { %v2740_v22 = vadd.f32 %v2738_v46, %v2734_v6 }
0x1955   :  { %3305 = vtanh.f32 %v2740_v22 }
0x195b   :  { %v3306_v53 = vpop.eup %3305 }
0x195c   :  { %v2742_v12 = vmul.f32 %v3306_v53, %v2733_v21 }
0x195e   :  { %2744 = vrot.lane.b32.xlu1 %v2742_v12, %s3677_s7 }
0x19d0   :  { %v2745_v37 = vpop.permute.xlu1 %2744 }
0x19d1   :  { %2747 = vst.msk [vmem:[#allocation3 + $0x38] sm:$0xff] %vm387_vm2, %v2745_v37 }
0x19d2   :  { %2748 = vst.msk [vmem:[#allocation3 + $0x40] sm:$0xff] %vm387_vm2, %v2745_v37 }
0x19d8   :  { %v2756_v24 = vld [vmem:[#allocation3 + $0x38] sm:$0xff] }
0x19d9   :  { %v2757_v28 = vld [vmem:[#allocation3 + $0x40] sm:$0xff]  ;;  %3119 = vmatmul.msk.f32.gmra.mxu1 %vm387_vm2, %v2756_v24 }
0x19da   :  { %3104 = vmatmul.msk.f32.vlgmr.msra.gmra.mxu0 %vm387_vm2, %v2757_v28 }
0x19e2   :  { %3105 = vmatmul.msk.f32.gmra.mxu0 %vm387_vm2, %v2758_v30 }
0x19ea   :  { %3106 = vmatmul.msk.f32.gmra.mxu0 %vm387_vm2, %v2759_v59 }
0x19f2   :  { %3107 = vmatmul.msk.f32.gmra.mxu0 %vm387_vm2, %v2760_v54 }
0x19fa   :  { %3108 = vmatmul.msk.f32.gmra.mxu0 %vm387_vm2, %v2761_v39 }
0x1a02   :  { %3109 = vmatmul.msk.f32.gmra.mxu0 %vm387_vm2, %v2762_v43 }
0x1a0a   :  { %3110 = vmatmul.msk.f32.gmra.mxu0 %vm387_vm2, %v2763_v60 }
0x1a12   :  { %3111 = vmatmul.msk.f32.gmra.mxu0 %vm387_vm2, %v2764_v29 }
0x1a56   :  { %v2908_v38 = vpop.f32.mrf.mxu1 }
0x1a57   :  { %v2822_v19 = vpop.f32.mrf.mxu0 }
0x1a58   :  { %v2888_v27 = vadd.f32 %v2887_v31, %v2822_v19 }
0x1a5a   :  { %v2915_v36 = vadd.f32 %v3146_v10, %v2888_v27 }
0x1a5c   :  { %2923 = vst [vmem:[#allocation25] sm:$0xff] %v2915_v36 }
0x1a5f   :  { %v2825_v17 = vpop.f32.mrf.mxu0 }
0x1a60   :  { %v2891_v57 = vadd.f32 %v2890_v56, %v2825_v17 }
0x1a62   :  { %v2916_v3 = vadd.f32 %v3146_v10, %v2891_v57 }
0x1a64   :  { %2924 = vst [vmem:[#allocation25 + $0x8] sm:$0xff] %v2916_v3 }
0x1a67   :  { %v2828_v11 = vpop.f32.mrf.mxu0 }
0x1a68   :  { %v2894_v49 = vadd.f32 %v2893_v41, %v2828_v11 }
0x1a6a   :  { %v2917_v44 = vadd.f32 %v3146_v10, %v2894_v49 }
0x1a6c   :  { %2925 = vst [vmem:[#allocation25 + $0x10] sm:$0xff] %v2917_v44 }
0x1a6f   :  { %v2831_v14 = vpop.f32.mrf.mxu0 }
0x1a70   :  { %v2897_v33 = vadd.f32 %v2896_v4, %v2831_v14 }
0x1a72   :  { %v2918_v2 = vadd.f32 %v3146_v10, %v2897_v33 }
0x1a74   :  { %2926 = vst [vmem:[#allocation25 + $0x18] sm:$0xff] %v2918_v2 }
0x1a77   :  { %v2834_v45 = vpop.f32.mrf.mxu0 }
0x1a78   :  { %v2900_v20 = vadd.f32 %v2899_v34, %v2834_v45 }
0x1a7a   :  { %v2919_v7 = vadd.f32 %v3146_v10, %v2900_v20 }
0x1a7c   :  { %2927 = vst [vmem:[#allocation25 + $0x20] sm:$0xff] %v2919_v7 }
0x1a7f   :  { %v2837_v35 = vpop.f32.mrf.mxu0 }
0x1a80   :  { %v2903_v61 = vadd.f32 %v2902_v47, %v2837_v35 }
0x1a82   :  { %v2920_v40 = vadd.f32 %v3146_v10, %v2903_v61 }
0x1a84   :  { %2928 = vst [vmem:[#allocation25 + $0x28] sm:$0xff] %v2920_v40 }
0x1a87   :  { %v2840_v63 = vpop.f32.mrf.mxu0 }
0x1a88   :  { %v2906_v52 = vadd.f32 %v2905_v42, %v2840_v63 }
0x1a8a   :  { %v2921_v62 = vadd.f32 %v3146_v10, %v2906_v52 }
0x1a8c   :  { %2929 = vst [vmem:[#allocation25 + $0x30] sm:$0xff] %v2921_v62 }
0x1a8f   :  { %v2843_v13 = vpop.f32.mrf.mxu0 }
0x1a90   :  { %v2909_v26 = vadd.f32 %v2908_v38, %v2843_v13 }
0x1a92   :  { %v2922_v5 = vadd.f32 %v3146_v10, %v2909_v26 }
0x1a94   :  { %2930 = vst [vmem:[#allocation25 + $0x38] sm:$0xff] %v2922_v5 }
0x1a95   :  { %2943 = dma.vmem_to_hbm [thread:$0]  %s2936_s2, 1024, %s2938_s1, [#allocation6], %s3667_s21, %s3667_s21, %s3668_s22  }
0x1a96   :  { %3657 = dma.done.wait [#allocation6], 1024  }
0x1a97   :  { %3658 = vsyncadd [#allocation6], 4294966272 }
0x1a98   :  { %2948 = vsyncpa [#allocation5], 1 }
0x1a99   :  { %2949 = vsyncpa [#allocation8], 1 }
0x1a9a   :  { %2950 = vsyncpa [#allocation11], 1 }
0x1a9b   :  { %2951 = vsyncpa [#allocation14], 1 }
0x1a9c   :  { %2952 = vsyncpa [#allocation17], 1 }
0x1a9d   :  { %2953 = vsyncpa [#allocation20], 1 }
0x1a9e   :  { %2954 = vsyncpa [#allocation23], 1 }
0x1a9f   :  { %2955 = vsyncpa [#allocation6], 1 }

</bundles_post_ra>
